<compile_context>
chip_gen: v6e
topology: v6e:2x2x1
jax: 0.10.0
libtpu: 0.0.40
codegen_flags: <defaults>
</compile_context>

<pallas_src>
import functools

import jax
import jax.numpy as jnp
from jax import lax
from jax.experimental import pallas as pl
from jax.experimental.pallas import tpu as pltpu

G = 8          # number of correlation groups


def _round_up(n, m):
    return ((n + m - 1) // m) * m


def _pick_lane_tile(n, cap=1024):
    """Lane (last-dim) tile: full extent rounded up to 128 when small, else `cap`."""
    n128 = _round_up(n, 128)
    return n128 if n128 <= cap else cap


# ----------------------------------------------------------------------------
# Pallas kernels
# ----------------------------------------------------------------------------
def _conv_matmul_kernel(x_ref, w_ref, sh_ref, o_ref, *, relu):
    """out[O, TN] = W[O, F] @ X[F, TN] + shift [+ ReLU]  (spatial on lanes)."""
    acc = jnp.dot(w_ref[...], x_ref[0], preferred_element_type=jnp.float32)
    y = acc + sh_ref[...]                                  # (O,1) broadcast over lanes
    if relu:
        y = jnp.maximum(y, 0.0)
    o_ref[0] = y


def _gwc_accum_kernel(ref_ref, wrp_ref, sel_ref, sim_ref, out_ref):
    """out[b,d] = sim_in[b,d] + Sel @ (ref * warped_d).

    Sel is a [G, C] block-diagonal selection matrix with 1/(Cg*V) folded in, so
    the group-wise mean + view averaging is one tiny MXU matmul and the whole
    [G, HW] block is written with a single dense store."""
    r = ref_ref[0]                                         # [C, HW] f32
    w = wrp_ref[0, 0].astype(jnp.float32)                  # [C, HW]
    corr = jnp.dot(sel_ref[...], r * w, preferred_element_type=jnp.float32)  # [G, HW]
    out_ref[0, 0] = sim_ref[0, 0] + corr


def _depth_conf_kernel(reg_ref, dv_ref, depth_ref, conf_ref, *, D):
    """Softmax over depth, depth regression, photometric confidence (HW-tiled)."""
    s = reg_ref[0]                                          # [D, T]
    m = jnp.max(s, axis=0, keepdims=True)
    e = jnp.exp(s - m)
    p = e * pl.reciprocal(jnp.sum(e, axis=0, keepdims=True), approx=True)  # prob volume

    dv = dv_ref[0]                                          # [D, 1]
    depth_ref[0] = jnp.sum(p * dv, axis=0, keepdims=True)   # expected depth [1, T]

    idx_i = lax.broadcasted_iota(jnp.int32, p.shape, 0)     # depth index iota [D, T]
    exp_idx = jnp.sum(p * idx_i.astype(jnp.float32), axis=0, keepdims=True)
    didx = jnp.floor(exp_idx).astype(jnp.int32)             # torch .long() for >= 0

    # 4 * avg_pool3d(pad(prob, (1,2) along D), (4,1,1), stride 1) == window-4 sum
    z1 = jnp.zeros((1, p.shape[1]), p.dtype)
    z2 = jnp.zeros((2, p.shape[1]), p.dtype)
    pz = jnp.concatenate([z1, p, z2], axis=0)               # [D+3, T]
    sum4 = pz[0:D] + pz[1:D + 1] + pz[2:D + 2] + pz[3:D + 3]

    conf_ref[0] = jnp.sum(jnp.where(idx_i == didx, sum4, 0.0), axis=0, keepdims=True)


# ----------------------------------------------------------------------------
# Pallas wrappers
# ----------------------------------------------------------------------------
def _im2col_cfirst(x, k, stride, pad):
    """NCHW -> [B, C*k*k, Ho*Wo]  (channels-first: no transposes before/after)."""
    B, C, H, W = x.shape
    xp = jnp.pad(x, ((0, 0), (0, 0), (pad, pad), (pad, pad)))
    Hp, Wp = H + 2 * pad, W + 2 * pad
    Ho = (Hp - k) // stride + 1
    Wo = (Wp - k) // stride + 1
    cols = []
    for di in range(k):
        for dj in range(k):
            cols.append(xp[:, :, di:di + (Ho - 1) * stride + 1:stride,
                              dj:dj + (Wo - 1) * stride + 1:stride])
    patches = jnp.stack(cols, axis=2)                       # [B, C, k*k, Ho, Wo]
    return patches.reshape(B, C * k * k, Ho * Wo), Ho, Wo


def conv2d_pallas(x, w, scale, shift, *, stride=1, pad=1, relu=True):
    """Conv2d (NCHW) + folded-BN affine + optional ReLU as a Pallas matmul.

    Lane-dense layout: out[O, N] with N = Ho*Wo on lanes; X / W in bf16,
    accumulation in f32, BN scale folded into the weight columns.
    """
    B, C, H, W = x.shape
    O, _, k, _ = w.shape
    X, Ho, Wo = _im2col_cfirst(x, k, stride, pad)           # [B, F, HoWo]
    # TODO(synk): build the patch matrix inside the kernel (halo window / manual
    # DMA) to remove the k*k im2col HBM inflation; kept wrapper-side for robustness.
    F_ = C * k * k
    HoWo = Ho * Wo
    TN = _pick_lane_tile(HoWo)
    Np = _round_up(HoWo, TN)
    Xp = jnp.pad(X, ((0, 0), (0, 0), (0, Np - HoWo))).astype(jnp.bfloat16)
    Wm = (w.reshape(O, F_) * scale.reshape(O, 1)).astype(jnp.bfloat16)  # fold BN scale
    sh = shift.reshape(O, 1).astype(jnp.float32)

    out = pl.pallas_call(
        functools.partial(_conv_matmul_kernel, relu=relu),
        out_shape=jax.ShapeDtypeStruct((B, O, Np), jnp.float32),
        grid_spec=pltpu.PrefetchScalarGridSpec(
            num_scalar_prefetch=0,
            grid=(B, Np // TN),
            in_specs=[
                pl.BlockSpec((1, F_, TN), lambda b, n: (b, 0, n)),
                pl.BlockSpec((O, F_), lambda b, n: (0, 0)),
                pl.BlockSpec((O, 1), lambda b, n: (0, 0)),
            ],
            out_specs=pl.BlockSpec((1, O, TN), lambda b, n: (b, 0, n)),
        ),
        compiler_params=pltpu.CompilerParams(
            dimension_semantics=("parallel", "parallel")),
    )(Xp, Wm, sh)

    return out[:, :, :HoWo].reshape(B, O, Ho, Wo)


def conv_transpose2d_pallas(x, w, *, stride=2, pad=1, out_pad=1):
    """ConvTranspose2d(k=3, s=2, p=1, op=1, bias=False) as zero-dilated conv.

    Note: a 4-phase sub-pixel decomposition would avoid the 75%-zero dilated
    intermediate; the deconvs are tiny here so the simpler form is kept."""
    B, I, H, W = x.shape
    O = w.shape[1]
    k = w.shape[2]
    Hd, Wd = (H - 1) * stride + 1, (W - 1) * stride + 1
    xd = jnp.zeros((B, I, Hd, Wd), x.dtype).at[:, :, ::stride, ::stride].set(x)
    lo = k - 1 - pad
    hi = k - 1 - pad + out_pad
    xp = jnp.pad(xd, ((0, 0), (0, 0), (lo, hi), (lo, hi)))
    w_conv = jnp.flip(w, axis=(2, 3)).transpose(1, 0, 2, 3)          # [O, I, k, k]
    return conv2d_pallas(xp, w_conv, jnp.ones((O,), jnp.float32),
                         jnp.zeros((O,), jnp.float32), stride=1, pad=0, relu=False)


def group_wise_correlation_add_pallas(ref_fea, warped, sim_in, groups, num_views):
    """sim_out = sim_in + (1/(Cg*V)) * group-wise correlation(ref, warped).

    warped: [B, D, C, HW] bf16 (depth-major, no wrapper transpose).
    sim:    [B, D, G, HW] f32, accumulated in place via input_output_aliases.
    """
    B, C, Hf, Wf = ref_fea.shape
    D = warped.shape[1]
    HW = Hf * Wf
    Cg = C // groups
    ref_r = ref_fea.reshape(B, C, HW)
    sel = jnp.repeat(jnp.eye(groups, dtype=jnp.float32), Cg, axis=1) / (Cg * num_views)

    return pl.pallas_call(
        _gwc_accum_kernel,
        out_shape=jax.ShapeDtypeStruct((B, D, groups, HW), jnp.float32),
        grid_spec=pltpu.PrefetchScalarGridSpec(
            num_scalar_prefetch=0,
            grid=(B, D),
            in_specs=[
                pl.BlockSpec((1, C, HW), lambda b, d: (b, 0, 0)),
                pl.BlockSpec((1, 1, C, HW), lambda b, d: (b, d, 0, 0)),
                pl.BlockSpec((groups, C), lambda b, d: (0, 0)),
                pl.BlockSpec((1, 1, groups, HW), lambda b, d: (b, d, 0, 0)),
            ],
            out_specs=pl.BlockSpec((1, 1, groups, HW), lambda b, d: (b, d, 0, 0)),
        ),
        input_output_aliases={3: 0},
        compiler_params=pltpu.CompilerParams(
            dimension_semantics=("parallel", "parallel")),
    )(ref_r, warped, sel, sim_in)


def depth_conf_pallas(reg, depth_values):
    """softmax(reg, dim=D) -> depth regression + photometric confidence."""
    B, D, H, W = reg.shape
    HW = H * W
    T = _pick_lane_tile(HW, cap=2048)
    HWp = _round_up(HW, T)
    reg_r = jnp.pad(reg.reshape(B, D, HW), ((0, 0), (0, 0), (0, HWp - HW)))
    dv_r = depth_values.reshape(B, D, 1).astype(jnp.float32)
    depth, conf = pl.pallas_call(
        functools.partial(_depth_conf_kernel, D=D),
        out_shape=(jax.ShapeDtypeStruct((B, 1, HWp), jnp.float32),
                   jax.ShapeDtypeStruct((B, 1, HWp), jnp.float32)),
        grid_spec=pltpu.PrefetchScalarGridSpec(
            num_scalar_prefetch=0,
            grid=(B, HWp // T),
            in_specs=[
                pl.BlockSpec((1, D, T), lambda b, n: (b, 0, n)),
                pl.BlockSpec((1, D, 1), lambda b, n: (b, 0, 0)),
            ],
            out_specs=[
                pl.BlockSpec((1, 1, T), lambda b, n: (b, 0, n)),
                pl.BlockSpec((1, 1, T), lambda b, n: (b, 0, n)),
            ],
        ),
        compiler_params=pltpu.CompilerParams(
            dimension_semantics=("parallel", "parallel")),
    )(reg_r, dv_r)
    return depth[:, 0, :HW].reshape(B, H, W), conf[:, 0, :HW].reshape(B, H, W)


# ----------------------------------------------------------------------------
# Plain-JAX glue: homography warping + bilinear grid_sample (zero padding)
# ----------------------------------------------------------------------------
def _bilinear_sample_zeros(fea, x, y):
    """fea: [B,C,Hs,Ws]; x, y: [B,D,N] pixel coords -> [B, D, C, N] (zero padding)."""
    B, C, Hs, Ws = fea.shape
    _, D, N = x.shape
    flat = fea.reshape(B, C, Hs * Ws)
    x0 = jnp.floor(x)
    y0 = jnp.floor(y)

    def gather(xi, yi):
        valid = ((xi >= 0) & (xi <= Ws - 1) & (yi >= 0) & (yi <= Hs - 1)).astype(fea.dtype)
        xc = jnp.clip(xi, 0, Ws - 1).astype(jnp.int32)
        yc = jnp.clip(yi, 0, Hs - 1).astype(jnp.int32)
        idx = yc * Ws + xc                                           # [B, D, N]

        def one_depth(i):                                            # i: [B, N]
            ib = jnp.broadcast_to(i[:, None, :], (B, C, N))
            return jnp.take_along_axis(flat, ib, axis=2)             # [B, C, N]

        g = jax.vmap(one_depth, in_axes=1, out_axes=1)(idx)          # [B, D, C, N]
        return g * valid[:, :, None, :]

    w00 = (x0 + 1 - x) * (y0 + 1 - y)
    w10 = (x - x0) * (y0 + 1 - y)
    w01 = (x0 + 1 - x) * (y - y0)
    w11 = (x - x0) * (y - y0)
    return (gather(x0, y0) * w00[:, :, None, :] + gather(x0 + 1, y0) * w10[:, :, None, :]
            + gather(x0, y0 + 1) * w01[:, :, None, :]
            + gather(x0 + 1, y0 + 1) * w11[:, :, None, :])


# TODO(synk): F.grid_sample (data-dependent bilinear gather) has no clean tiled
# Pallas expression; the homography + gather stay in plain JAX/XLA.
def warping_jax(src_fea, src_proj, ref_proj, depth_values):
    """Homography warp over D depth hypotheses (align_corners=True, zero padding).

    Returns warped features as [B, D, C, H*W] bf16 (depth-major, ready for the
    GWC kernel without any transpose; bf16 halves HBM traffic of the largest
    tensor in the pipeline)."""
    B, C, H, W = src_fea.shape
    proj = src_proj @ jnp.linalg.inv(ref_proj)
    rot = proj[:, :3, :3]
    trans = proj[:, :3, 3]
    ys, xs = jnp.meshgrid(jnp.arange(H, dtype=jnp.float32),
                          jnp.arange(W, dtype=jnp.float32), indexing='ij')
    xyz = jnp.stack([xs.reshape(-1), ys.reshape(-1), jnp.ones(H * W, jnp.float32)], axis=0)
    rot_xyz = jnp.einsum('bij,jn->bin', rot, xyz)                            # [B, 3, HW]
    rot_depth_xyz = rot_xyz[:, :, None, :] * depth_values[:, None, :, None]  # [B, 3, D, HW]
    proj_xyz = rot_depth_xyz + trans[:, :, None, None]
    px = proj_xyz[:, 0] / proj_xyz[:, 2]                                     # [B, D, HW]
    py = proj_xyz[:, 1] / proj_xyz[:, 2]
    warped = _bilinear_sample_zeros(src_fea, px, py)                         # [B, D, C, HW]
    return warped.astype(jnp.bfloat16)


# ----------------------------------------------------------------------------
# Networks (orchestrate the Pallas conv kernels)
# ----------------------------------------------------------------------------
def _cbr(p, x, *, stride, pad):
    return conv2d_pallas(x, p['w'], p['scale'], p['shift'], stride=stride, pad=pad, relu=True)


def feature_net(p, x):
    x = _cbr(p['f0a'], x, stride=1, pad=1)
    x = _cbr(p['f0b'], x, stride=1, pad=1)
    x = _cbr(p['f1a'], x, stride=2, pad=2)
    x = _cbr(p['f1b'], x, stride=1, pad=1)
    x = _cbr(p['f1c'], x, stride=1, pad=1)
    x = _cbr(p['f2a'], x, stride=2, pad=2)
    x = _cbr(p['f2b'], x, stride=1, pad=1)
    x = conv2d_pallas(x, p['f2c']['w'], jnp.ones((32,), jnp.float32), p['f2c']['b'],
                      stride=1, pad=1, relu=False)
    return x                                                # [N, 32, H/4, W/4]


def similarity_reg_net(p, sim, Hf, Wf):
    B, D, Gc, HW = sim.shape
    x = sim.reshape(B * D, Gc, Hf, Wf)                      # sim is [B,D,G,HW]: no transpose
    c0 = _cbr(p['r0'], x, stride=1, pad=1)                  # [BD,  8, H,   W  ]
    c1 = _cbr(p['r1'], c0, stride=2, pad=1)                 # [BD, 16, H/2, W/2]
    c2 = _cbr(p['r2'], c1, stride=2, pad=1)                 # [BD, 32, H/4, W/4]
    c3 = conv_transpose2d_pallas(c2, p['r3']['w'])          # [BD, 16, H/2, W/2]
    c4 = conv_transpose2d_pallas(c3 + c1, p['r4']['w'])     # [BD,  8, H,   W  ]
    s = conv2d_pallas(c4 + c0, p['r5']['w'], jnp.ones((1,), jnp.float32),
                      p['r5']['b'], stride=1, pad=1, relu=False)
    return s.reshape(B, D, Hf, Wf)


def net_forward(params, imgs, proj_matrices, depth_values):
    B, V, Ci, H, W = imgs.shape
    # All V views through FeatureNet in one batched pass (bigger M, one launch chain).
    feats = feature_net(params['feature'], imgs.reshape(B * V, Ci, H, W))
    C, Hf, Wf = feats.shape[1], feats.shape[2], feats.shape[3]
    feats = feats.reshape(B, V, C, Hf, Wf)
    ref_feature = feats[:, 0]
    ref_proj = proj_matrices[:, 0]

    D = depth_values.shape[1]
    HW = Hf * Wf
    sim_sum = jnp.zeros((B, D, G, HW), jnp.float32)         # depth-major cost volume
    for v in range(1, V):
        warped = warping_jax(feats[:, v], proj_matrices[:, v], ref_proj, depth_values)
        # in-place accumulation (1/V folded into the kernel's selection matrix)
        sim_sum = group_wise_correlation_add_pallas(ref_feature, warped, sim_sum, G, V)

    reg = similarity_reg_net(params['reg'], sim_sum, Hf, Wf)   # [B, D, Hf, Wf]
    depth, conf = depth_conf_pallas(reg, depth_values)
    return {'depth': depth, 'photometric_confidence': conf}


# ----------------------------------------------------------------------------
# Deterministic parameter initialization (synthetic weights)
# ----------------------------------------------------------------------------
def init_params(key):
    keys = iter(jax.random.split(key, 32))

    def cbr(cin, cout, k):
        kw, kg, kb, km, kv = jax.random.split(next(keys), 5)
        w = 0.2 * jax.random.normal(kw, (cout, cin, k, k), jnp.float32)
        gamma = 1.0 + 0.1 * jax.random.normal(kg, (cout,), jnp.float32)
        beta = 0.1 * jax.random.normal(kb, (cout,), jnp.float32)
        mean = 0.05 * jax.random.normal(km, (cout,), jnp.float32)
        var = 1.0 + 0.1 * jax.random.uniform(kv, (cout,), jnp.float32)
        scale = gamma / jnp.sqrt(var + 1e-5)                # BN folded (eval mode)
        shift = beta - mean * scale
        return {'w': w, 'scale': scale, 'shift': shift}

    def conv(cin, cout, k):
        kw, kb = jax.random.split(next(keys), 2)
        return {'w': 0.2 * jax.random.normal(kw, (cout, cin, k, k), jnp.float32),
                'b': 0.05 * jax.random.normal(kb, (cout,), jnp.float32)}

    def deconv(cin, cout, k):
        return {'w': 0.2 * jax.random.normal(next(keys), (cin, cout, k, k), jnp.float32)}

    feature = {'f0a': cbr(3, 8, 3), 'f0b': cbr(8, 8, 3),
               'f1a': cbr(8, 16, 5), 'f1b': cbr(16, 16, 3), 'f1c': cbr(16, 16, 3),
               'f2a': cbr(16, 32, 5), 'f2b': cbr(32, 32, 3), 'f2c': conv(32, 32, 3)}
    reg = {'r0': cbr(G, 8, 3), 'r1': cbr(8, 16, 3), 'r2': cbr(16, 32, 3),
           'r3': deconv(32, 16, 3), 'r4': deconv(16, 8, 3), 'r5': conv(8, 1, 3)}
    return {'feature': feature, 'reg': reg}


def make_proj_matrices(B, V, H, W):
    f = 0.8 * W
    cx, cy = (W - 1) / 2.0, (H - 1) / 2.0
    K = jnp.array([[f, 0.0, cx], [0.0, f, cy], [0.0, 0.0, 1.0]], jnp.float32)
    mats = []
    for v in range(V):
        t = jnp.array([[0.15 * v], [0.07 * v], [0.0]], jnp.float32)
        Rt = jnp.concatenate([jnp.eye(3, dtype=jnp.float32), t], axis=1)
        P = jnp.concatenate([K @ Rt, jnp.array([[0., 0., 0., 1.]], jnp.float32)], axis=0)
        mats.append(P)
    proj = jnp.stack(mats, axis=0)
    return jnp.broadcast_to(proj[None], (B, V, 4, 4)).astype(jnp.float32)


if __name__ == "__main__":
    key = jax.random.PRNGKey(0)
    kp, ki = jax.random.split(key)
    params = init_params(kp)

    B, V, H, W, D = 2, 3, 32, 32, 8
    imgs = jax.random.uniform(ki, (B, V, 3, H, W), jnp.float32)
    Hf, Wf = H // 4, W // 4
    proj_matrices = make_proj_matrices(B, V, Hf, Wf)
    depth_values = jnp.broadcast_to(
        jnp.linspace(1.0, 4.0, D, dtype=jnp.float32)[None], (B, D))

    out = jax.jit(net_forward)(params, imgs, proj_matrices, depth_values)
    out = jax.block_until_ready(out)

    assert out['depth'].shape == (B, Hf, Wf)
    assert out['photometric_confidence'].shape == (B, Hf, Wf)
    print("KERNEL_OK")
</pallas_src>

<mosaic_0001>
module attributes {stable_mosaic.version = 11 : i64} {
  func.func @_conv_matmul_kernel(%arg0: i32, %arg1: i32, %arg2: memref<1x27x1024xbf16, #tpu.memory_space<vmem>>, %arg3: memref<8x27xbf16, #tpu.memory_space<vmem>>, %arg4: memref<8x1xf32, #tpu.memory_space<vmem>>, %arg5: memref<1x8x1024xf32, #tpu.memory_space<vmem>>) attributes {dimension_semantics = [#tpu.dimension_semantics<parallel>, #tpu.dimension_semantics<parallel>], iteration_bounds = array<i64: 6, 1>, scalar_prefetch = 0 : i64, scratch_operands = 0 : i64, tpu.core_type = #tpu.core_type<tc>, window_params = [{transform_indices = @transform_0, window_bounds = array<i64: 1, 27, 1024>}, {pipeline_mode = #tpu.pipeline_mode<synchronous>, transform_indices = @transform_1, window_bounds = array<i64: 8, 27>}, {pipeline_mode = #tpu.pipeline_mode<synchronous>, transform_indices = @transform_2, window_bounds = array<i64: 8, 1>}, {transform_indices = @transform_3, window_bounds = array<i64: 1, 8, 1024>}]} {
    %c0 = arith.constant 0 : index
    %c0_0 = arith.constant 0 : index
    %0 = vector.load %arg3[%c0, %c0_0] : memref<8x27xbf16, #tpu.memory_space<vmem>>, vector<8x27xbf16>
    %c0_1 = arith.constant 0 : index
    %c0_2 = arith.constant 0 : index
    %c0_3 = arith.constant 0 : index
    %1 = vector.load %arg2[%c0_1, %c0_2, %c0_3] : memref<1x27x1024xbf16, #tpu.memory_space<vmem>>, vector<1x27x1024xbf16>
    %2 = vector.shape_cast %1 : vector<1x27x1024xbf16> to vector<27x1024xbf16>
    %cst = arith.constant dense<0.000000e+00> : vector<8x1024xf32>
    %3 = tpu.matmul %0, %2, %cst {dimension_numbers = #tpu.dot_dimension_numbers<[1], [0], [0], [1], [0, 0, 1, 1], [], []>} : vector<8x27xbf16>, vector<27x1024xbf16>, vector<8x1024xf32> -> vector<8x1024xf32>
    %c0_4 = arith.constant 0 : index
    %c0_5 = arith.constant 0 : index
    %4 = vector.load %arg4[%c0_4, %c0_5] : memref<8x1xf32, #tpu.memory_space<vmem>>, vector<8x1xf32>
    %5 = vector.broadcast %4 : vector<8x1xf32> to vector<8x1024xf32>
    %6 = arith.addf %3, %5 : vector<8x1024xf32>
    %cst_6 = arith.constant 0.000000e+00 : f32
    %7 = vector.broadcast %cst_6 : f32 to vector<8x1024xf32>
    %8 = arith.maximumf %6, %7 : vector<8x1024xf32>
    %c0_7 = arith.constant 0 : index
    %c0_8 = arith.constant 0 : index
    %c0_9 = arith.constant 0 : index
    %9 = vector.load %arg5[%c0_7, %c0_8, %c0_9] : memref<1x8x1024xf32, #tpu.memory_space<vmem>>, vector<1x8x1024xf32>
    %10 = vector.shape_cast %9 : vector<1x8x1024xf32> to vector<8x1024xf32>
    %11 = vector.shape_cast %8 : vector<8x1024xf32> to vector<1x8x1024xf32>
    tpu.vector_store %arg5[%c0_7, %c0_8, %c0_9], %11 {strides = array<i32>} : memref<1x8x1024xf32, #tpu.memory_space<vmem>>, vector<1x8x1024xf32>,
    return
  }
  func.func @transform_0(%arg0: i32, %arg1: i32) -> (i32, i32, i32) {
    %c0_i32 = arith.constant 0 : i32
    %c0_i32_0 = arith.constant 0 : i32
    return %arg0, %c0_i32, %arg1 : i32, i32, i32
  }
  func.func @transform_1(%arg0: i32, %arg1: i32) -> (i32, i32) {
    %c0_i32 = arith.constant 0 : i32
    %c0_i32_0 = arith.constant 0 : i32
    %c0_i32_1 = arith.constant 0 : i32
    return %c0_i32, %c0_i32_0 : i32, i32
  }
  func.func @transform_2(%arg0: i32, %arg1: i32) -> (i32, i32) {
    %c0_i32 = arith.constant 0 : i32
    %c0_i32_0 = arith.constant 0 : i32
    %c0_i32_1 = arith.constant 0 : i32
    return %c0_i32, %c0_i32_0 : i32, i32
  }
  func.func @transform_3(%arg0: i32, %arg1: i32) -> (i32, i32, i32) {
    %c0_i32 = arith.constant 0 : i32
    %c0_i32_0 = arith.constant 0 : i32
    return %arg0, %c0_i32, %arg1 : i32, i32, i32
  }
}

module attributes {stable_mosaic.version = 11 : i64} {
  func.func @_conv_matmul_kernel(%arg0: i32, %arg1: i32, %arg2: memref<1x72x1024xbf16, #tpu.memory_space<vmem>>, %arg3: memref<8x72xbf16, #tpu.memory_space<vmem>>, %arg4: memref<8x1xf32, #tpu.memory_space<vmem>>, %arg5: memref<1x8x1024xf32, #tpu.memory_space<vmem>>) attributes {dimension_semantics = [#tpu.dimension_semantics<parallel>, #tpu.dimension_semantics<parallel>], iteration_bounds = array<i64: 6, 1>, scalar_prefetch = 0 : i64, scratch_operands = 0 : i64, tpu.core_type = #tpu.core_type<tc>, window_params = [{transform_indices = @transform_0, window_bounds = array<i64: 1, 72, 1024>}, {pipeline_mode = #tpu.pipeline_mode<synchronous>, transform_indices = @transform_1, window_bounds = array<i64: 8, 72>}, {pipeline_mode = #tpu.pipeline_mode<synchronous>, transform_indices = @transform_2, window_bounds = array<i64: 8, 1>}, {transform_indices = @transform_3, window_bounds = array<i64: 1, 8, 1024>}]} {
    %c0 = arith.constant 0 : index
    %c0_0 = arith.constant 0 : index
    %0 = vector.load %arg3[%c0, %c0_0] : memref<8x72xbf16, #tpu.memory_space<vmem>>, vector<8x72xbf16>
    %c0_1 = arith.constant 0 : index
    %c0_2 = arith.constant 0 : index
    %c0_3 = arith.constant 0 : index
    %1 = vector.load %arg2[%c0_1, %c0_2, %c0_3] : memref<1x72x1024xbf16, #tpu.memory_space<vmem>>, vector<1x72x1024xbf16>
    %2 = vector.shape_cast %1 : vector<1x72x1024xbf16> to vector<72x1024xbf16>
    %cst = arith.constant dense<0.000000e+00> : vector<8x1024xf32>
    %3 = tpu.matmul %0, %2, %cst {dimension_numbers = #tpu.dot_dimension_numbers<[1], [0], [0], [1], [0, 0, 1, 1], [], []>} : vector<8x72xbf16>, vector<72x1024xbf16>, vector<8x1024xf32> -> vector<8x1024xf32>
    %c0_4 = arith.constant 0 : index
    %c0_5 = arith.constant 0 : index
    %4 = vector.load %arg4[%c0_4, %c0_5] : memref<8x1xf32, #tpu.memory_space<vmem>>, vector<8x1xf32>
    %5 = vector.broadcast %4 : vector<8x1xf32> to vector<8x1024xf32>
    %6 = arith.addf %3, %5 : vector<8x1024xf32>
    %cst_6 = arith.constant 0.000000e+00 : f32
    %7 = vector.broadcast %cst_6 : f32 to vector<8x1024xf32>
    %8 = arith.maximumf %6, %7 : vector<8x1024xf32>
    %c0_7 = arith.constant 0 : index
    %c0_8 = arith.constant 0 : index
    %c0_9 = arith.constant 0 : index
    %9 = vector.load %arg5[%c0_7, %c0_8, %c0_9] : memref<1x8x1024xf32, #tpu.memory_space<vmem>>, vector<1x8x1024xf32>
    %10 = vector.shape_cast %9 : vector<1x8x1024xf32> to vector<8x1024xf32>
    %11 = vector.shape_cast %8 : vector<8x1024xf32> to vector<1x8x1024xf32>
    tpu.vector_store %arg5[%c0_7, %c0_8, %c0_9], %11 {strides = array<i32>} : memref<1x8x1024xf32, #tpu.memory_space<vmem>>, vector<1x8x1024xf32>,
    return
  }
  func.func @transform_0(%arg0: i32, %arg1: i32) -> (i32, i32, i32) {
    %c0_i32 = arith.constant 0 : i32
    %c0_i32_0 = arith.constant 0 : i32
    return %arg0, %c0_i32, %arg1 : i32, i32, i32
  }
  func.func @transform_1(%arg0: i32, %arg1: i32) -> (i32, i32) {
    %c0_i32 = arith.constant 0 : i32
    %c0_i32_0 = arith.constant 0 : i32
    %c0_i32_1 = arith.constant 0 : i32
    return %c0_i32, %c0_i32_0 : i32, i32
  }
  func.func @transform_2(%arg0: i32, %arg1: i32) -> (i32, i32) {
    %c0_i32 = arith.constant 0 : i32
    %c0_i32_0 = arith.constant 0 : i32
    %c0_i32_1 = arith.constant 0 : i32
    return %c0_i32, %c0_i32_0 : i32, i32
  }
  func.func @transform_3(%arg0: i32, %arg1: i32) -> (i32, i32, i32) {
    %c0_i32 = arith.constant 0 : i32
    %c0_i32_0 = arith.constant 0 : i32
    return %arg0, %c0_i32, %arg1 : i32, i32, i32
  }
}

module attributes {stable_mosaic.version = 11 : i64} {
  func.func @_conv_matmul_kernel(%arg0: i32, %arg1: i32, %arg2: memref<1x200x256xbf16, #tpu.memory_space<vmem>>, %arg3: memref<16x200xbf16, #tpu.memory_space<vmem>>, %arg4: memref<16x1xf32, #tpu.memory_space<vmem>>, %arg5: memref<1x16x256xf32, #tpu.memory_space<vmem>>) attributes {dimension_semantics = [#tpu.dimension_semantics<parallel>, #tpu.dimension_semantics<parallel>], iteration_bounds = array<i64: 6, 1>, scalar_prefetch = 0 : i64, scratch_operands = 0 : i64, tpu.core_type = #tpu.core_type<tc>, window_params = [{transform_indices = @transform_0, window_bounds = array<i64: 1, 200, 256>}, {pipeline_mode = #tpu.pipeline_mode<synchronous>, transform_indices = @transform_1, window_bounds = array<i64: 16, 200>}, {pipeline_mode = #tpu.pipeline_mode<synchronous>, transform_indices = @transform_2, window_bounds = array<i64: 16, 1>}, {transform_indices = @transform_3, window_bounds = array<i64: 1, 16, 256>}]} {
    %c0 = arith.constant 0 : index
    %c0_0 = arith.constant 0 : index
    %0 = vector.load %arg3[%c0, %c0_0] : memref<16x200xbf16, #tpu.memory_space<vmem>>, vector<16x200xbf16>
    %c0_1 = arith.constant 0 : index
    %c0_2 = arith.constant 0 : index
    %c0_3 = arith.constant 0 : index
    %1 = vector.load %arg2[%c0_1, %c0_2, %c0_3] : memref<1x200x256xbf16, #tpu.memory_space<vmem>>, vector<1x200x256xbf16>
    %2 = vector.shape_cast %1 : vector<1x200x256xbf16> to vector<200x256xbf16>
    %cst = arith.constant dense<0.000000e+00> : vector<16x256xf32>
    %3 = tpu.matmul %0, %2, %cst {dimension_numbers = #tpu.dot_dimension_numbers<[1], [0], [0], [1], [0, 0, 1, 1], [], []>} : vector<16x200xbf16>, vector<200x256xbf16>, vector<16x256xf32> -> vector<16x256xf32>
    %c0_4 = arith.constant 0 : index
    %c0_5 = arith.constant 0 : index
    %4 = vector.load %arg4[%c0_4, %c0_5] : memref<16x1xf32, #tpu.memory_space<vmem>>, vector<16x1xf32>
    %5 = vector.broadcast %4 : vector<16x1xf32> to vector<16x256xf32>
    %6 = arith.addf %3, %5 : vector<16x256xf32>
    %cst_6 = arith.constant 0.000000e+00 : f32
    %7 = vector.broadcast %cst_6 : f32 to vector<16x256xf32>
    %8 = arith.maximumf %6, %7 : vector<16x256xf32>
    %c0_7 = arith.constant 0 : index
    %c0_8 = arith.constant 0 : index
    %c0_9 = arith.constant 0 : index
    %9 = vector.load %arg5[%c0_7, %c0_8, %c0_9] : memref<1x16x256xf32, #tpu.memory_space<vmem>>, vector<1x16x256xf32>
    %10 = vector.shape_cast %9 : vector<1x16x256xf32> to vector<16x256xf32>
    %11 = vector.shape_cast %8 : vector<16x256xf32> to vector<1x16x256xf32>
    tpu.vector_store %arg5[%c0_7, %c0_8, %c0_9], %11 {strides = array<i32>} : memref<1x16x256xf32, #tpu.memory_space<vmem>>, vector<1x16x256xf32>,
    return
  }
  func.func @transform_0(%arg0: i32, %arg1: i32) -> (i32, i32, i32) {
    %c0_i32 = arith.constant 0 : i32
    %c0_i32_0 = arith.constant 0 : i32
    return %arg0, %c0_i32, %arg1 : i32, i32, i32
  }
  func.func @transform_1(%arg0: i32, %arg1: i32) -> (i32, i32) {
    %c0_i32 = arith.constant 0 : i32
    %c0_i32_0 = arith.constant 0 : i32
    %c0_i32_1 = arith.constant 0 : i32
    return %c0_i32, %c0_i32_0 : i32, i32
  }
  func.func @transform_2(%arg0: i32, %arg1: i32) -> (i32, i32) {
    %c0_i32 = arith.constant 0 : i32
    %c0_i32_0 = arith.constant 0 : i32
    %c0_i32_1 = arith.constant 0 : i32
    return %c0_i32, %c0_i32_0 : i32, i32
  }
  func.func @transform_3(%arg0: i32, %arg1: i32) -> (i32, i32, i32) {
    %c0_i32 = arith.constant 0 : i32
    %c0_i32_0 = arith.constant 0 : i32
    return %arg0, %c0_i32, %arg1 : i32, i32, i32
  }
}

module attributes {stable_mosaic.version = 11 : i64} {
  func.func @_conv_matmul_kernel(%arg0: i32, %arg1: i32, %arg2: memref<1x144x256xbf16, #tpu.memory_space<vmem>>, %arg3: memref<16x144xbf16, #tpu.memory_space<vmem>>, %arg4: memref<16x1xf32, #tpu.memory_space<vmem>>, %arg5: memref<1x16x256xf32, #tpu.memory_space<vmem>>) attributes {dimension_semantics = [#tpu.dimension_semantics<parallel>, #tpu.dimension_semantics<parallel>], iteration_bounds = array<i64: 6, 1>, scalar_prefetch = 0 : i64, scratch_operands = 0 : i64, tpu.core_type = #tpu.core_type<tc>, window_params = [{transform_indices = @transform_0, window_bounds = array<i64: 1, 144, 256>}, {pipeline_mode = #tpu.pipeline_mode<synchronous>, transform_indices = @transform_1, window_bounds = array<i64: 16, 144>}, {pipeline_mode = #tpu.pipeline_mode<synchronous>, transform_indices = @transform_2, window_bounds = array<i64: 16, 1>}, {transform_indices = @transform_3, window_bounds = array<i64: 1, 16, 256>}]} {
    %c0 = arith.constant 0 : index
    %c0_0 = arith.constant 0 : index
    %0 = vector.load %arg3[%c0, %c0_0] : memref<16x144xbf16, #tpu.memory_space<vmem>>, vector<16x144xbf16>
    %c0_1 = arith.constant 0 : index
    %c0_2 = arith.constant 0 : index
    %c0_3 = arith.constant 0 : index
    %1 = vector.load %arg2[%c0_1, %c0_2, %c0_3] : memref<1x144x256xbf16, #tpu.memory_space<vmem>>, vector<1x144x256xbf16>
    %2 = vector.shape_cast %1 : vector<1x144x256xbf16> to vector<144x256xbf16>
    %cst = arith.constant dense<0.000000e+00> : vector<16x256xf32>
    %3 = tpu.matmul %0, %2, %cst {dimension_numbers = #tpu.dot_dimension_numbers<[1], [0], [0], [1], [0, 0, 1, 1], [], []>} : vector<16x144xbf16>, vector<144x256xbf16>, vector<16x256xf32> -> vector<16x256xf32>
    %c0_4 = arith.constant 0 : index
    %c0_5 = arith.constant 0 : index
    %4 = vector.load %arg4[%c0_4, %c0_5] : memref<16x1xf32, #tpu.memory_space<vmem>>, vector<16x1xf32>
    %5 = vector.broadcast %4 : vector<16x1xf32> to vector<16x256xf32>
    %6 = arith.addf %3, %5 : vector<16x256xf32>
    %cst_6 = arith.constant 0.000000e+00 : f32
    %7 = vector.broadcast %cst_6 : f32 to vector<16x256xf32>
    %8 = arith.maximumf %6, %7 : vector<16x256xf32>
    %c0_7 = arith.constant 0 : index
    %c0_8 = arith.constant 0 : index
    %c0_9 = arith.constant 0 : index
    %9 = vector.load %arg5[%c0_7, %c0_8, %c0_9] : memref<1x16x256xf32, #tpu.memory_space<vmem>>, vector<1x16x256xf32>
    %10 = vector.shape_cast %9 : vector<1x16x256xf32> to vector<16x256xf32>
    %11 = vector.shape_cast %8 : vector<16x256xf32> to vector<1x16x256xf32>
    tpu.vector_store %arg5[%c0_7, %c0_8, %c0_9], %11 {strides = array<i32>} : memref<1x16x256xf32, #tpu.memory_space<vmem>>, vector<1x16x256xf32>,
    return
  }
  func.func @transform_0(%arg0: i32, %arg1: i32) -> (i32, i32, i32) {
    %c0_i32 = arith.constant 0 : i32
    %c0_i32_0 = arith.constant 0 : i32
    return %arg0, %c0_i32, %arg1 : i32, i32, i32
  }
  func.func @transform_1(%arg0: i32, %arg1: i32) -> (i32, i32) {
    %c0_i32 = arith.constant 0 : i32
    %c0_i32_0 = arith.constant 0 : i32
    %c0_i32_1 = arith.constant 0 : i32
    return %c0_i32, %c0_i32_0 : i32, i32
  }
  func.func @transform_2(%arg0: i32, %arg1: i32) -> (i32, i32) {
    %c0_i32 = arith.constant 0 : i32
    %c0_i32_0 = arith.constant 0 : i32
    %c0_i32_1 = arith.constant 0 : i32
    return %c0_i32, %c0_i32_0 : i32, i32
  }
  func.func @transform_3(%arg0: i32, %arg1: i32) -> (i32, i32, i32) {
    %c0_i32 = arith.constant 0 : i32
    %c0_i32_0 = arith.constant 0 : i32
    return %arg0, %c0_i32, %arg1 : i32, i32, i32
  }
}

module attributes {stable_mosaic.version = 11 : i64} {
  func.func @_conv_matmul_kernel(%arg0: i32, %arg1: i32, %arg2: memref<1x400x128xbf16, #tpu.memory_space<vmem>>, %arg3: memref<32x400xbf16, #tpu.memory_space<vmem>>, %arg4: memref<32x1xf32, #tpu.memory_space<vmem>>, %arg5: memref<1x32x128xf32, #tpu.memory_space<vmem>>) attributes {dimension_semantics = [#tpu.dimension_semantics<parallel>, #tpu.dimension_semantics<parallel>], iteration_bounds = array<i64: 6, 1>, scalar_prefetch = 0 : i64, scratch_operands = 0 : i64, tpu.core_type = #tpu.core_type<tc>, window_params = [{transform_indices = @transform_0, window_bounds = array<i64: 1, 400, 128>}, {pipeline_mode = #tpu.pipeline_mode<synchronous>, transform_indices = @transform_1, window_bounds = array<i64: 32, 400>}, {pipeline_mode = #tpu.pipeline_mode<synchronous>, transform_indices = @transform_2, window_bounds = array<i64: 32, 1>}, {transform_indices = @transform_3, window_bounds = array<i64: 1, 32, 128>}]} {
    %c0 = arith.constant 0 : index
    %c0_0 = arith.constant 0 : index
    %0 = vector.load %arg3[%c0, %c0_0] : memref<32x400xbf16, #tpu.memory_space<vmem>>, vector<32x400xbf16>
    %c0_1 = arith.constant 0 : index
    %c0_2 = arith.constant 0 : index
    %c0_3 = arith.constant 0 : index
    %1 = vector.load %arg2[%c0_1, %c0_2, %c0_3] : memref<1x400x128xbf16, #tpu.memory_space<vmem>>, vector<1x400x128xbf16>
    %2 = vector.shape_cast %1 : vector<1x400x128xbf16> to vector<400x128xbf16>
    %cst = arith.constant dense<0.000000e+00> : vector<32x128xf32>
    %3 = tpu.matmul %0, %2, %cst {dimension_numbers = #tpu.dot_dimension_numbers<[1], [0], [0], [1], [0, 0, 1, 1], [], []>} : vector<32x400xbf16>, vector<400x128xbf16>, vector<32x128xf32> -> vector<32x128xf32>
    %c0_4 = arith.constant 0 : index
    %c0_5 = arith.constant 0 : index
    %4 = vector.load %arg4[%c0_4, %c0_5] : memref<32x1xf32, #tpu.memory_space<vmem>>, vector<32x1xf32>
    %5 = vector.broadcast %4 : vector<32x1xf32> to vector<32x128xf32>
    %6 = arith.addf %3, %5 : vector<32x128xf32>
    %cst_6 = arith.constant 0.000000e+00 : f32
    %7 = vector.broadcast %cst_6 : f32 to vector<32x128xf32>
    %8 = arith.maximumf %6, %7 : vector<32x128xf32>
    %c0_7 = arith.constant 0 : index
    %c0_8 = arith.constant 0 : index
    %c0_9 = arith.constant 0 : index
    %9 = vector.load %arg5[%c0_7, %c0_8, %c0_9] : memref<1x32x128xf32, #tpu.memory_space<vmem>>, vector<1x32x128xf32>
    %10 = vector.shape_cast %9 : vector<1x32x128xf32> to vector<32x128xf32>
    %11 = vector.shape_cast %8 : vector<32x128xf32> to vector<1x32x128xf32>
    tpu.vector_store %arg5[%c0_7, %c0_8, %c0_9], %11 {strides = array<i32>} : memref<1x32x128xf32, #tpu.memory_space<vmem>>, vector<1x32x128xf32>,
    return
  }
  func.func @transform_0(%arg0: i32, %arg1: i32) -> (i32, i32, i32) {
    %c0_i32 = arith.constant 0 : i32
    %c0_i32_0 = arith.constant 0 : i32
    return %arg0, %c0_i32, %arg1 : i32, i32, i32
  }
  func.func @transform_1(%arg0: i32, %arg1: i32) -> (i32, i32) {
    %c0_i32 = arith.constant 0 : i32
    %c0_i32_0 = arith.constant 0 : i32
    %c0_i32_1 = arith.constant 0 : i32
    return %c0_i32, %c0_i32_0 : i32, i32
  }
  func.func @transform_2(%arg0: i32, %arg1: i32) -> (i32, i32) {
    %c0_i32 = arith.constant 0 : i32
    %c0_i32_0 = arith.constant 0 : i32
    %c0_i32_1 = arith.constant 0 : i32
    return %c0_i32, %c0_i32_0 : i32, i32
  }
  func.func @transform_3(%arg0: i32, %arg1: i32) -> (i32, i32, i32) {
    %c0_i32 = arith.constant 0 : i32
    %c0_i32_0 = arith.constant 0 : i32
    return %arg0, %c0_i32, %arg1 : i32, i32, i32
  }
}

module attributes {stable_mosaic.version = 11 : i64} {
  func.func @_conv_matmul_kernel(%arg0: i32, %arg1: i32, %arg2: memref<1x288x128xbf16, #tpu.memory_space<vmem>>, %arg3: memref<32x288xbf16, #tpu.memory_space<vmem>>, %arg4: memref<32x1xf32, #tpu.memory_space<vmem>>, %arg5: memref<1x32x128xf32, #tpu.memory_space<vmem>>) attributes {dimension_semantics = [#tpu.dimension_semantics<parallel>, #tpu.dimension_semantics<parallel>], iteration_bounds = array<i64: 6, 1>, scalar_prefetch = 0 : i64, scratch_operands = 0 : i64, tpu.core_type = #tpu.core_type<tc>, window_params = [{transform_indices = @transform_0, window_bounds = array<i64: 1, 288, 128>}, {pipeline_mode = #tpu.pipeline_mode<synchronous>, transform_indices = @transform_1, window_bounds = array<i64: 32, 288>}, {pipeline_mode = #tpu.pipeline_mode<synchronous>, transform_indices = @transform_2, window_bounds = array<i64: 32, 1>}, {transform_indices = @transform_3, window_bounds = array<i64: 1, 32, 128>}]} {
    %c0 = arith.constant 0 : index
    %c0_0 = arith.constant 0 : index
    %0 = vector.load %arg3[%c0, %c0_0] : memref<32x288xbf16, #tpu.memory_space<vmem>>, vector<32x288xbf16>
    %c0_1 = arith.constant 0 : index
    %c0_2 = arith.constant 0 : index
    %c0_3 = arith.constant 0 : index
    %1 = vector.load %arg2[%c0_1, %c0_2, %c0_3] : memref<1x288x128xbf16, #tpu.memory_space<vmem>>, vector<1x288x128xbf16>
    %2 = vector.shape_cast %1 : vector<1x288x128xbf16> to vector<288x128xbf16>
    %cst = arith.constant dense<0.000000e+00> : vector<32x128xf32>
    %3 = tpu.matmul %0, %2, %cst {dimension_numbers = #tpu.dot_dimension_numbers<[1], [0], [0], [1], [0, 0, 1, 1], [], []>} : vector<32x288xbf16>, vector<288x128xbf16>, vector<32x128xf32> -> vector<32x128xf32>
    %c0_4 = arith.constant 0 : index
    %c0_5 = arith.constant 0 : index
    %4 = vector.load %arg4[%c0_4, %c0_5] : memref<32x1xf32, #tpu.memory_space<vmem>>, vector<32x1xf32>
    %5 = vector.broadcast %4 : vector<32x1xf32> to vector<32x128xf32>
    %6 = arith.addf %3, %5 : vector<32x128xf32>
    %cst_6 = arith.constant 0.000000e+00 : f32
    %7 = vector.broadcast %cst_6 : f32 to vector<32x128xf32>
    %8 = arith.maximumf %6, %7 : vector<32x128xf32>
    %c0_7 = arith.constant 0 : index
    %c0_8 = arith.constant 0 : index
    %c0_9 = arith.constant 0 : index
    %9 = vector.load %arg5[%c0_7, %c0_8, %c0_9] : memref<1x32x128xf32, #tpu.memory_space<vmem>>, vector<1x32x128xf32>
    %10 = vector.shape_cast %9 : vector<1x32x128xf32> to vector<32x128xf32>
    %11 = vector.shape_cast %8 : vector<32x128xf32> to vector<1x32x128xf32>
    tpu.vector_store %arg5[%c0_7, %c0_8, %c0_9], %11 {strides = array<i32>} : memref<1x32x128xf32, #tpu.memory_space<vmem>>, vector<1x32x128xf32>,
    return
  }
  func.func @transform_0(%arg0: i32, %arg1: i32) -> (i32, i32, i32) {
    %c0_i32 = arith.constant 0 : i32
    %c0_i32_0 = arith.constant 0 : i32
    return %arg0, %c0_i32, %arg1 : i32, i32, i32
  }
  func.func @transform_1(%arg0: i32, %arg1: i32) -> (i32, i32) {
    %c0_i32 = arith.constant 0 : i32
    %c0_i32_0 = arith.constant 0 : i32
    %c0_i32_1 = arith.constant 0 : i32
    return %c0_i32, %c0_i32_0 : i32, i32
  }
  func.func @transform_2(%arg0: i32, %arg1: i32) -> (i32, i32) {
    %c0_i32 = arith.constant 0 : i32
    %c0_i32_0 = arith.constant 0 : i32
    %c0_i32_1 = arith.constant 0 : i32
    return %c0_i32, %c0_i32_0 : i32, i32
  }
  func.func @transform_3(%arg0: i32, %arg1: i32) -> (i32, i32, i32) {
    %c0_i32 = arith.constant 0 : i32
    %c0_i32_0 = arith.constant 0 : i32
    return %arg0, %c0_i32, %arg1 : i32, i32, i32
  }
}

module attributes {stable_mosaic.version = 11 : i64} {
  func.func @_conv_matmul_kernel(%arg0: i32, %arg1: i32, %arg2: memref<1x288x128xbf16, #tpu.memory_space<vmem>>, %arg3: memref<32x288xbf16, #tpu.memory_space<vmem>>, %arg4: memref<32x1xf32, #tpu.memory_space<vmem>>, %arg5: memref<1x32x128xf32, #tpu.memory_space<vmem>>) attributes {dimension_semantics = [#tpu.dimension_semantics<parallel>, #tpu.dimension_semantics<parallel>], iteration_bounds = array<i64: 6, 1>, scalar_prefetch = 0 : i64, scratch_operands = 0 : i64, tpu.core_type = #tpu.core_type<tc>, window_params = [{transform_indices = @transform_0, window_bounds = array<i64: 1, 288, 128>}, {pipeline_mode = #tpu.pipeline_mode<synchronous>, transform_indices = @transform_1, window_bounds = array<i64: 32, 288>}, {pipeline_mode = #tpu.pipeline_mode<synchronous>, transform_indices = @transform_2, window_bounds = array<i64: 32, 1>}, {transform_indices = @transform_3, window_bounds = array<i64: 1, 32, 128>}]} {
    %c0 = arith.constant 0 : index
    %c0_0 = arith.constant 0 : index
    %0 = vector.load %arg3[%c0, %c0_0] : memref<32x288xbf16, #tpu.memory_space<vmem>>, vector<32x288xbf16>
    %c0_1 = arith.constant 0 : index
    %c0_2 = arith.constant 0 : index
    %c0_3 = arith.constant 0 : index
    %1 = vector.load %arg2[%c0_1, %c0_2, %c0_3] : memref<1x288x128xbf16, #tpu.memory_space<vmem>>, vector<1x288x128xbf16>
    %2 = vector.shape_cast %1 : vector<1x288x128xbf16> to vector<288x128xbf16>
    %cst = arith.constant dense<0.000000e+00> : vector<32x128xf32>
    %3 = tpu.matmul %0, %2, %cst {dimension_numbers = #tpu.dot_dimension_numbers<[1], [0], [0], [1], [0, 0, 1, 1], [], []>} : vector<32x288xbf16>, vector<288x128xbf16>, vector<32x128xf32> -> vector<32x128xf32>
    %c0_4 = arith.constant 0 : index
    %c0_5 = arith.constant 0 : index
    %4 = vector.load %arg4[%c0_4, %c0_5] : memref<32x1xf32, #tpu.memory_space<vmem>>, vector<32x1xf32>
    %5 = vector.broadcast %4 : vector<32x1xf32> to vector<32x128xf32>
    %6 = arith.addf %3, %5 : vector<32x128xf32>
    %c0_6 = arith.constant 0 : index
    %c0_7 = arith.constant 0 : index
    %c0_8 = arith.constant 0 : index
    %7 = vector.load %arg5[%c0_6, %c0_7, %c0_8] : memref<1x32x128xf32, #tpu.memory_space<vmem>>, vector<1x32x128xf32>
    %8 = vector.shape_cast %7 : vector<1x32x128xf32> to vector<32x128xf32>
    %9 = vector.shape_cast %6 : vector<32x128xf32> to vector<1x32x128xf32>
    tpu.vector_store %arg5[%c0_6, %c0_7, %c0_8], %9 {strides = array<i32>} : memref<1x32x128xf32, #tpu.memory_space<vmem>>, vector<1x32x128xf32>,
    return
  }
  func.func @transform_0(%arg0: i32, %arg1: i32) -> (i32, i32, i32) {
    %c0_i32 = arith.constant 0 : i32
    %c0_i32_0 = arith.constant 0 : i32
    return %arg0, %c0_i32, %arg1 : i32, i32, i32
  }
  func.func @transform_1(%arg0: i32, %arg1: i32) -> (i32, i32) {
    %c0_i32 = arith.constant 0 : i32
    %c0_i32_0 = arith.constant 0 : i32
    %c0_i32_1 = arith.constant 0 : i32
    return %c0_i32, %c0_i32_0 : i32, i32
  }
  func.func @transform_2(%arg0: i32, %arg1: i32) -> (i32, i32) {
    %c0_i32 = arith.constant 0 : i32
    %c0_i32_0 = arith.constant 0 : i32
    %c0_i32_1 = arith.constant 0 : i32
    return %c0_i32, %c0_i32_0 : i32, i32
  }
  func.func @transform_3(%arg0: i32, %arg1: i32) -> (i32, i32, i32) {
    %c0_i32 = arith.constant 0 : i32
    %c0_i32_0 = arith.constant 0 : i32
    return %arg0, %c0_i32, %arg1 : i32, i32, i32
  }
}

module attributes {stable_mosaic.version = 11 : i64} {
  func.func @_gwc_accum_kernel(%arg0: i32, %arg1: i32, %arg2: memref<1x32x64xf32, #tpu.memory_space<vmem>>, %arg3: memref<1x1x32x64xbf16, #tpu.memory_space<vmem>>, %arg4: memref<8x32xf32, #tpu.memory_space<vmem>>, %arg5: memref<1x1x8x64xf32, #tpu.memory_space<vmem>>, %arg6: memref<1x1x8x64xf32, #tpu.memory_space<vmem>>) attributes {dimension_semantics = [#tpu.dimension_semantics<parallel>, #tpu.dimension_semantics<parallel>], iteration_bounds = array<i64: 2, 8>, scalar_prefetch = 0 : i64, scratch_operands = 0 : i64, tpu.core_type = #tpu.core_type<tc>, window_params = [{transform_indices = @transform_0, window_bounds = array<i64: 1, 32, 64>}, {transform_indices = @transform_1, window_bounds = array<i64: 1, 1, 32, 64>}, {pipeline_mode = #tpu.pipeline_mode<synchronous>, transform_indices = @transform_2, window_bounds = array<i64: 8, 32>}, {transform_indices = @transform_3, window_bounds = array<i64: 1, 1, 8, 64>}, {transform_indices = @transform_4, window_bounds = array<i64: 1, 1, 8, 64>}]} {
    %c0 = arith.constant 0 : index
    %c0_0 = arith.constant 0 : index
    %c0_1 = arith.constant 0 : index
    %0 = vector.load %arg2[%c0, %c0_0, %c0_1] : memref<1x32x64xf32, #tpu.memory_space<vmem>>, vector<1x32x64xf32>
    %1 = vector.shape_cast %0 : vector<1x32x64xf32> to vector<32x64xf32>
    %c0_2 = arith.constant 0 : index
    %c0_3 = arith.constant 0 : index
    %c0_4 = arith.constant 0 : index
    %c0_5 = arith.constant 0 : index
    %2 = vector.load %arg3[%c0_2, %c0_3, %c0_4, %c0_5] : memref<1x1x32x64xbf16, #tpu.memory_space<vmem>>, vector<1x1x32x64xbf16>
    %3 = vector.shape_cast %2 : vector<1x1x32x64xbf16> to vector<32x64xbf16>
    %4 = arith.extf %3 : vector<32x64xbf16> to vector<32x64xf32>
    %c0_6 = arith.constant 0 : index
    %c0_7 = arith.constant 0 : index
    %5 = vector.load %arg4[%c0_6, %c0_7] : memref<8x32xf32, #tpu.memory_space<vmem>>, vector<8x32xf32>
    %6 = arith.mulf %1, %4 : vector<32x64xf32>
    %cst = arith.constant dense<0.000000e+00> : vector<8x64xf32>
    %7 = tpu.matmul %5, %6, %cst {dimension_numbers = #tpu.dot_dimension_numbers<[1], [0], [0], [1], [0, 0, 1, 1], [], []>} : vector<8x32xf32>, vector<32x64xf32>, vector<8x64xf32> -> vector<8x64xf32>
    %c0_8 = arith.constant 0 : index
    %c0_9 = arith.constant 0 : index
    %c0_10 = arith.constant 0 : index
    %c0_11 = arith.constant 0 : index
    %8 = vector.load %arg5[%c0_8, %c0_9, %c0_10, %c0_11] : memref<1x1x8x64xf32, #tpu.memory_space<vmem>>, vector<1x1x8x64xf32>
    %9 = vector.shape_cast %8 : vector<1x1x8x64xf32> to vector<8x64xf32>
    %10 = arith.addf %9, %7 : vector<8x64xf32>
    %c0_12 = arith.constant 0 : index
    %c0_13 = arith.constant 0 : index
    %c0_14 = arith.constant 0 : index
    %c0_15 = arith.constant 0 : index
    %11 = vector.load %arg6[%c0_12, %c0_13, %c0_14, %c0_15] : memref<1x1x8x64xf32, #tpu.memory_space<vmem>>, vector<1x1x8x64xf32>
    %12 = vector.shape_cast %11 : vector<1x1x8x64xf32> to vector<8x64xf32>
    %13 = vector.shape_cast %10 : vector<8x64xf32> to vector<1x1x8x64xf32>
    tpu.vector_store %arg6[%c0_12, %c0_13, %c0_14, %c0_15], %13 {strides = array<i32>} : memref<1x1x8x64xf32, #tpu.memory_space<vmem>>, vector<1x1x8x64xf32>,
    return
  }
  func.func @transform_0(%arg0: i32, %arg1: i32) -> (i32, i32, i32) {
    %c0_i32 = arith.constant 0 : i32
    %c0_i32_0 = arith.constant 0 : i32
    %c0_i32_1 = arith.constant 0 : i32
    return %arg0, %c0_i32, %c0_i32_0 : i32, i32, i32
  }
  func.func @transform_1(%arg0: i32, %arg1: i32) -> (i32, i32, i32, i32) {
    %c0_i32 = arith.constant 0 : i32
    %c0_i32_0 = arith.constant 0 : i32
    %c0_i32_1 = arith.constant 0 : i32
    return %arg0, %arg1, %c0_i32, %c0_i32_0 : i32, i32, i32, i32
  }
  func.func @transform_2(%arg0: i32, %arg1: i32) -> (i32, i32) {
    %c0_i32 = arith.constant 0 : i32
    %c0_i32_0 = arith.constant 0 : i32
    %c0_i32_1 = arith.constant 0 : i32
    return %c0_i32, %c0_i32_0 : i32, i32
  }
  func.func @transform_3(%arg0: i32, %arg1: i32) -> (i32, i32, i32, i32) {
    %c0_i32 = arith.constant 0 : i32
    %c0_i32_0 = arith.constant 0 : i32
    %c0_i32_1 = arith.constant 0 : i32
    return %arg0, %arg1, %c0_i32, %c0_i32_0 : i32, i32, i32, i32
  }
  func.func @transform_4(%arg0: i32, %arg1: i32) -> (i32, i32, i32, i32) {
    %c0_i32 = arith.constant 0 : i32
    %c0_i32_0 = arith.constant 0 : i32
    %c0_i32_1 = arith.constant 0 : i32
    return %arg0, %arg1, %c0_i32, %c0_i32_0 : i32, i32, i32, i32
  }
}

module attributes {stable_mosaic.version = 11 : i64} {
  func.func @_conv_matmul_kernel(%arg0: i32, %arg1: i32, %arg2: memref<1x72x128xbf16, #tpu.memory_space<vmem>>, %arg3: memref<8x72xbf16, #tpu.memory_space<vmem>>, %arg4: memref<8x1xf32, #tpu.memory_space<vmem>>, %arg5: memref<1x8x128xf32, #tpu.memory_space<vmem>>) attributes {dimension_semantics = [#tpu.dimension_semantics<parallel>, #tpu.dimension_semantics<parallel>], iteration_bounds = array<i64: 16, 1>, scalar_prefetch = 0 : i64, scratch_operands = 0 : i64, tpu.core_type = #tpu.core_type<tc>, window_params = [{transform_indices = @transform_0, window_bounds = array<i64: 1, 72, 128>}, {pipeline_mode = #tpu.pipeline_mode<synchronous>, transform_indices = @transform_1, window_bounds = array<i64: 8, 72>}, {pipeline_mode = #tpu.pipeline_mode<synchronous>, transform_indices = @transform_2, window_bounds = array<i64: 8, 1>}, {transform_indices = @transform_3, window_bounds = array<i64: 1, 8, 128>}]} {
    %c0 = arith.constant 0 : index
    %c0_0 = arith.constant 0 : index
    %0 = vector.load %arg3[%c0, %c0_0] : memref<8x72xbf16, #tpu.memory_space<vmem>>, vector<8x72xbf16>
    %c0_1 = arith.constant 0 : index
    %c0_2 = arith.constant 0 : index
    %c0_3 = arith.constant 0 : index
    %1 = vector.load %arg2[%c0_1, %c0_2, %c0_3] : memref<1x72x128xbf16, #tpu.memory_space<vmem>>, vector<1x72x128xbf16>
    %2 = vector.shape_cast %1 : vector<1x72x128xbf16> to vector<72x128xbf16>
    %cst = arith.constant dense<0.000000e+00> : vector<8x128xf32>
    %3 = tpu.matmul %0, %2, %cst {dimension_numbers = #tpu.dot_dimension_numbers<[1], [0], [0], [1], [0, 0, 1, 1], [], []>} : vector<8x72xbf16>, vector<72x128xbf16>, vector<8x128xf32> -> vector<8x128xf32>
    %c0_4 = arith.constant 0 : index
    %c0_5 = arith.constant 0 : index
    %4 = vector.load %arg4[%c0_4, %c0_5] : memref<8x1xf32, #tpu.memory_space<vmem>>, vector<8x1xf32>
    %5 = vector.broadcast %4 : vector<8x1xf32> to vector<8x128xf32>
    %6 = arith.addf %3, %5 : vector<8x128xf32>
    %cst_6 = arith.constant 0.000000e+00 : f32
    %7 = vector.broadcast %cst_6 : f32 to vector<8x128xf32>
    %8 = arith.maximumf %6, %7 : vector<8x128xf32>
    %c0_7 = arith.constant 0 : index
    %c0_8 = arith.constant 0 : index
    %c0_9 = arith.constant 0 : index
    %9 = vector.load %arg5[%c0_7, %c0_8, %c0_9] : memref<1x8x128xf32, #tpu.memory_space<vmem>>, vector<1x8x128xf32>
    %10 = vector.shape_cast %9 : vector<1x8x128xf32> to vector<8x128xf32>
    %11 = vector.shape_cast %8 : vector<8x128xf32> to vector<1x8x128xf32>
    tpu.vector_store %arg5[%c0_7, %c0_8, %c0_9], %11 {strides = array<i32>} : memref<1x8x128xf32, #tpu.memory_space<vmem>>, vector<1x8x128xf32>,
    return
  }
  func.func @transform_0(%arg0: i32, %arg1: i32) -> (i32, i32, i32) {
    %c0_i32 = arith.constant 0 : i32
    %c0_i32_0 = arith.constant 0 : i32
    return %arg0, %c0_i32, %arg1 : i32, i32, i32
  }
  func.func @transform_1(%arg0: i32, %arg1: i32) -> (i32, i32) {
    %c0_i32 = arith.constant 0 : i32
    %c0_i32_0 = arith.constant 0 : i32
    %c0_i32_1 = arith.constant 0 : i32
    return %c0_i32, %c0_i32_0 : i32, i32
  }
  func.func @transform_2(%arg0: i32, %arg1: i32) -> (i32, i32) {
    %c0_i32 = arith.constant 0 : i32
    %c0_i32_0 = arith.constant 0 : i32
    %c0_i32_1 = arith.constant 0 : i32
    return %c0_i32, %c0_i32_0 : i32, i32
  }
  func.func @transform_3(%arg0: i32, %arg1: i32) -> (i32, i32, i32) {
    %c0_i32 = arith.constant 0 : i32
    %c0_i32_0 = arith.constant 0 : i32
    return %arg0, %c0_i32, %arg1 : i32, i32, i32
  }
}

module attributes {stable_mosaic.version = 11 : i64} {
  func.func @_conv_matmul_kernel(%arg0: i32, %arg1: i32, %arg2: memref<1x72x128xbf16, #tpu.memory_space<vmem>>, %arg3: memref<16x72xbf16, #tpu.memory_space<vmem>>, %arg4: memref<16x1xf32, #tpu.memory_space<vmem>>, %arg5: memref<1x16x128xf32, #tpu.memory_space<vmem>>) attributes {dimension_semantics = [#tpu.dimension_semantics<parallel>, #tpu.dimension_semantics<parallel>], iteration_bounds = array<i64: 16, 1>, scalar_prefetch = 0 : i64, scratch_operands = 0 : i64, tpu.core_type = #tpu.core_type<tc>, window_params = [{transform_indices = @transform_0, window_bounds = array<i64: 1, 72, 128>}, {pipeline_mode = #tpu.pipeline_mode<synchronous>, transform_indices = @transform_1, window_bounds = array<i64: 16, 72>}, {pipeline_mode = #tpu.pipeline_mode<synchronous>, transform_indices = @transform_2, window_bounds = array<i64: 16, 1>}, {transform_indices = @transform_3, window_bounds = array<i64: 1, 16, 128>}]} {
    %c0 = arith.constant 0 : index
    %c0_0 = arith.constant 0 : index
    %0 = vector.load %arg3[%c0, %c0_0] : memref<16x72xbf16, #tpu.memory_space<vmem>>, vector<16x72xbf16>
    %c0_1 = arith.constant 0 : index
    %c0_2 = arith.constant 0 : index
    %c0_3 = arith.constant 0 : index
    %1 = vector.load %arg2[%c0_1, %c0_2, %c0_3] : memref<1x72x128xbf16, #tpu.memory_space<vmem>>, vector<1x72x128xbf16>
    %2 = vector.shape_cast %1 : vector<1x72x128xbf16> to vector<72x128xbf16>
    %cst = arith.constant dense<0.000000e+00> : vector<16x128xf32>
    %3 = tpu.matmul %0, %2, %cst {dimension_numbers = #tpu.dot_dimension_numbers<[1], [0], [0], [1], [0, 0, 1, 1], [], []>} : vector<16x72xbf16>, vector<72x128xbf16>, vector<16x128xf32> -> vector<16x128xf32>
    %c0_4 = arith.constant 0 : index
    %c0_5 = arith.constant 0 : index
    %4 = vector.load %arg4[%c0_4, %c0_5] : memref<16x1xf32, #tpu.memory_space<vmem>>, vector<16x1xf32>
    %5 = vector.broadcast %4 : vector<16x1xf32> to vector<16x128xf32>
    %6 = arith.addf %3, %5 : vector<16x128xf32>
    %cst_6 = arith.constant 0.000000e+00 : f32
    %7 = vector.broadcast %cst_6 : f32 to vector<16x128xf32>
    %8 = arith.maximumf %6, %7 : vector<16x128xf32>
    %c0_7 = arith.constant 0 : index
    %c0_8 = arith.constant 0 : index
    %c0_9 = arith.constant 0 : index
    %9 = vector.load %arg5[%c0_7, %c0_8, %c0_9] : memref<1x16x128xf32, #tpu.memory_space<vmem>>, vector<1x16x128xf32>
    %10 = vector.shape_cast %9 : vector<1x16x128xf32> to vector<16x128xf32>
    %11 = vector.shape_cast %8 : vector<16x128xf32> to vector<1x16x128xf32>
    tpu.vector_store %arg5[%c0_7, %c0_8, %c0_9], %11 {strides = array<i32>} : memref<1x16x128xf32, #tpu.memory_space<vmem>>, vector<1x16x128xf32>,
    return
  }
  func.func @transform_0(%arg0: i32, %arg1: i32) -> (i32, i32, i32) {
    %c0_i32 = arith.constant 0 : i32
    %c0_i32_0 = arith.constant 0 : i32
    return %arg0, %c0_i32, %arg1 : i32, i32, i32
  }
  func.func @transform_1(%arg0: i32, %arg1: i32) -> (i32, i32) {
    %c0_i32 = arith.constant 0 : i32
    %c0_i32_0 = arith.constant 0 : i32
    %c0_i32_1 = arith.constant 0 : i32
    return %c0_i32, %c0_i32_0 : i32, i32
  }
  func.func @transform_2(%arg0: i32, %arg1: i32) -> (i32, i32) {
    %c0_i32 = arith.constant 0 : i32
    %c0_i32_0 = arith.constant 0 : i32
    %c0_i32_1 = arith.constant 0 : i32
    return %c0_i32, %c0_i32_0 : i32, i32
  }
  func.func @transform_3(%arg0: i32, %arg1: i32) -> (i32, i32, i32) {
    %c0_i32 = arith.constant 0 : i32
    %c0_i32_0 = arith.constant 0 : i32
    return %arg0, %c0_i32, %arg1 : i32, i32, i32
  }
}

module attributes {stable_mosaic.version = 11 : i64} {
  func.func @_conv_matmul_kernel(%arg0: i32, %arg1: i32, %arg2: memref<1x144x128xbf16, #tpu.memory_space<vmem>>, %arg3: memref<32x144xbf16, #tpu.memory_space<vmem>>, %arg4: memref<32x1xf32, #tpu.memory_space<vmem>>, %arg5: memref<1x32x128xf32, #tpu.memory_space<vmem>>) attributes {dimension_semantics = [#tpu.dimension_semantics<parallel>, #tpu.dimension_semantics<parallel>], iteration_bounds = array<i64: 16, 1>, scalar_prefetch = 0 : i64, scratch_operands = 0 : i64, tpu.core_type = #tpu.core_type<tc>, window_params = [{transform_indices = @transform_0, window_bounds = array<i64: 1, 144, 128>}, {pipeline_mode = #tpu.pipeline_mode<synchronous>, transform_indices = @transform_1, window_bounds = array<i64: 32, 144>}, {pipeline_mode = #tpu.pipeline_mode<synchronous>, transform_indices = @transform_2, window_bounds = array<i64: 32, 1>}, {transform_indices = @transform_3, window_bounds = array<i64: 1, 32, 128>}]} {
    %c0 = arith.constant 0 : index
    %c0_0 = arith.constant 0 : index
    %0 = vector.load %arg3[%c0, %c0_0] : memref<32x144xbf16, #tpu.memory_space<vmem>>, vector<32x144xbf16>
    %c0_1 = arith.constant 0 : index
    %c0_2 = arith.constant 0 : index
    %c0_3 = arith.constant 0 : index
    %1 = vector.load %arg2[%c0_1, %c0_2, %c0_3] : memref<1x144x128xbf16, #tpu.memory_space<vmem>>, vector<1x144x128xbf16>
    %2 = vector.shape_cast %1 : vector<1x144x128xbf16> to vector<144x128xbf16>
    %cst = arith.constant dense<0.000000e+00> : vector<32x128xf32>
    %3 = tpu.matmul %0, %2, %cst {dimension_numbers = #tpu.dot_dimension_numbers<[1], [0], [0], [1], [0, 0, 1, 1], [], []>} : vector<32x144xbf16>, vector<144x128xbf16>, vector<32x128xf32> -> vector<32x128xf32>
    %c0_4 = arith.constant 0 : index
    %c0_5 = arith.constant 0 : index
    %4 = vector.load %arg4[%c0_4, %c0_5] : memref<32x1xf32, #tpu.memory_space<vmem>>, vector<32x1xf32>
    %5 = vector.broadcast %4 : vector<32x1xf32> to vector<32x128xf32>
    %6 = arith.addf %3, %5 : vector<32x128xf32>
    %cst_6 = arith.constant 0.000000e+00 : f32
    %7 = vector.broadcast %cst_6 : f32 to vector<32x128xf32>
    %8 = arith.maximumf %6, %7 : vector<32x128xf32>
    %c0_7 = arith.constant 0 : index
    %c0_8 = arith.constant 0 : index
    %c0_9 = arith.constant 0 : index
    %9 = vector.load %arg5[%c0_7, %c0_8, %c0_9] : memref<1x32x128xf32, #tpu.memory_space<vmem>>, vector<1x32x128xf32>
    %10 = vector.shape_cast %9 : vector<1x32x128xf32> to vector<32x128xf32>
    %11 = vector.shape_cast %8 : vector<32x128xf32> to vector<1x32x128xf32>
    tpu.vector_store %arg5[%c0_7, %c0_8, %c0_9], %11 {strides = array<i32>} : memref<1x32x128xf32, #tpu.memory_space<vmem>>, vector<1x32x128xf32>,
    return
  }
  func.func @transform_0(%arg0: i32, %arg1: i32) -> (i32, i32, i32) {
    %c0_i32 = arith.constant 0 : i32
    %c0_i32_0 = arith.constant 0 : i32
    return %arg0, %c0_i32, %arg1 : i32, i32, i32
  }
  func.func @transform_1(%arg0: i32, %arg1: i32) -> (i32, i32) {
    %c0_i32 = arith.constant 0 : i32
    %c0_i32_0 = arith.constant 0 : i32
    %c0_i32_1 = arith.constant 0 : i32
    return %c0_i32, %c0_i32_0 : i32, i32
  }
  func.func @transform_2(%arg0: i32, %arg1: i32) -> (i32, i32) {
    %c0_i32 = arith.constant 0 : i32
    %c0_i32_0 = arith.constant 0 : i32
    %c0_i32_1 = arith.constant 0 : i32
    return %c0_i32, %c0_i32_0 : i32, i32
  }
  func.func @transform_3(%arg0: i32, %arg1: i32) -> (i32, i32, i32) {
    %c0_i32 = arith.constant 0 : i32
    %c0_i32_0 = arith.constant 0 : i32
    return %arg0, %c0_i32, %arg1 : i32, i32, i32
  }
}

module attributes {stable_mosaic.version = 11 : i64} {
  func.func @_conv_matmul_kernel(%arg0: i32, %arg1: i32, %arg2: memref<1x288x128xbf16, #tpu.memory_space<vmem>>, %arg3: memref<16x288xbf16, #tpu.memory_space<vmem>>, %arg4: memref<16x1xf32, #tpu.memory_space<vmem>>, %arg5: memref<1x16x128xf32, #tpu.memory_space<vmem>>) attributes {dimension_semantics = [#tpu.dimension_semantics<parallel>, #tpu.dimension_semantics<parallel>], iteration_bounds = array<i64: 16, 1>, scalar_prefetch = 0 : i64, scratch_operands = 0 : i64, tpu.core_type = #tpu.core_type<tc>, window_params = [{transform_indices = @transform_0, window_bounds = array<i64: 1, 288, 128>}, {pipeline_mode = #tpu.pipeline_mode<synchronous>, transform_indices = @transform_1, window_bounds = array<i64: 16, 288>}, {pipeline_mode = #tpu.pipeline_mode<synchronous>, transform_indices = @transform_2, window_bounds = array<i64: 16, 1>}, {transform_indices = @transform_3, window_bounds = array<i64: 1, 16, 128>}]} {
    %c0 = arith.constant 0 : index
    %c0_0 = arith.constant 0 : index
    %0 = vector.load %arg3[%c0, %c0_0] : memref<16x288xbf16, #tpu.memory_space<vmem>>, vector<16x288xbf16>
    %c0_1 = arith.constant 0 : index
    %c0_2 = arith.constant 0 : index
    %c0_3 = arith.constant 0 : index
    %1 = vector.load %arg2[%c0_1, %c0_2, %c0_3] : memref<1x288x128xbf16, #tpu.memory_space<vmem>>, vector<1x288x128xbf16>
    %2 = vector.shape_cast %1 : vector<1x288x128xbf16> to vector<288x128xbf16>
    %cst = arith.constant dense<0.000000e+00> : vector<16x128xf32>
    %3 = tpu.matmul %0, %2, %cst {dimension_numbers = #tpu.dot_dimension_numbers<[1], [0], [0], [1], [0, 0, 1, 1], [], []>} : vector<16x288xbf16>, vector<288x128xbf16>, vector<16x128xf32> -> vector<16x128xf32>
    %c0_4 = arith.constant 0 : index
    %c0_5 = arith.constant 0 : index
    %4 = vector.load %arg4[%c0_4, %c0_5] : memref<16x1xf32, #tpu.memory_space<vmem>>, vector<16x1xf32>
    %5 = vector.broadcast %4 : vector<16x1xf32> to vector<16x128xf32>
    %6 = arith.addf %3, %5 : vector<16x128xf32>
    %c0_6 = arith.constant 0 : index
    %c0_7 = arith.constant 0 : index
    %c0_8 = arith.constant 0 : index
    %7 = vector.load %arg5[%c0_6, %c0_7, %c0_8] : memref<1x16x128xf32, #tpu.memory_space<vmem>>, vector<1x16x128xf32>
    %8 = vector.shape_cast %7 : vector<1x16x128xf32> to vector<16x128xf32>
    %9 = vector.shape_cast %6 : vector<16x128xf32> to vector<1x16x128xf32>
    tpu.vector_store %arg5[%c0_6, %c0_7, %c0_8], %9 {strides = array<i32>} : memref<1x16x128xf32, #tpu.memory_space<vmem>>, vector<1x16x128xf32>,
    return
  }
  func.func @transform_0(%arg0: i32, %arg1: i32) -> (i32, i32, i32) {
    %c0_i32 = arith.constant 0 : i32
    %c0_i32_0 = arith.constant 0 : i32
    return %arg0, %c0_i32, %arg1 : i32, i32, i32
  }
  func.func @transform_1(%arg0: i32, %arg1: i32) -> (i32, i32) {
    %c0_i32 = arith.constant 0 : i32
    %c0_i32_0 = arith.constant 0 : i32
    %c0_i32_1 = arith.constant 0 : i32
    return %c0_i32, %c0_i32_0 : i32, i32
  }
  func.func @transform_2(%arg0: i32, %arg1: i32) -> (i32, i32) {
    %c0_i32 = arith.constant 0 : i32
    %c0_i32_0 = arith.constant 0 : i32
    %c0_i32_1 = arith.constant 0 : i32
    return %c0_i32, %c0_i32_0 : i32, i32
  }
  func.func @transform_3(%arg0: i32, %arg1: i32) -> (i32, i32, i32) {
    %c0_i32 = arith.constant 0 : i32
    %c0_i32_0 = arith.constant 0 : i32
    return %arg0, %c0_i32, %arg1 : i32, i32, i32
  }
}

module attributes {stable_mosaic.version = 11 : i64} {
  func.func @_conv_matmul_kernel(%arg0: i32, %arg1: i32, %arg2: memref<1x144x128xbf16, #tpu.memory_space<vmem>>, %arg3: memref<8x144xbf16, #tpu.memory_space<vmem>>, %arg4: memref<8x1xf32, #tpu.memory_space<vmem>>, %arg5: memref<1x8x128xf32, #tpu.memory_space<vmem>>) attributes {dimension_semantics = [#tpu.dimension_semantics<parallel>, #tpu.dimension_semantics<parallel>], iteration_bounds = array<i64: 16, 1>, scalar_prefetch = 0 : i64, scratch_operands = 0 : i64, tpu.core_type = #tpu.core_type<tc>, window_params = [{transform_indices = @transform_0, window_bounds = array<i64: 1, 144, 128>}, {pipeline_mode = #tpu.pipeline_mode<synchronous>, transform_indices = @transform_1, window_bounds = array<i64: 8, 144>}, {pipeline_mode = #tpu.pipeline_mode<synchronous>, transform_indices = @transform_2, window_bounds = array<i64: 8, 1>}, {transform_indices = @transform_3, window_bounds = array<i64: 1, 8, 128>}]} {
    %c0 = arith.constant 0 : index
    %c0_0 = arith.constant 0 : index
    %0 = vector.load %arg3[%c0, %c0_0] : memref<8x144xbf16, #tpu.memory_space<vmem>>, vector<8x144xbf16>
    %c0_1 = arith.constant 0 : index
    %c0_2 = arith.constant 0 : index
    %c0_3 = arith.constant 0 : index
    %1 = vector.load %arg2[%c0_1, %c0_2, %c0_3] : memref<1x144x128xbf16, #tpu.memory_space<vmem>>, vector<1x144x128xbf16>
    %2 = vector.shape_cast %1 : vector<1x144x128xbf16> to vector<144x128xbf16>
    %cst = arith.constant dense<0.000000e+00> : vector<8x128xf32>
    %3 = tpu.matmul %0, %2, %cst {dimension_numbers = #tpu.dot_dimension_numbers<[1], [0], [0], [1], [0, 0, 1, 1], [], []>} : vector<8x144xbf16>, vector<144x128xbf16>, vector<8x128xf32> -> vector<8x128xf32>
    %c0_4 = arith.constant 0 : index
    %c0_5 = arith.constant 0 : index
    %4 = vector.load %arg4[%c0_4, %c0_5] : memref<8x1xf32, #tpu.memory_space<vmem>>, vector<8x1xf32>
    %5 = vector.broadcast %4 : vector<8x1xf32> to vector<8x128xf32>
    %6 = arith.addf %3, %5 : vector<8x128xf32>
    %c0_6 = arith.constant 0 : index
    %c0_7 = arith.constant 0 : index
    %c0_8 = arith.constant 0 : index
    %7 = vector.load %arg5[%c0_6, %c0_7, %c0_8] : memref<1x8x128xf32, #tpu.memory_space<vmem>>, vector<1x8x128xf32>
    %8 = vector.shape_cast %7 : vector<1x8x128xf32> to vector<8x128xf32>
    %9 = vector.shape_cast %6 : vector<8x128xf32> to vector<1x8x128xf32>
    tpu.vector_store %arg5[%c0_6, %c0_7, %c0_8], %9 {strides = array<i32>} : memref<1x8x128xf32, #tpu.memory_space<vmem>>, vector<1x8x128xf32>,
    return
  }
  func.func @transform_0(%arg0: i32, %arg1: i32) -> (i32, i32, i32) {
    %c0_i32 = arith.constant 0 : i32
    %c0_i32_0 = arith.constant 0 : i32
    return %arg0, %c0_i32, %arg1 : i32, i32, i32
  }
  func.func @transform_1(%arg0: i32, %arg1: i32) -> (i32, i32) {
    %c0_i32 = arith.constant 0 : i32
    %c0_i32_0 = arith.constant 0 : i32
    %c0_i32_1 = arith.constant 0 : i32
    return %c0_i32, %c0_i32_0 : i32, i32
  }
  func.func @transform_2(%arg0: i32, %arg1: i32) -> (i32, i32) {
    %c0_i32 = arith.constant 0 : i32
    %c0_i32_0 = arith.constant 0 : i32
    %c0_i32_1 = arith.constant 0 : i32
    return %c0_i32, %c0_i32_0 : i32, i32
  }
  func.func @transform_3(%arg0: i32, %arg1: i32) -> (i32, i32, i32) {
    %c0_i32 = arith.constant 0 : i32
    %c0_i32_0 = arith.constant 0 : i32
    return %arg0, %c0_i32, %arg1 : i32, i32, i32
  }
}

module attributes {stable_mosaic.version = 11 : i64} {
  func.func @_conv_matmul_kernel(%arg0: i32, %arg1: i32, %arg2: memref<1x72x128xbf16, #tpu.memory_space<vmem>>, %arg3: memref<1x72xbf16, #tpu.memory_space<vmem>>, %arg4: memref<1x1xf32, #tpu.memory_space<vmem>>, %arg5: memref<1x1x128xf32, #tpu.memory_space<vmem>>) attributes {dimension_semantics = [#tpu.dimension_semantics<parallel>, #tpu.dimension_semantics<parallel>], iteration_bounds = array<i64: 16, 1>, scalar_prefetch = 0 : i64, scratch_operands = 0 : i64, tpu.core_type = #tpu.core_type<tc>, window_params = [{transform_indices = @transform_0, window_bounds = array<i64: 1, 72, 128>}, {pipeline_mode = #tpu.pipeline_mode<synchronous>, transform_indices = @transform_1, window_bounds = array<i64: 1, 72>}, {pipeline_mode = #tpu.pipeline_mode<synchronous>, transform_indices = @transform_2, window_bounds = array<i64: 1, 1>}, {transform_indices = @transform_3, window_bounds = array<i64: 1, 1, 128>}]} {
    %c0 = arith.constant 0 : index
    %c0_0 = arith.constant 0 : index
    %0 = vector.load %arg3[%c0, %c0_0] : memref<1x72xbf16, #tpu.memory_space<vmem>>, vector<1x72xbf16>
    %c0_1 = arith.constant 0 : index
    %c0_2 = arith.constant 0 : index
    %c0_3 = arith.constant 0 : index
    %1 = vector.load %arg2[%c0_1, %c0_2, %c0_3] : memref<1x72x128xbf16, #tpu.memory_space<vmem>>, vector<1x72x128xbf16>
    %2 = vector.shape_cast %1 : vector<1x72x128xbf16> to vector<72x128xbf16>
    %cst = arith.constant dense<0.000000e+00> : vector<1x128xf32>
    %3 = tpu.matmul %0, %2, %cst {dimension_numbers = #tpu.dot_dimension_numbers<[1], [0], [0], [1], [0, 0, 1, 1], [], []>} : vector<1x72xbf16>, vector<72x128xbf16>, vector<1x128xf32> -> vector<1x128xf32>
    %c0_4 = arith.constant 0 : index
    %c0_5 = arith.constant 0 : index
    %4 = vector.load %arg4[%c0_4, %c0_5] : memref<1x1xf32, #tpu.memory_space<vmem>>, vector<1x1xf32>
    %5 = vector.broadcast %4 : vector<1x1xf32> to vector<1x128xf32>
    %6 = arith.addf %3, %5 : vector<1x128xf32>
    %c0_6 = arith.constant 0 : index
    %c0_7 = arith.constant 0 : index
    %c0_8 = arith.constant 0 : index
    %7 = vector.load %arg5[%c0_6, %c0_7, %c0_8] : memref<1x1x128xf32, #tpu.memory_space<vmem>>, vector<1x1x128xf32>
    %8 = vector.shape_cast %7 : vector<1x1x128xf32> to vector<1x128xf32>
    %9 = vector.shape_cast %6 : vector<1x128xf32> to vector<1x1x128xf32>
    tpu.vector_store %arg5[%c0_6, %c0_7, %c0_8], %9 {strides = array<i32>} : memref<1x1x128xf32, #tpu.memory_space<vmem>>, vector<1x1x128xf32>,
    return
  }
  func.func @transform_0(%arg0: i32, %arg1: i32) -> (i32, i32, i32) {
    %c0_i32 = arith.constant 0 : i32
    %c0_i32_0 = arith.constant 0 : i32
    return %arg0, %c0_i32, %arg1 : i32, i32, i32
  }
  func.func @transform_1(%arg0: i32, %arg1: i32) -> (i32, i32) {
    %c0_i32 = arith.constant 0 : i32
    %c0_i32_0 = arith.constant 0 : i32
    %c0_i32_1 = arith.constant 0 : i32
    return %c0_i32, %c0_i32_0 : i32, i32
  }
  func.func @transform_2(%arg0: i32, %arg1: i32) -> (i32, i32) {
    %c0_i32 = arith.constant 0 : i32
    %c0_i32_0 = arith.constant 0 : i32
    %c0_i32_1 = arith.constant 0 : i32
    return %c0_i32, %c0_i32_0 : i32, i32
  }
  func.func @transform_3(%arg0: i32, %arg1: i32) -> (i32, i32, i32) {
    %c0_i32 = arith.constant 0 : i32
    %c0_i32_0 = arith.constant 0 : i32
    return %arg0, %c0_i32, %arg1 : i32, i32, i32
  }
}

module attributes {stable_mosaic.version = 11 : i64} {
  func.func @_depth_conf_kernel(%arg0: i32, %arg1: i32, %arg2: memref<1x8x128xf32, #tpu.memory_space<vmem>>, %arg3: memref<1x8x1xf32, #tpu.memory_space<vmem>>, %arg4: memref<1x1x128xf32, #tpu.memory_space<vmem>>, %arg5: memref<1x1x128xf32, #tpu.memory_space<vmem>>) attributes {dimension_semantics = [#tpu.dimension_semantics<parallel>, #tpu.dimension_semantics<parallel>], iteration_bounds = array<i64: 2, 1>, scalar_prefetch = 0 : i64, scratch_operands = 0 : i64, tpu.core_type = #tpu.core_type<tc>, window_params = [{transform_indices = @transform_0, window_bounds = array<i64: 1, 8, 128>}, {transform_indices = @transform_1, window_bounds = array<i64: 1, 8, 1>}, {transform_indices = @transform_2, window_bounds = array<i64: 1, 1, 128>}, {transform_indices = @transform_3, window_bounds = array<i64: 1, 1, 128>}]} {
    %c0 = arith.constant 0 : index
    %c0_0 = arith.constant 0 : index
    %c0_1 = arith.constant 0 : index
    %0 = vector.load %arg2[%c0, %c0_0, %c0_1] : memref<1x8x128xf32, #tpu.memory_space<vmem>>, vector<1x8x128xf32>
    %1 = vector.shape_cast %0 : vector<1x8x128xf32> to vector<8x128xf32>
    %cst = arith.constant dense<0xFF800000> : vector<128xf32>
    %2 = vector.multi_reduction <maximumf>, %1, %cst [0] : vector<8x128xf32> to vector<128xf32>
    %3 = vector.shape_cast %2 : vector<128xf32> to vector<1x128xf32>
    %4 = vector.broadcast %3 : vector<1x128xf32> to vector<8x128xf32>
    %5 = arith.subf %1, %4 : vector<8x128xf32>
    %6 = math.exp %5 : vector<8x128xf32>
    %cst_2 = arith.constant dense<0.000000e+00> : vector<128xf32>
    %7 = vector.multi_reduction <add>, %6, %cst_2 [0] : vector<8x128xf32> to vector<128xf32>
    %8 = vector.shape_cast %7 : vector<128xf32> to vector<1x128xf32>
    %9 = tpu.reciprocal %8 {approx = true} : vector<1x128xf32> -> vector<1x128xf32>
    %10 = vector.broadcast %9 : vector<1x128xf32> to vector<8x128xf32>
    %11 = arith.mulf %6, %10 : vector<8x128xf32>
    %c0_3 = arith.constant 0 : index
    %c0_4 = arith.constant 0 : index
    %c0_5 = arith.constant 0 : index
    %12 = vector.load %arg3[%c0_3, %c0_4, %c0_5] : memref<1x8x1xf32, #tpu.memory_space<vmem>>, vector<1x8x1xf32>
    %13 = vector.shape_cast %12 : vector<1x8x1xf32> to vector<8x1xf32>
    %14 = vector.broadcast %13 : vector<8x1xf32> to vector<8x128xf32>
    %15 = arith.mulf %11, %14 : vector<8x128xf32>
    %cst_6 = arith.constant dense<0.000000e+00> : vector<128xf32>
    %16 = vector.multi_reduction <add>, %15, %cst_6 [0] : vector<8x128xf32> to vector<128xf32>
    %17 = vector.shape_cast %16 : vector<128xf32> to vector<1x128xf32>
    %c0_7 = arith.constant 0 : index
    %c0_8 = arith.constant 0 : index
    %c0_9 = arith.constant 0 : index
    %18 = vector.load %arg4[%c0_7, %c0_8, %c0_9] : memref<1x1x128xf32, #tpu.memory_space<vmem>>, vector<1x1x128xf32>
    %19 = vector.shape_cast %18 : vector<1x1x128xf32> to vector<1x128xf32>
    %20 = vector.shape_cast %17 : vector<1x128xf32> to vector<1x1x128xf32>
    tpu.vector_store %arg4[%c0_7, %c0_8, %c0_9], %20 {strides = array<i32>} : memref<1x1x128xf32, #tpu.memory_space<vmem>>, vector<1x1x128xf32>,
    %21 = tpu.iota {dimensions = array<i32: 0>} : vector<8x128xi32>
    %22 = arith.sitofp %21 : vector<8x128xi32> to vector<8x128xf32>
    %23 = arith.mulf %11, %22 : vector<8x128xf32>
    %cst_10 = arith.constant dense<0.000000e+00> : vector<128xf32>
    %24 = vector.multi_reduction <add>, %23, %cst_10 [0] : vector<8x128xf32> to vector<128xf32>
    %25 = vector.shape_cast %24 : vector<128xf32> to vector<1x128xf32>
    %26 = math.floor %25 : vector<1x128xf32>
    %27 = arith.fptosi %26 : vector<1x128xf32> to vector<1x128xi32>
    %cst_11 = arith.constant 0.000000e+00 : f32
    %28 = vector.broadcast %cst_11 : f32 to vector<1x128xf32>
    %cst_12 = arith.constant 0.000000e+00 : f32
    %29 = vector.broadcast %cst_12 : f32 to vector<2x128xf32>
    %30 = tpu.concatenate %28, %11, %29 in 0 : vector<1x128xf32>, vector<8x128xf32>, vector<2x128xf32> -> vector<11x128xf32>
    %31 = vector.extract_strided_slice %30 {offsets = [0, 0], sizes = [8, 128], strides = [1, 1]} : vector<11x128xf32> to vector<8x128xf32>
    %32 = vector.extract_strided_slice %30 {offsets = [1, 0], sizes = [8, 128], strides = [1, 1]} : vector<11x128xf32> to vector<8x128xf32>
    %33 = arith.addf %31, %32 : vector<8x128xf32>
    %34 = vector.extract_strided_slice %30 {offsets = [2, 0], sizes = [8, 128], strides = [1, 1]} : vector<11x128xf32> to vector<8x128xf32>
    %35 = arith.addf %33, %34 : vector<8x128xf32>
    %36 = vector.extract_strided_slice %30 {offsets = [3, 0], sizes = [8, 128], strides = [1, 1]} : vector<11x128xf32> to vector<8x128xf32>
    %37 = arith.addf %35, %36 : vector<8x128xf32>
    %38 = vector.broadcast %27 : vector<1x128xi32> to vector<8x128xi32>
    %39 = arith.cmpi eq, %21, %38 : vector<8x128xi32>
    %cst_13 = arith.constant 0.000000e+00 : f32
    %40 = vector.broadcast %cst_13 : f32 to vector<8x128xf32>
    %41 = arith.select %39, %37, %40 : vector<8x128xi1>, vector<8x128xf32>
    %cst_14 = arith.constant dense<0.000000e+00> : vector<128xf32>
    %42 = vector.multi_reduction <add>, %41, %cst_14 [0] : vector<8x128xf32> to vector<128xf32>
    %43 = vector.shape_cast %42 : vector<128xf32> to vector<1x128xf32>
    %c0_15 = arith.constant 0 : index
    %c0_16 = arith.constant 0 : index
    %c0_17 = arith.constant 0 : index
    %44 = vector.load %arg5[%c0_15, %c0_16, %c0_17] : memref<1x1x128xf32, #tpu.memory_space<vmem>>, vector<1x1x128xf32>
    %45 = vector.shape_cast %44 : vector<1x1x128xf32> to vector<1x128xf32>
    %46 = vector.shape_cast %43 : vector<1x128xf32> to vector<1x1x128xf32>
    tpu.vector_store %arg5[%c0_15, %c0_16, %c0_17], %46 {strides = array<i32>} : memref<1x1x128xf32, #tpu.memory_space<vmem>>, vector<1x1x128xf32>,
    return
  }
  func.func @transform_0(%arg0: i32, %arg1: i32) -> (i32, i32, i32) {
    %c0_i32 = arith.constant 0 : i32
    %c0_i32_0 = arith.constant 0 : i32
    return %arg0, %c0_i32, %arg1 : i32, i32, i32
  }
  func.func @transform_1(%arg0: i32, %arg1: i32) -> (i32, i32, i32) {
    %c0_i32 = arith.constant 0 : i32
    %c0_i32_0 = arith.constant 0 : i32
    %c0_i32_1 = arith.constant 0 : i32
    return %arg0, %c0_i32, %c0_i32_0 : i32, i32, i32
  }
  func.func @transform_2(%arg0: i32, %arg1: i32) -> (i32, i32, i32) {
    %c0_i32 = arith.constant 0 : i32
    %c0_i32_0 = arith.constant 0 : i32
    return %arg0, %c0_i32, %arg1 : i32, i32, i32
  }
  func.func @transform_3(%arg0: i32, %arg1: i32) -> (i32, i32, i32) {
    %c0_i32 = arith.constant 0 : i32
    %c0_i32_0 = arith.constant 0 : i32
    return %arg0, %c0_i32, %arg1 : i32, i32, i32
  }
}

</mosaic_0001>

<bundles_post_ra>
// kernel: net_forward.17
= control target key start
LH: loop header
LB: loop body
LE: loop exit
PB: predicated region body
PF: predicated region fallthrough
CT: control target
= control target key end

     0   :  { %s711_s12 = smov 0   ;;  %s713_s13 = smov 0   ;;  %s791_s0 = inlined_call_operand.vmem [shape: bf16[6,27,1024], index: 0, kind: input, shape index: {}]   ;;  %s792_s1 = inlined_call_operand.vmem [shape: bf16[8,27], index: 1, kind: input, shape index: {}]   ;;  %s793_s2 = inlined_call_operand.vmem [shape: f32[8,1], index: 2, kind: input, shape index: {}]   ;;  %s794_s3 = inlined_call_operand.vmem [shape: f32[6,8,1024], index: 3, kind: output, shape index: {}]  }
   0x1   :  { %s715_s14 = smov 0  }
   0x2 LB: > { %s25_s15 = sadd.s32 1, %s683_s13  ;;  %p609_p0 = scmp.ge.s32.totalorder %s687_s14, 1  ;;  %s687_s14 = sphi %s715_s14, %s13_s14   ;;  %s683_s13 = sphi %s713_s13, %s796_s13   ;;  %s679_s12 = sphi %s711_s12, %s795_s12  }
   0x3   : > { %p27_p1 = scmp.ge.s32.totalorder %s25_s15, 6  ;;  %p158_p2 = scmp.lt.s32.totalorder %s687_s14, 7 }
   0x5   : > { %s798_s15 = smov (%p27_p1, %s25_s15), 0  ;;  %p159_p3 = pnand %p609_p0, %p158_p2 }
   0x6   : > { %p191_p4 = scmp.lt.s32.totalorder (!%p159_p3), %s679_s12, 5 }
   0x7   : > { %162 = sbr.rel (%p159_p3) target bundleno = 237 (0xed), region = 32 }
   0xc   : > { %vm310_vm0 = vcmask 1044480   ;;  %v228_v0 = vld [vmem:[%s793_s2] sm:$0xff]  ;;  %v689_v1 = vmov 0   ;;  %s800_s12 = smov (!%p191_p4, %s679_s12), 5  ;;  %vm311_vm1 = vcmask 1045504   ;;  %v690_v2 = vmov 65535  }
   0xd   : > { %370 = vmatprep.mubr.bf16.mxu0 %v689_v1  ;;  %411 = vmatprep.mubr.bf16.mxu1 %v689_v1  ;;  %v312_v3 = vsel %vm310_vm0, 4294967295, %v690_v2  ;;  %s636_s18 = sshll.u32 %s800_s12, 7  ;;  %v211_v39 = vld [vmem:[%s792_s1] sm:$0xf]  ;;  %vm306_vm2 = vcmask 220160   ;;  %s637_s24 = sshll.u32 %s800_s12, 6 }
   0xe   : > { %664 = vset.pattern.permute.xlu0 %v689_v1  ;;  %s741_s21 = scalar_lea.vmem %s791_s0, %s636_s18  ;;  %v313_v6 = vsel %vm311_vm1, %v312_v3, 0  ;;  %s772_s27 = scalar_lea.vmem %s794_s3, %s637_s24 }
   0xf   : > { %231 = vperm.xlu0 %664, %v228_v0   ;;  %v220_v4 = vld [vmem:[%s741_s21 + $0x40] sm:$0xff]  ;;  %v221_v7 = vld [vmem:[%s741_s21 + $0x48] sm:$0xff]  ;;  %v222_v17 = vld [vmem:[%s741_s21 + $0x50] sm:$0xff] }
  0x10   : > { %v224_v5 = vld [vmem:[%s741_s21 + $0x60] sm:$0x33]  ;;  %v225_v9 = vld [vmem:[%s741_s21 + $0x68] sm:$0x33]  ;;  %v226_v21 = vld [vmem:[%s741_s21 + $0x70] sm:$0x33] }
  0x11   : > { %v623_v8 = vcombine.high %v220_v4, %v224_v5  ;;  %v622_v10 = vcombine.low %v220_v4, %v224_v5  ;;  %v212_v11 = vld [vmem:[%s741_s21] sm:$0xff]  ;;  %v625_v13 = vcombine.high %v221_v7, %v225_v9  ;;  %v624_v14 = vcombine.low %v221_v7, %v225_v9  ;;  %v213_v15 = vld [vmem:[%s741_s21 + $0x8] sm:$0xff]  ;;  %v223_v22 = vld [vmem:[%s741_s21 + $0x58] sm:$0xff] }
  0x12   : > { %v216_v12 = vld [vmem:[%s741_s21 + $0x20] sm:$0xff]  ;;  %v217_v16 = vld [vmem:[%s741_s21 + $0x28] sm:$0xff]  ;;  %v227_v23 = vld [vmem:[%s741_s21 + $0x78] sm:$0x33]  ;;  %v627_v27 = vcombine.high %v222_v17, %v226_v21  ;;  %v626_v30 = vcombine.low %v222_v17, %v226_v21 }
  0x13   : > { %v318_v18 = vand.u32 %v623_v8, %v313_v6  ;;  %v315_v19 = vand.u32 %v622_v10, %v313_v6  ;;  %v615_v20 = vcombine.high %v212_v11, %v216_v12  ;;  %v324_v24 = vand.u32 %v625_v13, %v313_v6  ;;  %v214_v35 = vld [vmem:[%s741_s21 + $0x10] sm:$0xff]  ;;  %v215_v37 = vld [vmem:[%s741_s21 + $0x18] sm:$0xff] }
  0x14   : > { %v321_v25 = vand.u32 %v624_v14, %v313_v6  ;;  %v617_v26 = vcombine.high %v213_v15, %v217_v16  ;;  %v629_v28 = vcombine.high %v223_v22, %v227_v23  ;;  %v614_v29 = vcombine.low %v212_v11, %v216_v12  ;;  %v218_v36 = vld [vmem:[%s741_s21 + $0x30] sm:$0xff]  ;;  %v219_v38 = vld [vmem:[%s741_s21 + $0x38] sm:$0xff] }
  0x15   : > { %350 = vmatprep.subr.bf16.mxu0 %v318_v18  ;;  %391 = vmatprep.subr.bf16.mxu1 %v324_v24  ;;  %v616_v31 = vcombine.low %v213_v15, %v217_v16  ;;  %v330_v32 = vand.u32 %v627_v27, %v313_v6  ;;  %v628_v33 = vcombine.low %v223_v22, %v227_v23 }
  0x16   : > { %351 = vmatpush1.bf16.msra.mxu0 %v315_v19  ;;  %392 = vmatpush1.bf16.msra.mxu1 %v321_v25  ;;  %v336_v34 = vand.u32 %v629_v28, %v313_v6  ;;  %v327_v40 = vand.u32 %v626_v30, %v313_v6  ;;  %v619_v42 = vcombine.high %v214_v35, %v218_v36 }
  0x17   : > { %352 = vmatprep.subr.bf16.mxu0 %v615_v20  ;;  %393 = vmatprep.subr.bf16.mxu1 %v617_v26  ;;  %v333_v41 = vand.u32 %v628_v33, %v313_v6  ;;  %v621_v43 = vcombine.high %v215_v37, %v219_v38  ;;  %v618_v44 = vcombine.low %v214_v35, %v218_v36 }
  0x18   : > { %v620_v45 = vcombine.low %v215_v37, %v219_v38 }
  0x1a   : > { %353 = vmatpush1.bf16.msra.mxu0 %v614_v29  ;;  %394 = vmatpush1.bf16.msra.mxu1 %v616_v31 }
  0x1b   : > { %432 = vmatprep.subr.bf16.mxu0 %v330_v32  ;;  %473 = vmatprep.subr.bf16.mxu1 %v336_v34 }
  0x1d   : > { %630 = vmatmul.mubr.msk.bf16.vlgmr.msra.gmra.mxu0 %vm306_vm2, %v211_v39  ;;  %631 = vmatmul.mubr.msk.bf16.vlgmr.msra.gmra.mxu1 %vm306_vm2, %v211_v39 }
  0x1e   : > { %433 = vmatpush1.bf16.msra.mxu0 %v327_v40  ;;  %474 = vmatpush1.bf16.msra.mxu1 %v333_v41 }
  0x1f   : > { %434 = vmatprep.subr.bf16.mxu0 %v619_v42  ;;  %475 = vmatprep.subr.bf16.mxu1 %v621_v43 }
  0x20   : > { %452 = vmatprep.mubr.bf16.mxu0 %v689_v1  ;;  %493 = vmatprep.mubr.bf16.mxu1 %v689_v1 }
  0x22   : > { %435 = vmatpush1.bf16.msra.mxu0 %v618_v44  ;;  %476 = vmatpush1.bf16.msra.mxu1 %v620_v45 }
  0x25   : > { %632 = vmatmul.mubr.msk.bf16.vlgmr.msra.gmra.mxu0 %vm306_vm2, %v211_v39  ;;  %633 = vmatmul.mubr.msk.bf16.vlgmr.msra.gmra.mxu1 %vm306_vm2, %v211_v39 }
  0x8a   : > { %v232_v46 = vpop.permute.xlu0 %231 }
  0xdd   : > { %v372_v47 = vpop.f32.mrf.mxu0  ;;  %v413_v48 = vpop.f32.mrf.mxu1 }
  0xde   : > { %v373_v49 = vadd.f32 %v372_v47, %v232_v46  ;;  %v414_v50 = vadd.f32 %v413_v48, %v232_v46 }
  0xdf   : > { %v374_v51 = vpop.f32.mrf.mxu0  ;;  %v415_v54 = vpop.f32.mrf.mxu1 }
  0xe0   : > { %v502_v52 = vmax.f32 %v373_v49, 0.0  ;;  %v375_v53 = vadd.f32 %v374_v51, %v232_v46  ;;  %v504_v55 = vmax.f32 %v414_v50, 0.0  ;;  %v416_v56 = vadd.f32 %v415_v54, %v232_v46 }
  0xe1   : > { %v376_v57 = vpop.f32.mrf.mxu0  ;;  %v417_v59 = vpop.f32.mrf.mxu1 }
  0xe2   : > { %510 = vst [vmem:[%s772_s27] sm:$0xff] %v502_v52  ;;  %v503_v58 = vmax.f32 %v375_v53, 0.0  ;;  %512 = vst [vmem:[%s772_s27 + $0x10] sm:$0xff] %v504_v55  ;;  %v505_v60 = vmax.f32 %v416_v56, 0.0 }
  0xe3   : > { %v377_v61 = vpop.f32.mrf.mxu0  ;;  %v418_v62 = vpop.f32.mrf.mxu1 }
  0xe4   : > { %511 = vst [vmem:[%s772_s27 + $0x8] sm:$0xff] %v503_v58  ;;  %513 = vst [vmem:[%s772_s27 + $0x18] sm:$0xff] %v505_v60 }
  0xe5   : > { %v454_v63 = vpop.f32.mrf.mxu0  ;;  %v495_v1 = vpop.f32.mrf.mxu1 }
  0xe6   : > { %v455_v0 = vadd.f32 %v454_v63, %v232_v46  ;;  %v496_v2 = vadd.f32 %v495_v1, %v232_v46 }
  0xe7   : > { %v456_v3 = vpop.f32.mrf.mxu0  ;;  %v497_v6 = vpop.f32.mrf.mxu1 }
  0xe8   : > { %v506_v4 = vmax.f32 %v455_v0, 0.0  ;;  %v457_v5 = vadd.f32 %v456_v3, %v232_v46  ;;  %v508_v7 = vmax.f32 %v496_v2, 0.0  ;;  %v498_v8 = vadd.f32 %v497_v6, %v232_v46 }
  0xe9   : > { %v458_v9 = vpop.f32.mrf.mxu0  ;;  %v499_v11 = vpop.f32.mrf.mxu1 }
  0xea   : > { %514 = vst [vmem:[%s772_s27 + $0x20] sm:$0xff] %v506_v4  ;;  %v507_v10 = vmax.f32 %v457_v5, 0.0  ;;  %516 = vst [vmem:[%s772_s27 + $0x30] sm:$0xff] %v508_v7  ;;  %v509_v12 = vmax.f32 %v498_v8, 0.0 }
  0xeb   : > { %v459_v13 = vpop.f32.mrf.mxu0  ;;  %v500_v14 = vpop.f32.mrf.mxu1 }
  0xec   : > { %515 = vst [vmem:[%s772_s27 + $0x28] sm:$0xff] %v507_v10  ;;  %517 = vst [vmem:[%s772_s27 + $0x38] sm:$0xff] %v509_v12 }
  0xed PF: > { %s13_s14 = sadd.s32 1, %s687_s14   ;;  %s795_s12 = smov %s683_s13 }
  0xee   : > { %p10_p5 = scmp.ge.s32.totalorder %s13_s14, 8   ;;  %s796_s13 = smov %s798_s15 }
  0xf0   :  { %12 = sbr.rel (!%p10_p5) target bundleno = 2 (0x2), region = 62 }

// kernel: net_forward.18
= control target key start
LH: loop header
LB: loop body
LE: loop exit
PB: predicated region body
PF: predicated region fallthrough
CT: control target
= control target key end

     0   :  { %s869_s12 = smov 0   ;;  %s871_s13 = smov 0   ;;  %s977_s0 = inlined_call_operand.vmem [shape: bf16[6,72,1024], index: 0, kind: input, shape index: {}]   ;;  %s978_s1 = inlined_call_operand.vmem [shape: bf16[8,72], index: 1, kind: input, shape index: {}]   ;;  %s979_s2 = inlined_call_operand.vmem [shape: f32[8,1], index: 2, kind: input, shape index: {}]   ;;  %s980_s3 = inlined_call_operand.vmem [shape: f32[6,8,1024], index: 3, kind: output, shape index: {}]  }
   0x1   :  { %s873_s14 = smov 0  }
   0x2 LB: > { %s25_s15 = sadd.s32 1, %s842_s13  ;;  %p734_p0 = scmp.ge.s32.totalorder %s846_s14, 1  ;;  %s846_s14 = sphi %s873_s14, %s13_s14   ;;  %s842_s13 = sphi %s871_s13, %s982_s13   ;;  %s838_s12 = sphi %s869_s12, %s981_s12  }
   0x3   : > { %p27_p1 = scmp.ge.s32.totalorder %s25_s15, 6  ;;  %p158_p2 = scmp.lt.s32.totalorder %s846_s14, 7 }
   0x5   : > { %s984_s15 = smov (%p27_p1, %s25_s15), 0  ;;  %p159_p3 = pnand %p734_p0, %p158_p2 }
   0x6   : > { %p191_p4 = scmp.lt.s32.totalorder (!%p159_p3), %s838_s12, 5 }
   0x7   : > { %162 = sbr.rel (%p159_p3) target bundleno = 259 (0x103), region = 32 }
   0xc   : > { %v848_v0 = vmov 0   ;;  %v248_v1 = vld [vmem:[%s979_s2] sm:$0xff]  ;;  %s986_s12 = smov (!%p191_p4, %s838_s12), 5  ;;  %vm438_vm0 = vcmask 1043456   ;;  %vm434_vm1 = vcmask 588800  }
   0xd   : > { %495 = vmatprep.mubr.bf16.mxu0 %v848_v0  ;;  %536 = vmatprep.mubr.bf16.mxu1 %v848_v0  ;;  %s789_s18 = smul.u32 288, %s986_s12  ;;  %v211_v52 = vld [vmem:[%s978_s1] sm:$0xf]  ;;  %s788_s24 = sshll.u32 %s986_s12, 6 }
   0xe   : > { %815 = vset.pattern.permute.xlu0 %v848_v0  ;;  %s958_s27 = scalar_lea.vmem %s980_s3, %s788_s24 }
   0xf   : > { %251 = vperm.xlu0 %815, %v248_v1   ;;  %s899_s21 = scalar_lea.vmem %s977_s0, %s789_s18 }
  0x10   : > { %v244_v2 = vld [vmem:[%s899_s21 + $0x100] sm:$0xff]  ;;  %v245_v3 = vld [vmem:[%s899_s21 + $0x108] sm:$0xff]  ;;  %v246_v40 = vld [vmem:[%s899_s21 + $0x110] sm:$0xff] }
  0x11   : > { %v236_v4 = vld [vmem:[%s899_s21 + $0xc0] sm:$0xff]  ;;  %v771_v5 = vcombine.high %v244_v2, %v244_v2  ;;  %v773_v6 = vcombine.high %v245_v3, %v245_v3  ;;  %v770_v7 = vcombine.low %v244_v2, %v244_v2  ;;  %v772_v8 = vcombine.low %v245_v3, %v245_v3  ;;  %v237_v10 = vld [vmem:[%s899_s21 + $0xc8] sm:$0xff]  ;;  %v247_v41 = vld [vmem:[%s899_s21 + $0x118] sm:$0xff] }
  0x12   : > { %v240_v9 = vld [vmem:[%s899_s21 + $0xe0] sm:$0xff]  ;;  %v241_v11 = vld [vmem:[%s899_s21 + $0xe8] sm:$0xff]  ;;  %v775_v44 = vcombine.high %v246_v40, %v246_v40  ;;  %v777_v45 = vcombine.high %v247_v41, %v247_v41  ;;  %v774_v46 = vcombine.low %v246_v40, %v246_v40  ;;  %v776_v47 = vcombine.low %v247_v41, %v247_v41  ;;  %v238_v48 = vld [vmem:[%s899_s21 + $0xd0] sm:$0xff] }
  0x13   : > { %v763_v12 = vcombine.high %v236_v4, %v240_v9  ;;  %v765_v13 = vcombine.high %v237_v10, %v241_v11  ;;  %v228_v14 = vld [vmem:[%s899_s21 + $0x80] sm:$0xff]  ;;  %v229_v16 = vld [vmem:[%s899_s21 + $0x88] sm:$0xff]  ;;  %778 = vmatprep.subr.msk.bf16.mxu0 %vm438_vm0, %v771_v5  ;;  %780 = vmatprep.subr.msk.bf16.mxu1 %vm438_vm0, %v773_v6  ;;  %v440_v17 = vsel %vm438_vm0, %v770_v7, 0  ;;  %v446_v18 = vsel %vm438_vm0, %v772_v8, 0  ;;  %v242_v49 = vld [vmem:[%s899_s21 + $0xf0] sm:$0xff] }
  0x14   : > { %v232_v15 = vld [vmem:[%s899_s21 + $0xa0] sm:$0xff]  ;;  %v233_v19 = vld [vmem:[%s899_s21 + $0xa8] sm:$0xff]  ;;  %470 = vmatpush1.bf16.msra.mxu0 %v440_v17  ;;  %511 = vmatpush1.bf16.msra.mxu1 %v446_v18  ;;  %v762_v20 = vcombine.low %v236_v4, %v240_v9  ;;  %v764_v21 = vcombine.low %v237_v10, %v241_v11  ;;  %v239_v50 = vld [vmem:[%s899_s21 + $0xd8] sm:$0xff]  ;;  %v452_v53 = vsel %vm438_vm0, %v774_v46, 0  ;;  %v458_v54 = vsel %vm438_vm0, %v776_v47, 0 }
  0x15   : > { %471 = vmatprep.subr.bf16.mxu0 %v763_v12  ;;  %512 = vmatprep.subr.bf16.mxu1 %v765_v13  ;;  %v755_v22 = vcombine.high %v228_v14, %v232_v15  ;;  %v757_v23 = vcombine.high %v229_v16, %v233_v19  ;;  %v220_v24 = vld [vmem:[%s899_s21 + $0x40] sm:$0xff]  ;;  %v221_v26 = vld [vmem:[%s899_s21 + $0x48] sm:$0xff]  ;;  %v754_v28 = vcombine.low %v228_v14, %v232_v15  ;;  %v243_v51 = vld [vmem:[%s899_s21 + $0xf8] sm:$0xff] }
  0x16   : > { %v224_v25 = vld [vmem:[%s899_s21 + $0x60] sm:$0xff]  ;;  %v225_v27 = vld [vmem:[%s899_s21 + $0x68] sm:$0xff]  ;;  %v756_v29 = vcombine.low %v229_v16, %v233_v19  ;;  %v767_v55 = vcombine.high %v238_v48, %v242_v49  ;;  %v769_v56 = vcombine.high %v239_v50, %v243_v51  ;;  %v230_v57 = vld [vmem:[%s899_s21 + $0x90] sm:$0xff]  ;;  %v766_v61 = vcombine.low %v238_v48, %v242_v49 }
  0x17   : > { %v747_v30 = vcombine.high %v220_v24, %v224_v25  ;;  %v749_v31 = vcombine.high %v221_v26, %v225_v27  ;;  %v212_v32 = vld [vmem:[%s899_s21] sm:$0xff]  ;;  %v213_v34 = vld [vmem:[%s899_s21 + $0x8] sm:$0xff]  ;;  %v746_v36 = vcombine.low %v220_v24, %v224_v25  ;;  %v748_v37 = vcombine.low %v221_v26, %v225_v27  ;;  %v234_v58 = vld [vmem:[%s899_s21 + $0xb0] sm:$0xff] }
  0x18   : > { %472 = vmatpush1.bf16.msra.mxu0 %v762_v20  ;;  %513 = vmatpush1.bf16.msra.mxu1 %v764_v21  ;;  %v216_v33 = vld [vmem:[%s899_s21 + $0x20] sm:$0xff]  ;;  %v217_v35 = vld [vmem:[%s899_s21 + $0x28] sm:$0xff]  ;;  %v231_v59 = vld [vmem:[%s899_s21 + $0x98] sm:$0xff]  ;;  %v768_v62 = vcombine.low %v239_v50, %v243_v51  ;;  %v759_v63 = vcombine.high %v230_v57, %v234_v58  ;;  %v758_v6 = vcombine.low %v230_v57, %v234_v58 }
  0x19   : > { %473 = vmatprep.subr.bf16.mxu0 %v755_v22  ;;  %514 = vmatprep.subr.bf16.mxu1 %v757_v23  ;;  %v739_v38 = vcombine.high %v212_v32, %v216_v33  ;;  %v741_v39 = vcombine.high %v213_v34, %v217_v35  ;;  %v738_v42 = vcombine.low %v212_v32, %v216_v33  ;;  %v235_v60 = vld [vmem:[%s899_s21 + $0xb8] sm:$0xff]  ;;  %v222_v2 = vld [vmem:[%s899_s21 + $0x50] sm:$0xff] }
  0x1a   : > { %v740_v43 = vcombine.low %v213_v34, %v217_v35  ;;  %v761_v1 = vcombine.high %v231_v59, %v235_v60  ;;  %v226_v3 = vld [vmem:[%s899_s21 + $0x70] sm:$0xff]  ;;  %v223_v4 = vld [vmem:[%s899_s21 + $0x58] sm:$0xff]  ;;  %v760_v7 = vcombine.low %v231_v59, %v235_v60 }
  0x1b   : > { %v227_v5 = vld [vmem:[%s899_s21 + $0x78] sm:$0xff]  ;;  %v751_v8 = vcombine.high %v222_v2, %v226_v3  ;;  %v214_v10 = vld [vmem:[%s899_s21 + $0x10] sm:$0xff]  ;;  %v750_v14 = vcombine.low %v222_v2, %v226_v3 }
  0x1c   : > { %474 = vmatpush1.bf16.msra.mxu0 %v754_v28  ;;  %515 = vmatpush1.bf16.msra.mxu1 %v756_v29  ;;  %v753_v9 = vcombine.high %v223_v4, %v227_v5  ;;  %v218_v11 = vld [vmem:[%s899_s21 + $0x30] sm:$0xff]  ;;  %v215_v12 = vld [vmem:[%s899_s21 + $0x18] sm:$0xff]  ;;  %v752_v15 = vcombine.low %v223_v4, %v227_v5 }
  0x1d   : > { %475 = vmatprep.subr.bf16.mxu0 %v747_v30  ;;  %516 = vmatprep.subr.bf16.mxu1 %v749_v31  ;;  %v219_v13 = vld [vmem:[%s899_s21 + $0x38] sm:$0xff]  ;;  %v742_v17 = vcombine.low %v214_v10, %v218_v11 }
  0x1e   : > { %v745_v16 = vcombine.high %v215_v12, %v219_v13  ;;  %v744_v18 = vcombine.low %v215_v12, %v219_v13 }
  0x20   : > { %476 = vmatpush1.bf16.msra.mxu0 %v746_v36  ;;  %517 = vmatpush1.bf16.msra.mxu1 %v748_v37 }
  0x21   : > { %477 = vmatprep.subr.bf16.mxu0 %v739_v38  ;;  %518 = vmatprep.subr.bf16.mxu1 %v741_v39 }
  0x24   : > { %478 = vmatpush1.bf16.msra.mxu0 %v738_v42  ;;  %519 = vmatpush1.bf16.msra.mxu1 %v740_v43 }
  0x25   : > { %782 = vmatprep.subr.msk.bf16.mxu0 %vm438_vm0, %v775_v44  ;;  %784 = vmatprep.subr.msk.bf16.mxu1 %vm438_vm0, %v777_v45 }
  0x27   : > { %779 = vmatmul.mubr.msk.bf16.vlgmr.msra.gmra.mxu0 %vm434_vm1, %v211_v52  ;;  %781 = vmatmul.mubr.msk.bf16.vlgmr.msra.gmra.mxu1 %vm434_vm1, %v211_v52 }
  0x28   : > { %552 = vmatpush1.bf16.msra.mxu0 %v452_v53  ;;  %593 = vmatpush1.bf16.msra.mxu1 %v458_v54 }
  0x29   : > { %553 = vmatprep.subr.bf16.mxu0 %v767_v55  ;;  %594 = vmatprep.subr.bf16.mxu1 %v769_v56 }
  0x2a   : > { %577 = vmatprep.mubr.bf16.mxu0 %v848_v0  ;;  %618 = vmatprep.mubr.bf16.mxu1 %v848_v0  ;;  %v743_v0 = vcombine.high %v214_v10, %v218_v11 }
  0x2c   : > { %554 = vmatpush1.bf16.msra.mxu0 %v766_v61  ;;  %595 = vmatpush1.bf16.msra.mxu1 %v768_v62 }
  0x2d   : > { %555 = vmatprep.subr.bf16.mxu0 %v759_v63  ;;  %596 = vmatprep.subr.bf16.mxu1 %v761_v1 }
  0x30   : > { %556 = vmatpush1.bf16.msra.mxu0 %v758_v6  ;;  %597 = vmatpush1.bf16.msra.mxu1 %v760_v7 }
  0x31   : > { %557 = vmatprep.subr.bf16.mxu0 %v751_v8  ;;  %598 = vmatprep.subr.bf16.mxu1 %v753_v9 }
  0x34   : > { %558 = vmatpush1.bf16.msra.mxu0 %v750_v14  ;;  %599 = vmatpush1.bf16.msra.mxu1 %v752_v15 }
  0x35   : > { %559 = vmatprep.subr.bf16.mxu0 %v743_v0  ;;  %600 = vmatprep.subr.bf16.mxu1 %v745_v16 }
  0x38   : > { %560 = vmatpush1.bf16.msra.mxu0 %v742_v17  ;;  %601 = vmatpush1.bf16.msra.mxu1 %v744_v18 }
  0x3b   : > { %783 = vmatmul.mubr.msk.bf16.vlgmr.msra.gmra.mxu0 %vm434_vm1, %v211_v52  ;;  %785 = vmatmul.mubr.msk.bf16.vlgmr.msra.gmra.mxu1 %vm434_vm1, %v211_v52 }
  0x8a   : > { %v252_v19 = vpop.permute.xlu0 %251 }
  0xe7   : > { %v497_v20 = vpop.f32.mrf.mxu0  ;;  %v538_v21 = vpop.f32.mrf.mxu1 }
  0xe8   : > { %v498_v22 = vadd.f32 %v497_v20, %v252_v19  ;;  %v539_v23 = vadd.f32 %v538_v21, %v252_v19 }
  0xe9   : > { %v499_v24 = vpop.f32.mrf.mxu0  ;;  %v540_v25 = vpop.f32.mrf.mxu1 }
  0xea   : > { %v627_v26 = vmax.f32 %v498_v22, 0.0  ;;  %v629_v27 = vmax.f32 %v539_v23, 0.0  ;;  %v500_v28 = vadd.f32 %v499_v24, %v252_v19  ;;  %v541_v29 = vadd.f32 %v540_v25, %v252_v19 }
  0xeb   : > { %v501_v30 = vpop.f32.mrf.mxu0  ;;  %v542_v31 = vpop.f32.mrf.mxu1 }
  0xec   : > { %635 = vst [vmem:[%s958_s27] sm:$0xff] %v627_v26  ;;  %637 = vst [vmem:[%s958_s27 + $0x10] sm:$0xff] %v629_v27  ;;  %v628_v32 = vmax.f32 %v500_v28, 0.0  ;;  %v630_v33 = vmax.f32 %v541_v29, 0.0 }
  0xed   : > { %v502_v34 = vpop.f32.mrf.mxu0  ;;  %v543_v35 = vpop.f32.mrf.mxu1 }
  0xee   : > { %636 = vst [vmem:[%s958_s27 + $0x8] sm:$0xff] %v628_v32  ;;  %638 = vst [vmem:[%s958_s27 + $0x18] sm:$0xff] %v630_v33 }
  0xfb   : > { %v579_v36 = vpop.f32.mrf.mxu0  ;;  %v620_v37 = vpop.f32.mrf.mxu1 }
  0xfc   : > { %v580_v38 = vadd.f32 %v579_v36, %v252_v19  ;;  %v621_v39 = vadd.f32 %v620_v37, %v252_v19 }
  0xfd   : > { %v581_v40 = vpop.f32.mrf.mxu0  ;;  %v622_v41 = vpop.f32.mrf.mxu1 }
  0xfe   : > { %v631_v42 = vmax.f32 %v580_v38, 0.0  ;;  %v633_v43 = vmax.f32 %v621_v39, 0.0  ;;  %v582_v44 = vadd.f32 %v581_v40, %v252_v19  ;;  %v623_v45 = vadd.f32 %v622_v41, %v252_v19 }
  0xff   : > { %v583_v46 = vpop.f32.mrf.mxu0  ;;  %v624_v47 = vpop.f32.mrf.mxu1 }
 0x100   : > { %639 = vst [vmem:[%s958_s27 + $0x20] sm:$0xff] %v631_v42  ;;  %641 = vst [vmem:[%s958_s27 + $0x30] sm:$0xff] %v633_v43  ;;  %v632_v48 = vmax.f32 %v582_v44, 0.0  ;;  %v634_v49 = vmax.f32 %v623_v45, 0.0 }
 0x101   : > { %v584_v50 = vpop.f32.mrf.mxu0  ;;  %v625_v51 = vpop.f32.mrf.mxu1 }
 0x102   : > { %640 = vst [vmem:[%s958_s27 + $0x28] sm:$0xff] %v632_v48  ;;  %642 = vst [vmem:[%s958_s27 + $0x38] sm:$0xff] %v634_v49 }
 0x103 PF: > { %s13_s14 = sadd.s32 1, %s846_s14   ;;  %s981_s12 = smov %s842_s13 }
 0x104   : > { %p10_p5 = scmp.ge.s32.totalorder %s13_s14, 8   ;;  %s982_s13 = smov %s984_s15 }
 0x106   :  { %12 = sbr.rel (!%p10_p5) target bundleno = 2 (0x2), region = 62 }

// kernel: net_forward.19
= control target key start
LH: loop header
LB: loop body
LE: loop exit
PB: predicated region body
PF: predicated region fallthrough
CT: control target
= control target key end

     0   :  { %s687_s12 = smov 0   ;;  %s689_s13 = smov 0   ;;  %s763_s0 = inlined_call_operand.vmem [shape: bf16[6,200,256], index: 0, kind: input, shape index: {}]   ;;  %s764_s1 = inlined_call_operand.vmem [shape: bf16[16,200], index: 1, kind: input, shape index: {}]   ;;  %s765_s2 = inlined_call_operand.vmem [shape: f32[16,1], index: 2, kind: input, shape index: {}]   ;;  %s766_s3 = inlined_call_operand.vmem [shape: f32[6,16,256], index: 3, kind: output, shape index: {}]  }
   0x1   :  { %s691_s14 = smov 0  }
   0x2 LB: > { %s25_s15 = sadd.s32 1, %s660_s13  ;;  %p537_p0 = scmp.ge.s32.totalorder %s664_s14, 1  ;;  %s664_s14 = sphi %s691_s14, %s13_s14   ;;  %s660_s13 = sphi %s689_s13, %s768_s13   ;;  %s656_s12 = sphi %s687_s12, %s767_s12  }
   0x3   : > { %p27_p1 = scmp.ge.s32.totalorder %s25_s15, 6  ;;  %p158_p2 = scmp.lt.s32.totalorder %s664_s14, 7 }
   0x5   : > { %s770_s15 = smov (%p27_p1, %s25_s15), 0  ;;  %p159_p3 = pnand %p537_p0, %p158_p2 }
   0x6   : > { %p191_p4 = scmp.lt.s32.totalorder (!%p159_p3), %s656_s12, 5 }
   0x7   : > { %162 = sbr.rel (%p159_p3) target bundleno = 273 (0x111), region = 32 }
   0xc   : > { %v641_v0 = vld [vmem:[%s764_s1 + $0x4] ss:$8 sps:$4 sm:$0xff]   ;;  %vm384_vm0 = vcmask 588800   ;;  %s772_s12 = smov (!%p191_p4, %s656_s12), 5  ;;  %v666_v2 = vmov 0   ;;  %vm388_vm1 = vcmask 1043456  }
   0xd   : > { %v238_v1 = vld [vmem:[%s765_s2] sm:$0xff]  ;;  %600 = vset.pattern.permute.xlu0 %v666_v2  ;;  %570 = vmatprep.mubr.msk.bf16.mxu0 %vm384_vm0, %v641_v0  ;;  %s574_s20 = smul.u32 200, %s772_s12  ;;  %v239_v3 = vld [vmem:[%s765_s2 + $0x8] sm:$0xff]  ;;  %s573_s28 = sshll.u32 %s772_s12, 5 }
   0xe   : > { %242 = vperm.xlu0 %600, %v238_v1   ;;  %v639_v32 = vld [vmem:[%s764_s1] ss:$8 sps:$4 sm:$0xff]   ;;  %s208_s4 = scalar_lea.vmem %s766_s3, %s573_s28 }
   0xf   : > { %s720_s25 = scalar_lea.vmem %s763_s0, %s574_s20 }
  0x10   : > { %v601_v4 = vld [vmem:[%s720_s25 + $0x74] ss:$8 sps:$4 sm:$0xff]   ;;  %v603_v5 = vld [vmem:[%s720_s25 + $0x70] ss:$8 sps:$4 sm:$0xff]   ;;  %v604_v6 = vld [vmem:[%s720_s25 + $0x64] ss:$8 sps:$4 sm:$0xff]  }
  0x11   : > { %395 = vmatprep.subr.bf16.mxu0 %v601_v4  ;;  %v606_v7 = vld [vmem:[%s720_s25 + $0x60] ss:$8 sps:$4 sm:$0xff]   ;;  %v607_v8 = vld [vmem:[%s720_s25 + $0x54] ss:$8 sps:$4 sm:$0xff]   ;;  %v609_v9 = vld [vmem:[%s720_s25 + $0x50] ss:$8 sps:$4 sm:$0xff]  }
  0x12   : > { %247 = vperm.xlu0 %600, %v239_v3   ;;  %396 = vmatpush1.bf16.msra.mxu0 %v603_v5  ;;  %v610_v10 = vld [vmem:[%s720_s25 + $0x44] ss:$8 sps:$4 sm:$0xff]   ;;  %v612_v11 = vld [vmem:[%s720_s25 + $0x40] ss:$8 sps:$4 sm:$0xff]   ;;  %v613_v12 = vld [vmem:[%s720_s25 + $0x34] ss:$8 sps:$4 sm:$0xff]  }
  0x13   : > { %397 = vmatprep.subr.bf16.mxu0 %v604_v6  ;;  %v615_v13 = vld [vmem:[%s720_s25 + $0x30] ss:$8 sps:$4 sm:$0xff]   ;;  %v616_v14 = vld [vmem:[%s720_s25 + $0x24] ss:$8 sps:$4 sm:$0xff]   ;;  %v618_v15 = vld [vmem:[%s720_s25 + $0x20] ss:$8 sps:$4 sm:$0xff]  }
  0x14   : > { %v619_v16 = vld [vmem:[%s720_s25 + $0x14] ss:$8 sps:$4 sm:$0xff]   ;;  %v621_v17 = vld [vmem:[%s720_s25 + $0x10] ss:$8 sps:$4 sm:$0xff]   ;;  %v622_v18 = vld [vmem:[%s720_s25 + $0x4] ss:$8 sps:$4 sm:$0xff]  }
  0x15   : > { %v237_v19 = vld [vmem:[%s720_s25 + $0xc0] sm:$0xff]  ;;  %v627_v24 = vld [vmem:[%s720_s25 + $0xb4] ss:$8 sps:$4 sm:$0xff]   ;;  %v629_v25 = vld [vmem:[%s720_s25 + $0xb0] ss:$8 sps:$4 sm:$0xff]  }
  0x16   : > { %398 = vmatpush1.bf16.msra.mxu0 %v606_v7  ;;  %v624_v20 = vld [vmem:[%s720_s25] ss:$8 sps:$4 sm:$0xff]   ;;  %v568_v21 = vcombine.high %v237_v19, %v237_v19  ;;  %v567_v22 = vcombine.low %v237_v19, %v237_v19  ;;  %v630_v26 = vld [vmem:[%s720_s25 + $0xa4] ss:$8 sps:$4 sm:$0xff]   ;;  %v633_v28 = vld [vmem:[%s720_s25 + $0x94] ss:$8 sps:$4 sm:$0xff]  }
  0x17   : > { %399 = vmatprep.subr.bf16.mxu0 %v607_v8  ;;  %v632_v27 = vld [vmem:[%s720_s25 + $0xa0] ss:$8 sps:$4 sm:$0xff]   ;;  %v635_v29 = vld [vmem:[%s720_s25 + $0x90] ss:$8 sps:$4 sm:$0xff]   ;;  %v636_v30 = vld [vmem:[%s720_s25 + $0x84] ss:$8 sps:$4 sm:$0xff]  }
  0x18   : > { %v390_v23 = vsel %vm388_vm1, %v567_v22, 0  ;;  %v638_v31 = vld [vmem:[%s720_s25 + $0x80] ss:$8 sps:$4 sm:$0xff]  }
  0x1a   : > { %400 = vmatpush1.bf16.msra.mxu0 %v609_v9 }
  0x1b   : > { %401 = vmatprep.subr.bf16.mxu0 %v610_v10 }
  0x1e   : > { %402 = vmatpush1.bf16.msra.mxu0 %v612_v11 }
  0x1f   : > { %403 = vmatprep.subr.bf16.mxu0 %v613_v12 }
  0x22   : > { %404 = vmatpush1.bf16.msra.mxu0 %v615_v13 }
  0x23   : > { %405 = vmatprep.subr.bf16.mxu0 %v616_v14 }
  0x26   : > { %406 = vmatpush1.bf16.msra.mxu0 %v618_v15 }
  0x27   : > { %407 = vmatprep.subr.bf16.mxu0 %v619_v16 }
  0x2a   : > { %408 = vmatpush1.bf16.msra.mxu0 %v621_v17 }
  0x2b   : > { %409 = vmatprep.subr.bf16.mxu0 %v622_v18 }
  0x2e   : > { %410 = vmatpush1.bf16.msra.mxu0 %v624_v20 }
  0x2f   : > { %569 = vmatprep.subr.msk.bf16.mxu0 %vm388_vm1, %v568_v21 }
  0x32   : > { %418 = vmatpush2.bf16.msra.mxu0 %v390_v23 }
  0x33   : > { %419 = vmatprep.subr.bf16.mxu0 %v627_v24 }
  0x36   : > { %420 = vmatpush2.bf16.msra.mxu0 %v629_v25 }
  0x37   : > { %421 = vmatprep.subr.bf16.mxu0 %v630_v26 }
  0x3a   : > { %422 = vmatpush2.bf16.msra.mxu0 %v632_v27 }
  0x3b   : > { %423 = vmatprep.subr.bf16.mxu0 %v633_v28 }
  0x3e   : > { %424 = vmatpush2.bf16.msra.mxu0 %v635_v29 }
  0x3f   : > { %425 = vmatprep.subr.bf16.mxu0 %v636_v30 }
  0x42   : > { %426 = vmatpush2.bf16.msra.mxu0 %v638_v31 }
  0x45   : > { %428 = vmatmul.mubr.bf16.vlgmr.msra.gmra.mxu0 %v639_v32 }
  0x89   : > { %v243_v33 = vpop.permute.xlu0 %242 }
  0x8d   : > { %v248_v39 = vpop.permute.xlu0 %247 }
 0x105   : > { %v429_v34 = vpop.f32.mrf.mxu0 }
 0x106   : > { %v430_v35 = vadd.f32 %v429_v34, %v243_v33 }
 0x107   : > { %v431_v36 = vpop.f32.mrf.mxu0 }
 0x108   : > { %v438_v37 = vmax.f32 %v430_v35, 0.0  ;;  %v432_v38 = vadd.f32 %v431_v36, %v243_v33 }
 0x109   : > { %v433_v40 = vpop.f32.mrf.mxu0 }
 0x10a   : > { %442 = vst [vmem:[%s208_s4] sm:$0xff] %v438_v37  ;;  %v439_v41 = vmax.f32 %v432_v38, 0.0  ;;  %v434_v42 = vadd.f32 %v433_v40, %v248_v39 }
 0x10b   : > { %v435_v43 = vpop.f32.mrf.mxu0 }
 0x10c   : > { %443 = vst [vmem:[%s208_s4 + $0x8] sm:$0xff] %v439_v41  ;;  %v440_v44 = vmax.f32 %v434_v42, 0.0  ;;  %v436_v45 = vadd.f32 %v435_v43, %v248_v39 }
 0x10e   : > { %444 = vst [vmem:[%s208_s4 + $0x10] sm:$0xff] %v440_v44  ;;  %v441_v46 = vmax.f32 %v436_v45, 0.0 }
 0x110   : > { %445 = vst [vmem:[%s208_s4 + $0x18] sm:$0xff] %v441_v46 }
 0x111 PF: > { %s13_s14 = sadd.s32 1, %s664_s14   ;;  %s767_s12 = smov %s660_s13 }
 0x112   : > { %p10_p5 = scmp.ge.s32.totalorder %s13_s14, 8   ;;  %s768_s13 = smov %s770_s15 }
 0x114   :  { %12 = sbr.rel (!%p10_p5) target bundleno = 2 (0x2), region = 62 }

// kernel: net_forward.20
= control target key start
LH: loop header
LB: loop body
LE: loop exit
PB: predicated region body
PF: predicated region fallthrough
CT: control target
= control target key end

     0   :  { %s618_s12 = smov 0   ;;  %s620_s13 = smov 0   ;;  %s687_s0 = inlined_call_operand.vmem [shape: bf16[6,144,256], index: 0, kind: input, shape index: {}]   ;;  %s688_s1 = inlined_call_operand.vmem [shape: bf16[16,144], index: 1, kind: input, shape index: {}]   ;;  %s689_s2 = inlined_call_operand.vmem [shape: f32[16,1], index: 2, kind: input, shape index: {}]   ;;  %s690_s3 = inlined_call_operand.vmem [shape: f32[6,16,256], index: 3, kind: output, shape index: {}]  }
   0x1   :  { %s622_s14 = smov 0  }
   0x2 LB: > { %s25_s15 = sadd.s32 1, %s591_s13  ;;  %p488_p0 = scmp.ge.s32.totalorder %s595_s14, 1  ;;  %s595_s14 = sphi %s622_s14, %s13_s14   ;;  %s591_s13 = sphi %s620_s13, %s692_s13   ;;  %s587_s12 = sphi %s618_s12, %s691_s12  }
   0x3   : > { %p27_p1 = scmp.ge.s32.totalorder %s25_s15, 6  ;;  %p158_p2 = scmp.lt.s32.totalorder %s595_s14, 7 }
   0x5   : > { %s694_s15 = smov (%p27_p1, %s25_s15), 0  ;;  %p159_p3 = pnand %p488_p0, %p158_p2 }
   0x6   : > { %p191_p4 = scmp.lt.s32.totalorder (!%p159_p3), %s587_s12, 5 }
   0x7   : > { %162 = sbr.rel (%p159_p3) target bundleno = 257 (0x101), region = 32 }
   0xc   : > { %vm342_vm0 = vcmask 130048   ;;  %v572_v0 = vld [vmem:[%s688_s1 + $0x4] ss:$8 sps:$4 sm:$0xff]   ;;  %s696_s12 = smov (!%p191_p4, %s587_s12), 5  ;;  %v597_v2 = vmov 0  }
   0xd   : > { %v231_v1 = vld [vmem:[%s689_s2] sm:$0xff]  ;;  %542 = vset.pattern.permute.xlu0 %v597_v2  ;;  %512 = vmatprep.mubr.msk.bf16.mxu0 %vm342_vm0, %v572_v0  ;;  %s516_s20 = smul.u32 144, %s696_s12  ;;  %v232_v3 = vld [vmem:[%s689_s2 + $0x8] sm:$0xff]  ;;  %s515_s28 = sshll.u32 %s696_s12, 5 }
   0xe   : > { %235 = vperm.xlu0 %542, %v231_v1   ;;  %v570_v22 = vld [vmem:[%s688_s1] ss:$8 sps:$4 sm:$0xff]   ;;  %s208_s4 = scalar_lea.vmem %s690_s3, %s515_s28 }
   0xf   : > { %s651_s25 = scalar_lea.vmem %s687_s0, %s516_s20 }
  0x10   : > { %v543_v4 = vld [vmem:[%s651_s25 + $0x74] ss:$8 sps:$4 sm:$0xff]   ;;  %v545_v5 = vld [vmem:[%s651_s25 + $0x70] ss:$8 sps:$4 sm:$0xff]   ;;  %v546_v6 = vld [vmem:[%s651_s25 + $0x64] ss:$8 sps:$4 sm:$0xff]  }
  0x11   : > { %346 = vmatprep.subr.bf16.mxu0 %v543_v4  ;;  %v548_v7 = vld [vmem:[%s651_s25 + $0x60] ss:$8 sps:$4 sm:$0xff]   ;;  %v549_v8 = vld [vmem:[%s651_s25 + $0x54] ss:$8 sps:$4 sm:$0xff]   ;;  %v551_v9 = vld [vmem:[%s651_s25 + $0x50] ss:$8 sps:$4 sm:$0xff]  }
  0x12   : > { %240 = vperm.xlu0 %542, %v232_v3   ;;  %347 = vmatpush1.bf16.msra.mxu0 %v545_v5  ;;  %v552_v10 = vld [vmem:[%s651_s25 + $0x44] ss:$8 sps:$4 sm:$0xff]   ;;  %v554_v11 = vld [vmem:[%s651_s25 + $0x40] ss:$8 sps:$4 sm:$0xff]   ;;  %v555_v12 = vld [vmem:[%s651_s25 + $0x34] ss:$8 sps:$4 sm:$0xff]  }
  0x13   : > { %348 = vmatprep.subr.bf16.mxu0 %v546_v6  ;;  %v557_v13 = vld [vmem:[%s651_s25 + $0x30] ss:$8 sps:$4 sm:$0xff]   ;;  %v558_v14 = vld [vmem:[%s651_s25 + $0x24] ss:$8 sps:$4 sm:$0xff]   ;;  %v560_v15 = vld [vmem:[%s651_s25 + $0x20] ss:$8 sps:$4 sm:$0xff]  }
  0x14   : > { %v561_v16 = vld [vmem:[%s651_s25 + $0x14] ss:$8 sps:$4 sm:$0xff]   ;;  %v563_v17 = vld [vmem:[%s651_s25 + $0x10] ss:$8 sps:$4 sm:$0xff]   ;;  %v564_v18 = vld [vmem:[%s651_s25 + $0x4] ss:$8 sps:$4 sm:$0xff]  }
  0x15   : > { %v566_v19 = vld [vmem:[%s651_s25] ss:$8 sps:$4 sm:$0xff]   ;;  %v567_v20 = vld [vmem:[%s651_s25 + $0x84] ss:$8 sps:$4 sm:$0xff]  }
  0x16   : > { %349 = vmatpush1.bf16.msra.mxu0 %v548_v7  ;;  %v569_v21 = vld [vmem:[%s651_s25 + $0x80] ss:$8 sps:$4 sm:$0xff]  }
  0x17   : > { %350 = vmatprep.subr.bf16.mxu0 %v549_v8 }
  0x1a   : > { %351 = vmatpush1.bf16.msra.mxu0 %v551_v9 }
  0x1b   : > { %352 = vmatprep.subr.bf16.mxu0 %v552_v10 }
  0x1e   : > { %353 = vmatpush1.bf16.msra.mxu0 %v554_v11 }
  0x1f   : > { %354 = vmatprep.subr.bf16.mxu0 %v555_v12 }
  0x22   : > { %355 = vmatpush1.bf16.msra.mxu0 %v557_v13 }
  0x23   : > { %356 = vmatprep.subr.bf16.mxu0 %v558_v14 }
  0x26   : > { %357 = vmatpush1.bf16.msra.mxu0 %v560_v15 }
  0x27   : > { %358 = vmatprep.subr.bf16.mxu0 %v561_v16 }
  0x2a   : > { %359 = vmatpush1.bf16.msra.mxu0 %v563_v17 }
  0x2b   : > { %360 = vmatprep.subr.bf16.mxu0 %v564_v18 }
  0x2e   : > { %361 = vmatpush1.bf16.msra.mxu0 %v566_v19 }
  0x2f   : > { %376 = vmatprep.subr.bf16.mxu0 %v567_v20 }
  0x32   : > { %377 = vmatpush2.bf16.msra.mxu0 %v569_v21 }
  0x35   : > { %379 = vmatmul.mubr.bf16.vlgmr.msra.gmra.mxu0 %v570_v22 }
  0x89   : > { %v236_v23 = vpop.permute.xlu0 %235 }
  0x8d   : > { %v241_v29 = vpop.permute.xlu0 %240 }
  0xf5   : > { %v380_v24 = vpop.f32.mrf.mxu0 }
  0xf6   : > { %v381_v25 = vadd.f32 %v380_v24, %v236_v23 }
  0xf7   : > { %v382_v26 = vpop.f32.mrf.mxu0 }
  0xf8   : > { %v389_v27 = vmax.f32 %v381_v25, 0.0  ;;  %v383_v28 = vadd.f32 %v382_v26, %v236_v23 }
  0xf9   : > { %v384_v30 = vpop.f32.mrf.mxu0 }
  0xfa   : > { %393 = vst [vmem:[%s208_s4] sm:$0xff] %v389_v27  ;;  %v390_v31 = vmax.f32 %v383_v28, 0.0  ;;  %v385_v32 = vadd.f32 %v384_v30, %v241_v29 }
  0xfb   : > { %v386_v33 = vpop.f32.mrf.mxu0 }
  0xfc   : > { %394 = vst [vmem:[%s208_s4 + $0x8] sm:$0xff] %v390_v31  ;;  %v391_v34 = vmax.f32 %v385_v32, 0.0  ;;  %v387_v35 = vadd.f32 %v386_v33, %v241_v29 }
  0xfe   : > { %395 = vst [vmem:[%s208_s4 + $0x10] sm:$0xff] %v391_v34  ;;  %v392_v36 = vmax.f32 %v387_v35, 0.0 }
 0x100   : > { %396 = vst [vmem:[%s208_s4 + $0x18] sm:$0xff] %v392_v36 }
 0x101 PF: > { %s13_s14 = sadd.s32 1, %s595_s14   ;;  %s691_s12 = smov %s591_s13 }
 0x102   : > { %p10_p5 = scmp.ge.s32.totalorder %s13_s14, 8   ;;  %s692_s13 = smov %s694_s15 }
 0x104   :  { %12 = sbr.rel (!%p10_p5) target bundleno = 2 (0x2), region = 62 }

// kernel: net_forward.22
= control target key start
LH: loop header
LB: loop body
LE: loop exit
PB: predicated region body
PF: predicated region fallthrough
CT: control target
= control target key end

     0   :  { %s853_s12 = smov 0   ;;  %s855_s13 = smov 0   ;;  %s966_s0 = inlined_call_operand.vmem [shape: bf16[6,400,128], index: 0, kind: input, shape index: {}]   ;;  %s967_s1 = inlined_call_operand.vmem [shape: bf16[32,400], index: 1, kind: input, shape index: {}]   ;;  %s968_s2 = inlined_call_operand.vmem [shape: f32[32,1], index: 2, kind: input, shape index: {}]   ;;  %s969_s3 = inlined_call_operand.vmem [shape: f32[6,32,128], index: 3, kind: output, shape index: {}]  }
   0x1   :  { %s857_s14 = smov 0  }
   0x2 LB: > { %s25_s15 = sadd.s32 1, %s826_s13  ;;  %p673_p0 = scmp.ge.s32.totalorder %s830_s14, 1  ;;  %s830_s14 = sphi %s857_s14, %s13_s14   ;;  %s826_s13 = sphi %s855_s13, %s971_s13   ;;  %s822_s12 = sphi %s853_s12, %s970_s12  }
   0x3   : > { %p27_p1 = scmp.ge.s32.totalorder %s25_s15, 6  ;;  %p156_p2 = scmp.lt.s32.totalorder %s830_s14, 7 }
   0x5   : > { %s973_s15 = smov (%p27_p1, %s25_s15), 0  ;;  %p157_p3 = pnand %p673_p0, %p156_p2 }
   0x6   : > { %p186_p4 = scmp.lt.s32.totalorder (!%p157_p3), %s822_s12, 5 }
   0x7   : > { %160 = sbr.rel (%p157_p3) target bundleno = 266 (0x10a), region = 32 }
   0xc   : > { %v832_v0 = vmov 0   ;;  %v797_v1 = vld [vmem:[%s967_s1 + $0x4] ss:$16 sps:$4 sm:$0xff]   ;;  %vm473_vm0 = vcmask 130048   ;;  %s975_s12 = smov (!%p186_p4, %s822_s12), 5  ;;  %v262_v5 = vld [vmem:[%s968_s2 + $0x8] sm:$0xff] }
   0xd   : > { %529 = vmatprep.subr.bf16.mxu1 %v832_v0  ;;  %769 = vset.pattern.permute.xlu0 %v832_v0  ;;  %v801_v2 = vld [vmem:[%s967_s1 + $0xc] ss:$16 sps:$4 sm:$0xff]   ;;  %s743_s20 = smul.u32 200, %s975_s12  ;;  %v261_v3 = vld [vmem:[%s968_s2] sm:$0xff]  ;;  %v263_v4 = vld [vmem:[%s968_s2 + $0x10] sm:$0xff]  ;;  %s714_s21 = sshll.u32 %s975_s12, 5 }
   0xe   : > { %770 = vset.pattern.permute.xlu1 %v832_v0  ;;  %512 = vmatprep.mubr.bf16.mxu0 %v797_v1  ;;  %v264_v7 = vld [vmem:[%s968_s2 + $0x18] sm:$0xff]  ;;  %v795_v31 = vld [vmem:[%s967_s1] ss:$16 sps:$4 sm:$0xff]   ;;  %v802_v33 = vld [vmem:[%s967_s1 + $0x24] ss:$16 sps:$4 sm:$0xff]   ;;  %s201_s24 = scalar_lea.vmem %s969_s3, %s714_s21 }
   0xf   : > { %710 = vmatprep.mubr.msk.bf16.mxu1 %vm473_vm0, %v801_v2  ;;  %s893_s27 = scalar_lea.vmem %s966_s0, %s743_s20  ;;  %267 = vperm.xlu0 %769, %v261_v3   ;;  %v799_v34 = vld [vmem:[%s967_s1 + $0x8] ss:$16 sps:$4 sm:$0xff]   ;;  %v805_v35 = vld [vmem:[%s967_s1 + $0x2c] ss:$16 sps:$4 sm:$0xff]   ;;  %v804_v36 = vld [vmem:[%s967_s1 + $0x20] ss:$16 sps:$4 sm:$0xff]  }
  0x10   : > { %277 = vperm.xlu1 %770, %v263_v4   ;;  %v771_v6 = vld [vmem:[%s893_s27 + $0x78] sm:$0xff]   ;;  %v774_v10 = vld [vmem:[%s893_s27 + $0x70] sm:$0xff]   ;;  %v777_v13 = vld [vmem:[%s893_s27 + $0x68] sm:$0xff]  }
  0x11   : > { %v772_v8 = vld [vmem:[%s893_s27 + $0xb8] sm:$0xff]   ;;  %715 = vmatprep.subr.bf16.mxu0 %v771_v6  ;;  %v775_v11 = vld [vmem:[%s893_s27 + $0xb0] sm:$0xff]   ;;  %v778_v14 = vld [vmem:[%s893_s27 + $0xa8] sm:$0xff]  }
  0x12   : > { %v773_v9 = vld [vmem:[%s893_s27 + $0x38] sm:$0xff]   ;;  %530 = vmatpush1.bf16.msra.mxu1 %v772_v8  ;;  %v776_v12 = vld [vmem:[%s893_s27 + $0x30] sm:$0xff]   ;;  %v779_v15 = vld [vmem:[%s893_s27 + $0x28] sm:$0xff]  }
  0x13   : > { %272 = vperm.xlu0 %769, %v262_v5   ;;  %716 = vmatpush3.bf16.msra.mxu0 %v773_v9  ;;  %v780_v16 = vld [vmem:[%s893_s27 + $0x60] sm:$0xff]   ;;  %v783_v19 = vld [vmem:[%s893_s27 + $0x58] sm:$0xff]   ;;  %v786_v22 = vld [vmem:[%s893_s27 + $0x50] sm:$0xff]  }
  0x14   : > { %531 = vmatprep.subr.bf16.mxu1 %v832_v0  ;;  %717 = vmatprep.subr.bf16.mxu0 %v774_v10  ;;  %v781_v17 = vld [vmem:[%s893_s27 + $0xa0] sm:$0xff]   ;;  %v784_v20 = vld [vmem:[%s893_s27 + $0x98] sm:$0xff]   ;;  %v787_v23 = vld [vmem:[%s893_s27 + $0x90] sm:$0xff]  }
  0x15   : > { %282 = vperm.xlu1 %770, %v264_v7   ;;  %v782_v18 = vld [vmem:[%s893_s27 + $0x20] sm:$0xff]   ;;  %v785_v21 = vld [vmem:[%s893_s27 + $0x18] sm:$0xff]   ;;  %v788_v24 = vld [vmem:[%s893_s27 + $0x10] sm:$0xff]  }
  0x16   : > { %532 = vmatpush1.bf16.msra.mxu1 %v775_v11  ;;  %v789_v25 = vld [vmem:[%s893_s27 + $0x48] sm:$0xff]   ;;  %v792_v28 = vld [vmem:[%s893_s27 + $0x40] sm:$0xff]  }
  0x17   : > { %718 = vmatpush3.bf16.msra.mxu0 %v776_v12  ;;  %533 = vmatprep.subr.bf16.mxu1 %v832_v0  ;;  %v790_v26 = vld [vmem:[%s893_s27 + $0x88] sm:$0xff]   ;;  %v793_v29 = vld [vmem:[%s893_s27 + $0x80] sm:$0xff]  }
  0x18   : > { %719 = vmatprep.subr.bf16.mxu0 %v777_v13  ;;  %v791_v27 = vld [vmem:[%s893_s27 + $0x8] sm:$0xff]   ;;  %v794_v30 = vld [vmem:[%s893_s27] sm:$0xff]  }
  0x19   : > { %v798_v32 = vld [vmem:[%s893_s27 + $0xc0] sm:$0xff]   ;;  %v807_v37 = vld [vmem:[%s967_s1 + $0x28] ss:$16 sps:$4 sm:$0xff]  }
  0x1a   : > { %534 = vmatpush1.bf16.msra.mxu1 %v778_v14 }
  0x1b   : > { %720 = vmatpush3.bf16.msra.mxu0 %v779_v15  ;;  %535 = vmatprep.subr.bf16.mxu1 %v832_v0 }
  0x1c   : > { %721 = vmatprep.subr.bf16.mxu0 %v780_v16 }
  0x1e   : > { %536 = vmatpush1.bf16.msra.mxu1 %v781_v17 }
  0x1f   : > { %722 = vmatpush3.bf16.msra.mxu0 %v782_v18  ;;  %537 = vmatprep.subr.bf16.mxu1 %v832_v0 }
  0x20   : > { %723 = vmatprep.subr.bf16.mxu0 %v783_v19 }
  0x22   : > { %538 = vmatpush1.bf16.msra.mxu1 %v784_v20 }
  0x23   : > { %724 = vmatpush3.bf16.msra.mxu0 %v785_v21  ;;  %539 = vmatprep.subr.bf16.mxu1 %v832_v0 }
  0x24   : > { %725 = vmatprep.subr.bf16.mxu0 %v786_v22 }
  0x26   : > { %540 = vmatpush1.bf16.msra.mxu1 %v787_v23 }
  0x27   : > { %726 = vmatpush3.bf16.msra.mxu0 %v788_v24  ;;  %541 = vmatprep.subr.bf16.mxu1 %v832_v0 }
  0x28   : > { %727 = vmatprep.subr.bf16.mxu0 %v789_v25 }
  0x2a   : > { %542 = vmatpush1.bf16.msra.mxu1 %v790_v26 }
  0x2b   : > { %728 = vmatpush3.bf16.msra.mxu0 %v791_v27  ;;  %543 = vmatprep.subr.bf16.mxu1 %v832_v0 }
  0x2c   : > { %729 = vmatprep.subr.bf16.mxu0 %v792_v28 }
  0x2e   : > { %544 = vmatpush1.bf16.msra.mxu1 %v793_v29 }
  0x2f   : > { %730 = vmatpush3.bf16.msra.mxu0 %v794_v30  ;;  %559 = vmatprep.subr.bf16.mxu1 %v832_v0 }
  0x32   : > { %513 = vmatmul.mubr.bf16.vlgmr.msra.gmra.mxu0 %v795_v31  ;;  %560 = vmatpush2.bf16.msra.mxu1 %v798_v32 }
  0x33   : > { %520 = vmatprep.mubr.bf16.mxu0 %v802_v33 }
  0x35   : > { %562 = vmatmul.mubr.bf16.vlgmr.msra.gmra.mxu1 %v799_v34 }
  0x36   : > { %711 = vmatprep.mubr.msk.bf16.mxu1 %vm473_vm0, %v805_v35 }
  0x3a   : > { %521 = vmatmul.mubr.bf16.gmra.mxu0 %v804_v36 }
  0x3d   : > { %570 = vmatmul.mubr.bf16.gmra.mxu1 %v807_v37 }
  0x8a   : > { %v268_v39 = vpop.permute.xlu0 %267 }
  0x8b   : > { %v278_v55 = vpop.permute.xlu1 %277 }
  0x8e   : > { %v273_v47 = vpop.permute.xlu0 %272 }
  0x90   : > { %v283_v4 = vpop.permute.xlu1 %282 }
  0xf2   : > { %v731_v38 = vpop.f32.mrf.mxu0 }
  0xf4   : > { %v732_v40 = vpop.f32.mrf.mxu0 }
  0xf5   : > { %v733_v41 = vadd.f32 %v732_v40, %v731_v38  ;;  %v563_v42 = vpop.f32.mrf.mxu1 }
  0xf6   : > { %v734_v43 = vpop.f32.mrf.mxu0 }
  0xf7   : > { %v515_v44 = vadd.f32 %v733_v41, %v268_v39  ;;  %v565_v45 = vpop.f32.mrf.mxu1 }
  0xf8   : > { %v735_v46 = vpop.f32.mrf.mxu0 }
  0xf9   : > { %v564_v48 = vadd.f32 %v563_v42, %v515_v44  ;;  %v736_v49 = vadd.f32 %v735_v46, %v734_v43  ;;  %v566_v50 = vpop.f32.mrf.mxu1 }
  0xfa   : > { %v737_v51 = vpop.f32.mrf.mxu0 }
  0xfb   : > { %v578_v52 = vmax.f32 %v564_v48, 0.0  ;;  %v518_v53 = vadd.f32 %v736_v49, %v273_v47  ;;  %v568_v54 = vpop.f32.mrf.mxu1 }
  0xfc   : > { %v738_v56 = vpop.f32.mrf.mxu0 }
  0xfd   : > { %582 = vst [vmem:[%s201_s24] sm:$0xff] %v578_v52  ;;  %v567_v57 = vadd.f32 %v566_v50, %v518_v53  ;;  %v739_v58 = vadd.f32 %v738_v56, %v737_v51  ;;  %v571_v59 = vpop.f32.mrf.mxu1 }
  0xfe   : > { %v740_v60 = vpop.f32.mrf.mxu0 }
  0xff   : > { %v579_v61 = vmax.f32 %v567_v57, 0.0  ;;  %v523_v62 = vadd.f32 %v739_v58, %v278_v55  ;;  %v573_v63 = vpop.f32.mrf.mxu1 }
 0x100   : > { %v741_v0 = vpop.f32.mrf.mxu0 }
 0x101   : > { %583 = vst [vmem:[%s201_s24 + $0x8] sm:$0xff] %v579_v61  ;;  %v572_v1 = vadd.f32 %v571_v59, %v523_v62  ;;  %v742_v2 = vadd.f32 %v741_v0, %v740_v60  ;;  %v574_v3 = vpop.f32.mrf.mxu1 }
 0x103   : > { %v580_v5 = vmax.f32 %v572_v1, 0.0  ;;  %v526_v6 = vadd.f32 %v742_v2, %v283_v4  ;;  %v576_v7 = vpop.f32.mrf.mxu1 }
 0x105   : > { %584 = vst [vmem:[%s201_s24 + $0x10] sm:$0xff] %v580_v5  ;;  %v575_v8 = vadd.f32 %v574_v3, %v526_v6 }
 0x107   : > { %v581_v9 = vmax.f32 %v575_v8, 0.0 }
 0x109   : > { %585 = vst [vmem:[%s201_s24 + $0x18] sm:$0xff] %v581_v9 }
 0x10a PF: > { %s13_s14 = sadd.s32 1, %s830_s14   ;;  %s970_s12 = smov %s826_s13 }
 0x10b   : > { %p10_p5 = scmp.ge.s32.totalorder %s13_s14, 8   ;;  %s971_s13 = smov %s973_s15 }
 0x10d   :  { %12 = sbr.rel (!%p10_p5) target bundleno = 2 (0x2), region = 62 }

// kernel: net_forward.23
= control target key start
LH: loop header
LB: loop body
LE: loop exit
PB: predicated region body
PF: predicated region fallthrough
CT: control target
= control target key end

     0   :  { %s781_s12 = smov 0   ;;  %s783_s13 = smov 0   ;;  %s870_s0 = inlined_call_operand.vmem [shape: bf16[6,288,128], index: 0, kind: input, shape index: {}]   ;;  %s871_s1 = inlined_call_operand.vmem [shape: bf16[32,288], index: 1, kind: input, shape index: {}]   ;;  %s872_s2 = inlined_call_operand.vmem [shape: f32[32,1], index: 2, kind: input, shape index: {}]   ;;  %s873_s3 = inlined_call_operand.vmem [shape: f32[6,32,128], index: 3, kind: output, shape index: {}]  }
   0x1   :  { %s785_s14 = smov 0  }
   0x2 LB: > { %s25_s15 = sadd.s32 1, %s754_s13  ;;  %p609_p0 = scmp.ge.s32.totalorder %s758_s14, 1  ;;  %s758_s14 = sphi %s785_s14, %s13_s14   ;;  %s754_s13 = sphi %s783_s13, %s875_s13   ;;  %s750_s12 = sphi %s781_s12, %s874_s12  }
   0x3   : > { %p27_p1 = scmp.ge.s32.totalorder %s25_s15, 6  ;;  %p156_p2 = scmp.lt.s32.totalorder %s758_s14, 7 }
   0x5   : > { %s877_s15 = smov (%p27_p1, %s25_s15), 0  ;;  %p157_p3 = pnand %p609_p0, %p156_p2 }
   0x6   : > { %p186_p4 = scmp.lt.s32.totalorder (!%p157_p3), %s750_s12, 5 }
   0x7   : > { %160 = sbr.rel (%p157_p3) target bundleno = 265 (0x109), region = 32 }
   0xc   : > { %vm409_vm0 = vcmask 261120   ;;  %v729_v0 = vld [vmem:[%s871_s1 + $0x4] ss:$12 sps:$4 sm:$0xff]   ;;  %s879_s12 = smov (!%p186_p4, %s750_s12), 5  ;;  %v731_v1 = vld [vmem:[%s871_s1 + $0x8] ss:$12 sps:$4 sm:$0xff]  }
   0xd   : > { %448 = vmatprep.mubr.bf16.mxu0 %v729_v0  ;;  %s682_s20 = smul.u32 144, %s879_s12  ;;  %678 = vmatprep.mubr.msk.bf16.mxu1 %vm409_vm0, %v731_v1  ;;  %v760_v2 = vmov 0   ;;  %v247_v3 = vld [vmem:[%s872_s2] sm:$0xff]  ;;  %v249_v4 = vld [vmem:[%s872_s2 + $0x10] sm:$0xff]  ;;  %v248_v5 = vld [vmem:[%s872_s2 + $0x8] sm:$0xff]  ;;  %s641_s17 = sshll.u32 %s879_s12, 5 }
   0xe   : > { %708 = vset.pattern.permute.xlu0 %v760_v2  ;;  %709 = vset.pattern.permute.xlu1 %v760_v2  ;;  %v250_v6 = vld [vmem:[%s872_s2 + $0x18] sm:$0xff]  ;;  %v732_v22 = vld [vmem:[%s871_s1 + $0x20] ss:$12 sps:$4 sm:$0xff]  }
   0xf   : > { %253 = vperm.xlu0 %708, %v247_v3   ;;  %s818_s27 = scalar_lea.vmem %s870_s0, %s682_s20  ;;  %263 = vperm.xlu1 %709, %v249_v4   ;;  %v727_v26 = vld [vmem:[%s871_s1] ss:$12 sps:$4 sm:$0xff]   ;;  %v733_v27 = vld [vmem:[%s871_s1 + $0x1c] ss:$12 sps:$4 sm:$0xff]   ;;  %v735_v28 = vld [vmem:[%s871_s1 + $0x18] ss:$12 sps:$4 sm:$0xff]   ;;  %s201_s20 = scalar_lea.vmem %s873_s3, %s641_s17 }
  0x10   : > { %v710_v7 = vld [vmem:[%s818_s27 + $0x78] sm:$0xff]   ;;  %v712_v9 = vld [vmem:[%s818_s27 + $0x70] sm:$0xff]   ;;  %v714_v11 = vld [vmem:[%s818_s27 + $0x68] sm:$0xff]  }
  0x11   : > { %v711_v8 = vld [vmem:[%s818_s27 + $0x38] sm:$0xff]   ;;  %642 = vmatprep.subr.bf16.mxu0 %v710_v7  ;;  %v713_v10 = vld [vmem:[%s818_s27 + $0x30] sm:$0xff]   ;;  %v715_v12 = vld [vmem:[%s818_s27 + $0x28] sm:$0xff]  }
  0x12   : > { %643 = vmatpush3.bf16.msra.mxu0 %v711_v8  ;;  %v716_v13 = vld [vmem:[%s818_s27 + $0x60] sm:$0xff]   ;;  %v718_v15 = vld [vmem:[%s818_s27 + $0x58] sm:$0xff]   ;;  %v725_v17 = vld [vmem:[%s818_s27 + $0x88] sm:$0xff]  }
  0x13   : > { %258 = vperm.xlu0 %708, %v248_v5   ;;  %268 = vperm.xlu1 %709, %v250_v6   ;;  %v717_v14 = vld [vmem:[%s818_s27 + $0x20] sm:$0xff]   ;;  %v719_v16 = vld [vmem:[%s818_s27 + $0x18] sm:$0xff]   ;;  %v720_v18 = vld [vmem:[%s818_s27 + $0x50] sm:$0xff]  }
  0x14   : > { %644 = vmatprep.subr.bf16.mxu0 %v712_v9  ;;  %674 = vmatprep.subr.bf16.mxu1 %v725_v17  ;;  %v730_v19 = vld [vmem:[%s818_s27 + $0x80] sm:$0xff]   ;;  %v721_v20 = vld [vmem:[%s818_s27 + $0x10] sm:$0xff]   ;;  %v722_v21 = vld [vmem:[%s818_s27 + $0x48] sm:$0xff]  }
  0x15   : > { %675 = vmatpush3.bf16.msra.mxu1 %v725_v17  ;;  %v723_v23 = vld [vmem:[%s818_s27 + $0x8] sm:$0xff]   ;;  %v724_v24 = vld [vmem:[%s818_s27 + $0x40] sm:$0xff]  }
  0x16   : > { %645 = vmatpush3.bf16.msra.mxu0 %v713_v10  ;;  %676 = vmatprep.subr.bf16.mxu1 %v730_v19  ;;  %v726_v25 = vld [vmem:[%s818_s27] sm:$0xff]  }
  0x17   : > { %646 = vmatprep.subr.bf16.mxu0 %v714_v11 }
  0x19   : > { %677 = vmatpush3.bf16.msra.mxu1 %v730_v19 }
  0x1a   : > { %647 = vmatpush3.bf16.msra.mxu0 %v715_v12 }
  0x1b   : > { %648 = vmatprep.subr.bf16.mxu0 %v716_v13 }
  0x1c   : > { %679 = vmatmul.mubr.msk.bf16.vlgmr.msra.gmra.mxu1 %vm409_vm0, %v732_v22 }
  0x1e   : > { %649 = vmatpush3.bf16.msra.mxu0 %v717_v14 }
  0x1f   : > { %650 = vmatprep.subr.bf16.mxu0 %v718_v15 }
  0x22   : > { %651 = vmatpush3.bf16.msra.mxu0 %v719_v16 }
  0x23   : > { %652 = vmatprep.subr.bf16.mxu0 %v720_v18 }
  0x26   : > { %653 = vmatpush3.bf16.msra.mxu0 %v721_v20 }
  0x27   : > { %654 = vmatprep.subr.bf16.mxu0 %v722_v21 }
  0x2a   : > { %655 = vmatpush3.bf16.msra.mxu0 %v723_v23 }
  0x2b   : > { %656 = vmatprep.subr.bf16.mxu0 %v724_v24 }
  0x2e   : > { %657 = vmatpush3.bf16.msra.mxu0 %v726_v25 }
  0x31   : > { %449 = vmatmul.mubr.bf16.vlgmr.msra.gmra.mxu0 %v727_v26 }
  0x32   : > { %456 = vmatprep.mubr.bf16.mxu0 %v733_v27 }
  0x39   : > { %457 = vmatmul.mubr.bf16.gmra.mxu0 %v735_v28 }
  0x8a   : > { %v254_v30 = vpop.permute.xlu0 %253  ;;  %v264_v46 = vpop.permute.xlu1 %263 }
  0x8e   : > { %v259_v39 = vpop.permute.xlu0 %258  ;;  %v269_v56 = vpop.permute.xlu1 %268 }
  0xdc   : > { %v680_v29 = vpop.f32.mrf.mxu1 }
  0xde   : > { %v499_v32 = vpop.f32.mrf.mxu1 }
  0xe0   : > { %v681_v36 = vpop.f32.mrf.mxu1 }
  0xe2   : > { %v502_v43 = vpop.f32.mrf.mxu1 }
  0xf1   : > { %v658_v31 = vpop.f32.mrf.mxu0 }
  0xf3   : > { %v659_v33 = vpop.f32.mrf.mxu0 }
  0xf4   : > { %v660_v34 = vadd.f32 %v659_v33, %v658_v31 }
  0xf5   : > { %v661_v35 = vpop.f32.mrf.mxu0 }
  0xf6   : > { %v451_v37 = vadd.f32 %v660_v34, %v254_v30 }
  0xf7   : > { %v662_v38 = vpop.f32.mrf.mxu0 }
  0xf8   : > { %v663_v40 = vadd.f32 %v662_v38, %v661_v35  ;;  %v500_v41 = vadd.f32 %v499_v32, %v451_v37 }
  0xf9   : > { %v664_v42 = vpop.f32.mrf.mxu0 }
  0xfa   : > { %v514_v44 = vmax.f32 %v500_v41, 0.0  ;;  %v454_v45 = vadd.f32 %v663_v40, %v259_v39 }
  0xfb   : > { %v665_v47 = vpop.f32.mrf.mxu0 }
  0xfc   : > { %518 = vst [vmem:[%s201_s20] sm:$0xff] %v514_v44  ;;  %v666_v48 = vadd.f32 %v665_v47, %v664_v42  ;;  %v503_v49 = vadd.f32 %v502_v43, %v454_v45 }
  0xfd   : > { %v667_v50 = vpop.f32.mrf.mxu0 }
  0xfe   : > { %v459_v51 = vadd.f32 %v666_v48, %v264_v46  ;;  %v515_v52 = vmax.f32 %v503_v49, 0.0 }
  0xff   : > { %v668_v53 = vpop.f32.mrf.mxu0 }
 0x100   : > { %v508_v54 = vadd.f32 %v680_v29, %v459_v51  ;;  %519 = vst [vmem:[%s201_s20 + $0x8] sm:$0xff] %v515_v52  ;;  %v669_v55 = vadd.f32 %v668_v53, %v667_v50 }
 0x102   : > { %v516_v57 = vmax.f32 %v508_v54, 0.0  ;;  %v462_v58 = vadd.f32 %v669_v55, %v269_v56 }
 0x104   : > { %520 = vst [vmem:[%s201_s20 + $0x10] sm:$0xff] %v516_v57  ;;  %v511_v59 = vadd.f32 %v681_v36, %v462_v58 }
 0x106   : > { %v517_v60 = vmax.f32 %v511_v59, 0.0 }
 0x108   : > { %521 = vst [vmem:[%s201_s20 + $0x18] sm:$0xff] %v517_v60 }
 0x109 PF: > { %s13_s14 = sadd.s32 1, %s758_s14   ;;  %s874_s12 = smov %s754_s13 }
 0x10a   : > { %p10_p5 = scmp.ge.s32.totalorder %s13_s14, 8   ;;  %s875_s13 = smov %s877_s15 }
 0x10c   :  { %12 = sbr.rel (!%p10_p5) target bundleno = 2 (0x2), region = 62 }

// kernel: custom-call.35
= control target key start
LH: loop header
LB: loop body
LE: loop exit
PB: predicated region body
PF: predicated region fallthrough
CT: control target
= control target key end

     0   :  { %5 = vsyncpa [#allocation6], 0  ;;  %s909_s0 = inlined_call_operand.vmem [shape: f32[2,4,4], index: 0, kind: input, shape index: {}]   ;;  %s910_s1 = inlined_call_operand.vmem [shape: f32[2,4,4], index: 1, kind: output, shape index: {0}]   ;;  %s911_s2 = inlined_call_operand.hbm [shape: s32[2,4], index: 2, kind: output, shape index: {1}]   ;;  %s912_s3 = inlined_call_operand.vmem [shape: s32[2,4], index: 3, kind: output, shape index: {2}]  }
   0x1   :  { %7 = vsyncpa [#allocation6 + $0x1], 0  ;;  %s726_s12 = smov 0   ;;  %s728_s13 = smov 0  }
   0x2   :  { %s730_s14 = smov 0   ;;  %s732_s15 = smov 0  }
   0x3 LB: > { %s747_s16 = sadd.s32 4294967295, %s698_s15   ;;  %s563_s17 = sadd.s32 4294967294, %s698_s15   ;;  %s698_s15 = sphi %s732_s15, %s920_s15   ;;  %s694_s14 = sphi %s730_s14, %s919_s14   ;;  %s690_s13 = sphi %s728_s13, %s918_s13   ;;  %s686_s12 = sphi %s726_s12, %s917_s12  }
   0x4   : > { %s751_s18 = sadd.s32 1, %s698_s15   ;;  %s17_s19 = sshrl.u32 %s698_s15, 3 }
   0x5   : > { %s18_s20 = sshrl.u32 %s751_s18, 3  ;;  %s22_s21 = sadd.s32 1, %s694_s14 }
   0x6   : > { %s19_s22 = ssub.s32 %s17_s19, %s18_s20  ;;  %p32_p0 = scmp.ne.s32.totalorder %s694_s14, %s690_s13 }
   0x7   : > { %p20_p1 = scmp.eq.s32.totalorder %s19_s22, 0  ;;  %p33_p2 = scmp.eq.s32.totalorder %s747_s16, 1 }
   0x8   : > { %p38_p3 = scmp.ne.s32.totalorder %s690_s13, %s686_s12  ;;  %p39_p4 = scmp.eq.s32.totalorder %s563_s17, 1 }
   0x9   : > { %s762_s23 = scalar_select %p20_p1, %s694_s14, %s22_s21  }
   0xa   : > { %p764_p5 = por %p33_p2, %p32_p0  ;;  %p768_p6 = por %p39_p4, %p38_p3 }
   0xb   : > { %p565_p7 = scmp.ge.s32.totalorder %s698_s15, 2 }
   0xc   : > { %s85_s26 = sand.u32 (!%p565_p7), 1, %s698_s15   ;;  %s567_s27 = sshll.u32 (!%p565_p7), %s698_s15, 2 }
   0xd   : > { %83 = sbr.rel (%p565_p7) target bundleno = 20 (0x14), region = 16  ;;  %s566_s28 = sshll.u32 (!%p565_p7), %s85_s26, 2 }
   0xe   : > { %s89_s4 = scalar_lea.vmem (!%p565_p7), %s909_s0, %s567_s27  ;;  %s87_s5 = scalar_lea.vmem (!%p565_p7), [#allocation1], %s566_s28 }
  0x12   : > { %v106_v0 = vld [vmem:[%s89_s4] sm:$0xf] }
  0x13   : > { %107 = vst [vmem:[%s87_s5] sm:$0xf] %v106_v0 }
  0x14 PF: > { %p568_p8 = scmp.ge.s32.totalorder %s698_s15, 1  ;;  %p124_p9 = scmp.lt.s32.totalorder %s698_s15, 3 }
  0x16   : > { %p125_p10 = pnand %p568_p8, %p124_p9 }
  0x18   : > { %128 = sbr.rel (%p125_p10) target bundleno = 446 (0x1be), region = 50 }
  0x1d   : > { %s135_s6 = sand.u32 1, %s747_s16   ;;  %s146_s7 = sand.u32 1, %s690_s13   ;;  %v169_v1 = vlaneseq  ;;  %v704_v4 = vmov 0  }
  0x1e   : > { %s784_s8 = sshll.u32 %s135_s6, 2  ;;  %s788_s9 = sshll.u32 %s146_s7, 1 }
  0x1f   : > { %v791_v2 = vshrl.u32 %v169_v1, 7  ;;  %s137_s10 = scalar_lea.vmem [#allocation1], %s784_s8  ;;  %s164_s11 = sand.u32 7, %s747_s16  }
  0x20   : > { %v158_v3 = vld [vmem:[%s137_s10] sm:$0xf]  ;;  %s796_s17 = scalar_lea.vmem [#allocation4], %s164_s11  ;;  %s141_s19 = scalar_lea.vmem [#allocation3], %s784_s8 }
  0x21   : > { %159 = vst [vmem:[#allocation0] sm:$0xf] %v158_v3  ;;  %173 = vst [vmem:[#allocation9] sm:$0xff] %v791_v2  ;;  %s148_s20 = scalar_lea.vmem [#allocation5], %s788_s9  ;;  %s154_s21 = scalar_lea.vmem [#allocation8], %s788_s9 }
  0x22   : > { %168 = vst [vmem:[%s796_s17] sm:$0x1] %v704_v4  ;;  %s802_s22 = scalar_lea.vmem [#allocation7], %s164_s11  ;;  %s804_s26 = smov 0  }
  0x28   : > { %v162_v5 = vld [vmem:[#allocation0] sm:$0xff] }
  0x29   : > { %163 = vst [vmem:[#allocation2] sm:$0xff] %v162_v5 }
  0x2a LB: >> { %vm189_vm0 = vcmp.lt.s32.totalorder %v791_v2, 4  ;;  %v811_v8 = vstv %s702_s26  ;;  %s230_s27 = ssub.s32 128, %s702_s26  ;;  %v236_v38 = vand.u32 127, %v169_v1  ;;  %v239_v40 = vld [vmem:[%s796_s17] ss:$0 sm:$0xff]  ;;  %s242_s28 = scalar_lea.vmem [#allocation2], %s702_s26  ;;  %s702_s26 = sphi %s804_s26, %s179_s26  }
  0x2b   : >> { %vm188_vm1 = vcmp.ge.s32.totalorder %v791_v2, %v811_v8  ;;  %s248_s30 = scalar_lea.vmem [#allocation9], %s702_s26  ;;  %vm268_vm15 = vcmp.gt.s32.totalorder %v791_v2, %v811_v8  ;;  %s179_s26 = sadd.s32 1, %s702_s26  }
  0x2c   : >> { %vm190_vm3 = vmand %vm188_vm1, %vm189_vm0  ;;  %vm260_vm12 = vcmp.gt.s32.totalorder %v236_v38, %v811_v8  ;;  %vm237_vm13 = vcmp.eq.s32.totalorder %v236_v38, %v811_v8  ;;  %v250_v42 = vld [vmem:[%s248_s30] ss:$0 sm:$0xff]  ;;  %p176_p11 = scmp.ge.s32.totalorder %s179_s26, 4  }
  0x2d   : >> { %vm272_vm1 = vmand %vm268_vm15, %vm237_vm13  ;;  %s913_s6 = sshrl.u32 (%p176_p11), %s747_s16, 3  ;;  %s577_s10 = sshll.u32 (%p176_p11), %s747_s16, 2 }
  0x2e   : > { %s578_s11 = sshll.u32 (%p176_p11), %s913_s6, 5 }
  0x30   : >> { %v184_v6 = vld [vmem:[#allocation2] sm:$0xff]  ;;  %v244_v41 = vld [vmem:[%s242_s28] ss:$0 sm:$0xff] }
  0x31   : >> { %v185_v7 = vand.u32 2147483647, %v184_v6 }
  0x33   : >> { %vm573_vm2 = vcmp.gt.f32.partialorder %v185_v7, -inf }
  0x34   : >> { %vm192_vm4 = vmand %vm190_vm3, %vm573_vm2 }
  0x35   : >> { %v193_v9 = vsel %vm192_vm4, %v791_v2, %v811_v8  ;;  %v194_v10 = vsel %vm192_vm4, %v185_v7, -inf }
  0x36   : >> { %v195_v11 = vrot.slane %v194_v10, 1  ;;  %v196_v12 = vrot.slane %v193_v9, 1 }
  0x38   : >> { %vm197_vm5 = vcmp.ge.f32.partialorder %v195_v11, %v194_v10  ;;  %v200_v13 = vrot.slane %v195_v11, 1  ;;  %v201_v14 = vrot.slane %v196_v12, 1 }
  0x39   : >> { %v198_v15 = vsel %vm197_vm5, %v195_v11, %v194_v10  ;;  %v199_v16 = vsel %vm197_vm5, %v196_v12, %v193_v9 }
  0x3a   : >> { %vm202_vm6 = vcmp.ge.f32.partialorder %v200_v13, %v198_v15  ;;  %v205_v17 = vrot.slane %v200_v13, 1  ;;  %v206_v18 = vrot.slane %v201_v14, 1 }
  0x3b   : >> { %v203_v19 = vsel %vm202_vm6, %v200_v13, %v198_v15  ;;  %v204_v20 = vsel %vm202_vm6, %v201_v14, %v199_v16 }
  0x3c   : >> { %vm207_vm7 = vcmp.ge.f32.partialorder %v205_v17, %v203_v19  ;;  %v210_v21 = vrot.slane %v205_v17, 1  ;;  %v211_v22 = vrot.slane %v206_v18, 1 }
  0x3d   : >> { %v208_v23 = vsel %vm207_vm7, %v205_v17, %v203_v19  ;;  %v209_v24 = vsel %vm207_vm7, %v206_v18, %v204_v20 }
  0x3e   : >> { %vm212_vm8 = vcmp.ge.f32.partialorder %v210_v21, %v208_v23  ;;  %v215_v25 = vrot.slane %v210_v21, 1  ;;  %v216_v26 = vrot.slane %v211_v22, 1 }
  0x3f   : >> { %v213_v27 = vsel %vm212_vm8, %v210_v21, %v208_v23  ;;  %v214_v28 = vsel %vm212_vm8, %v211_v22, %v209_v24 }
  0x40   : >> { %vm217_vm9 = vcmp.ge.f32.partialorder %v215_v25, %v213_v27  ;;  %v220_v29 = vrot.slane %v215_v25, 1  ;;  %v221_v30 = vrot.slane %v216_v26, 1 }
  0x41   : >> { %v218_v31 = vsel %vm217_vm9, %v215_v25, %v213_v27  ;;  %v219_v32 = vsel %vm217_vm9, %v216_v26, %v214_v28 }
  0x42   : >> { %vm222_vm10 = vcmp.ge.f32.partialorder %v220_v29, %v218_v31  ;;  %v225_v33 = vrot.slane %v220_v29, 1  ;;  %v226_v34 = vrot.slane %v221_v30, 1 }
  0x43   : >> { %v223_v35 = vsel %vm222_vm10, %v220_v29, %v218_v31  ;;  %v224_v36 = vsel %vm222_vm10, %v221_v30, %v219_v32 }
  0x44   : >> { %vm227_vm11 = vcmp.ge.f32.partialorder %v225_v33, %v223_v35 }
  0x45   : >> { %v229_v37 = vsel %vm227_vm11, %v226_v34, %v224_v36 }
  0x46   : >> { %231 = vrot.lane.b32.xlu0 %v229_v37, %s230_s27  ;;  %s849_s27 = scalar_lea.vmem (%p176_p11), %s910_s1, %s577_s10 }
  0xb8   : >> { %v232_v39 = vpop.permute.xlu0 %231 }
  0xb9   : >> { %582 = vpush %v232_v39 }
  0xea   : >> { %s583_s29 = spop %582 }
  0xeb   : >> { %v238_v43 = vstv %s583_s29  ;;  %s243_s4 = scalar_lea.vmem [#allocation2], %s583_s29  ;;  %s249_s5 = scalar_lea.vmem [#allocation9], %s583_s29 }
  0xec   : >> { %v245_v44 = vld [vmem:[%s243_s4] ss:$0 sm:$0xff]  ;;  %v240_v46 = vsel %vm237_vm13, %v238_v43, %v239_v40 }
  0xed   : >> { %v251_v45 = vld [vmem:[%s249_s5] ss:$0 sm:$0xff]  ;;  %246 = vst [vmem:[%s243_s4] sm:$0x1] %v244_v41  ;;  %vm254_vm14 = vcmp.ne.f32.partialorder %v245_v44, 0.0  ;;  %241 = vst [vmem:[%s796_s17] sm:$0x1] %v240_v46  ;;  %v261_v53 = vsel %vm260_vm12, %v245_v44, 0.0 }
  0xee   : >> { %252 = vst [vmem:[%s249_s5] sm:$0x1] %v250_v42  ;;  %247 = vst [vmem:[%s242_s28] sm:$0x1] %v245_v44  ;;  %s410_s4 = sshll.u32 (%p176_p11), %s148_s20, 4  ;;  %s357_s5 = scalar_lea.sflag (%p176_p11), [#allocation6], %s146_s7  ;;  %s411_s4 = int_to_ptr.vmem [resolvable:$true] %s410_s4 }
  0xef   : >> { %253 = vst [vmem:[%s248_s30] sm:$0x1] %v251_v45  ;;  %vm255_vm0 = vmand %vm237_vm13, %vm254_vm14  ;;  %s854_s30 = scalar_lea.hbm (%p176_p11), %s911_s2, %s578_s11  ;;  %s634_s6 = scalar_lea.vmem (%p176_p11), %s411_s4, 32 }
  0xf0   : >> { %v256_v47 = vsel %vm255_vm0, %v245_v44, 1.0  ;;  %p635_p12 = scmp.ne.s32.totalorder (%p176_p11), %s411_s4, %s634_s6  ;;  %s705_s17 = smov (%p176_p11), [#allocation5]  }
  0xf1   : >> { %v269_v48 = vsel %vm268_vm15, %v256_v47, 1.0  ;;  %s638_s10 = sshll.u32 (%p176_p11), %s705_s17, 4  ;;  %s639_s10 = int_to_ptr.vmem [resolvable:$false] %s638_s10 }
  0xf2   : >> { %632 = vrcp.f32 %v269_v48  ;;  %p636_p13 = pnand (%p176_p11), %p635_p12, %p764_p5  ;;  %s640_s26 = scalar_lea.vmem (%p176_p11), %s639_s10, 64 }
  0xf3   : > { %p641_p1 = scmp.lt.s32.totalorder (%p176_p11), %s411_s4, %s639_s10  ;;  %p642_p2 = scmp.lt.s32.totalorder (%p176_p11), %s640_s26, %s634_s6 }
  0xf4   : > { %v340_v59 = vld [vmem:[#allocation4] sm:$0x3] (%p176_p11)  ;;  %p637_p0 = pneg (%p176_p11), %p636_p13 }
  0xf5   : >> { %v265_v50 = vld [vmem:[#allocation2] sm:$0xff]  ;;  %343 = vst [vmem:[%s148_s20] sm:$0x3] (%p176_p11), %v340_v59  ;;  %p643_p3 = por (%p176_p11), %p642_p2, %p641_p1 }
  0xf6   : > { %v279_v57 = vld [vmem:[#allocation9] sm:$0xff] (%p176_p11) }
  0xf7   : > { %p644_p4 = pnand (%p176_p11), %p643_p3, %p637_p0 }
  0xff   : >> { %v633_v49 = vpop.eup %632 }
 0x100   : >> { %v271_v51 = vmul.f32 %v633_v49, %v265_v50 }
 0x102   : >> { %v273_v52 = vsel %vm272_vm1, %v271_v51, 0.0 }
 0x103   : >> { %274 = vadd.xlane.f32.xlu0 %v273_v52 }
 0x130   : > { %295 = vxpose.xlu0.b32.start.end [1/1] (short) (narrow) (%p176_p11), %v279_v57, 8 }
 0x18c   : >> { %v275_v54 = vpop.xlane.xlu0 %274 }
 0x18d   : >> { %v276_v55 = vmul.f32 %v275_v54, %v261_v53  ;;  %178 = sbr.rel (!%p176_p11) target bundleno = 42 (0x2a), region = 202 }
 0x18f   : >> { %v277_v56 = vsub.f32 %v271_v51, %v276_v55 }
 0x191   : >> { %278 = vst [vmem:[#allocation2] sm:$0xff] %v277_v56 }
 0x198   : > { %v332_v58 = vld [vmem:[#allocation2] sm:$0xf] }
 0x199   : > { %335 = vst [vmem:[%s141_s19] sm:$0xf] %v332_v58 }
 0x1a0   : > { %v383_v60 = vld [vmem:[%s141_s19] sm:$0xf] }
 0x1a1   : > { %647 = shalt.err (!%p644_p4)
}
 0x1a2   : > { %s648_s8 = scalar_lea.hbm %s854_s30, 32  ;;  %s652_s20 = scalar_lea.hbm %s911_s2, 32 }
 0x1a3   : > { %p649_p8 = scmp.ne.s32.totalorder %s854_s30, %s648_s8  ;;  %p653_p11 = scmp.lt.s32.totalorder %s854_s30, %s911_s2 }
 0x1a4   : > { %p654_p12 = scmp.lt.s32.totalorder %s652_s20, %s648_s8 }
 0x1a5   : > { %p650_p9 = pnand %p649_p8, %p764_p5 }
 0x1a6   : > { %p655_p13 = por %p654_p12, %p653_p11 }
 0x1a7   : > { %p651_p10 = pneg %p650_p9 }
 0x1a9   : > { %p656_p0 = pnand %p655_p13, %p651_p10 }
 0x1ab   : > { %659 = shalt.err (!%p656_p0)
}
 0x1ac   : > { %584 = dma.vmem_to_hbm [thread:$0]  (%p764_p5), %s411_s4, 32, %s854_s30, %s357_s5   ;;  %384 = vst [vmem:[%s849_s27] sm:$0xf] %v383_v60  ;;  %v311_v61 = vpop.trf.xlu0 }
 0x1ad   : > { %327 = vst [vmem:[%s802_s22] sm:$0x1] %v311_v61  ;;  %s916_s6 = sshrl.u32 (%p764_p5), %s747_s16, 3 }
 0x1ae   : > { %s579_s29 = sshll.u32 (%p764_p5), %s916_s6, 1 }
 0x1af   : > { %s419_s26 = scalar_lea.vmem (%p764_p5), %s912_s3, %s579_s29 }
 0x1b1   : > { %416 = sbr.rel (!%p764_p5) target bundleno = 446 (0x1be), region = 96 }
 0x1b4   : > { %v348_v62 = vld [vmem:[#allocation7] sm:$0x3] }
 0x1b5   : > { %351 = vst [vmem:[%s154_s21] sm:$0x3] %v348_v62 }
 0x1bc   : > { %v436_v63 = vld [vmem:[%s154_s21] sm:$0x3] }
 0x1bd   : > { %437 = vst [vmem:[%s419_s26] sm:$0x3] %v436_v63 }
 0x1be PF: > { %s465_s22 = sand.u32 1, %s686_s12   ;;  %p587_p5 = pnand %p565_p7, %p768_p6 }
 0x1bf   : > { %s466_s16 = scalar_lea.sflag [#allocation6], %s465_s22 }
 0x1c0   : > { %p588_p1 = pneg %p587_p5 }
 0x1c2   : > { %681 = dma.done.wait (%p588_p1), %s466_s16, 32  }
 0x1c3   : > { %683 = vsyncadd (%p588_p1), %s466_s16, 4294967264  ;;  %p10_p2 = scmp.ge.s32.totalorder %s751_s18, 4   ;;  %s917_s12 = smov %s690_s13 }
 0x1c4   : > { %s918_s13 = smov %s694_s14  ;;  %s919_s14 = smov %s762_s23 }
 0x1c5   : > { %s920_s15 = smov %s751_s18  ;;  %12 = sbr.rel (!%p10_p2) target bundleno = 3 (0x3), region = 213 }
 0x1ca   :  { %478 = vsyncpa [#allocation6], 1 }
 0x1cb   :  { %480 = vsyncpa [#allocation6 + $0x1], 1 }

// kernel: custom-call.37
= control target key start
LH: loop header
LB: loop body
LE: loop exit
PB: predicated region body
PF: predicated region fallthrough
CT: control target
= control target key end

     0   :  { %s360_s6 = smov 0   ;;  %s362_s7 = smov 0   ;;  %s407_s0 = inlined_call_operand.vmem [shape: f32[2,1,4,4], index: 0, kind: input, shape index: {}]   ;;  %s408_s1 = inlined_call_operand.vmem [shape: f32[2,1,4,4], index: 1, kind: output, shape index: {}]  }
   0x1   :  { %s364_s8 = smov 0  }
   0x2 LB: > { %s286_s9 = sadd.s32 4294967295, %s347_s8   ;;  %s33_s10 = sadd.s32 1, %s343_s7  ;;  %s347_s8 = sphi %s364_s8, %s7_s8   ;;  %s343_s7 = sphi %s362_s7, %s410_s7   ;;  %s339_s6 = sphi %s360_s6, %s409_s6  }
   0x3   : > { %p35_p0 = scmp.ge.s32.totalorder %s33_s10, 2  ;;  %p288_p1 = scmp.ge.s32.totalorder %s347_s8, 2 }
   0x4   : > { %s49_s11 = sand.u32 (!%p288_p1), 1, %s347_s8   ;;  %s290_s12 = sshll.u32 (!%p288_p1), %s343_s7, 2 }
   0x5   : > { %s412_s10 = smov (%p35_p0, %s33_s10), 0  ;;  %47 = sbr.rel (%p288_p1) target bundleno = 12 (0xc), region = 16 }
   0x6   : > { %s289_s13 = sshll.u32 (!%p288_p1), %s49_s11, 2  ;;  %s56_s16 = scalar_lea.vmem (!%p288_p1), %s407_s0, %s290_s12 }
   0x7   : > { %s51_s17 = scalar_lea.vmem (!%p288_p1), [#allocation1], %s289_s13 }
   0xa   : > { %v73_v0 = vld [vmem:[%s56_s16] sm:$0xf] }
   0xb   : > { %74 = vst [vmem:[%s51_s17] sm:$0xf] %v73_v0 }
   0xc PF: > { %p291_p2 = scmp.ge.s32.totalorder %s347_s8, 1  ;;  %p91_p3 = scmp.lt.s32.totalorder %s347_s8, 3 }
   0xe   : > { %p92_p4 = pnand %p291_p2, %p91_p3 }
  0x10   : > { %95 = sbr.rel (%p92_p4) target bundleno = 641 (0x281), region = 50 }
  0x15   : > { %s387_s18 = sand.u32 1, %s286_s9   ;;  %v114_v1 = vlaneseq  ;;  %v349_v11 = vmov -1.0   ;;  %s295_s22 = sshll.u32 %s339_s6, 2 }
  0x16   : > { %s292_s19 = sshll.u32 %s387_s18, 2  ;;  %s193_s25 = scalar_lea.vmem %s408_s1, %s295_s22 }
  0x17   : > { %s104_s20 = scalar_lea.vmem [#allocation1], %s292_s19  ;;  %v115_v3 = vand.u32 127, %v114_v1  ;;  %v118_v4 = vshrl.u32 %v114_v1, 7  ;;  %s108_s21 = scalar_lea.vmem [#allocation3], %s292_s19 }
  0x18   : > { %v112_v2 = vld [vmem:[%s104_s20] sm:$0xf] }
  0x19   : > { %113 = vst [vmem:[#allocation0] sm:$0xf] %v112_v2  ;;  %vm116_vm0 = vcmp.lt.s32.totalorder %v115_v3, 4  ;;  %vm125_vm1 = vcmp.ge.s32.totalorder %v118_v4, %v115_v3  ;;  %vm120_vm2 = vcmp.eq.s32.totalorder %v118_v4, %v115_v3  ;;  %vm139_vm4 = vcmp.eq.s32.totalorder %v115_v3, 0 }
  0x1a   : > { %vm126_vm3 = vmand %vm125_vm1, %vm116_vm0  ;;  %vm136_vm5 = vcmp.eq.s32.totalorder %v115_v3, %v118_v4  ;;  %v140_v12 = vsel %vm139_vm4, 1.0, %v349_v11  ;;  %vm147_vm6 = vcmp.eq.s32.totalorder %v115_v3, 1  ;;  %vm157_vm7 = vcmp.eq.s32.totalorder %v115_v3, 2 }
  0x1b   : > { %v141_v13 = vsel %vm136_vm5, %v140_v12, 0.0  ;;  %vm167_vm8 = vcmp.eq.s32.totalorder %v115_v3, 3 }
  0x20   : > { %v121_v5 = vld [vmem:[#allocation0] sm:$0xff] }
  0x21   : > { %v122_v6 = vsel %vm120_vm2, %v121_v5, 0.0  ;;  %v127_v7 = vsel %vm126_vm3, %v121_v5, 0.0 }
  0x22   : > { %123 = vadd.xlane.f32.xlu0 %v122_v6 }
  0xab   : > { %v124_v8 = vpop.xlane.xlu0 %123 }
  0xac   : > { %323 = vrcp.f32 %v124_v8  ;;  %vm174_vm9 = vweird.f32 %v124_v8 }
  0xb9   : > { %v324_v9 = vpop.eup %323 }
  0xba   : > { %v129_v10 = vmul.f32 %v324_v9, %v127_v7 }
  0xbc   : > { %130 = vst [vmem:[#allocation4] sm:$0xff] %v129_v10 }
  0xc3   : > { %v143_v14 = vld [vmem:[#allocation4 + $0x1] ss:$0 sm:$0xff]  ;;  %v153_v17 = vld [vmem:[#allocation4 + $0x2] ss:$0 sm:$0xff]  ;;  %v163_v22 = vld [vmem:[#allocation4 + $0x3] ss:$0 sm:$0xff] }
  0xc4   : > { %v144_v15 = vxor.u32 2147483648, %v143_v14  ;;  %v154_v19 = vxor.u32 2147483648, %v153_v17  ;;  %v164_v24 = vxor.u32 2147483648, %v163_v22 }
  0xc6   : > { %v148_v16 = vmul.f32 %v144_v15, %v141_v13 }
  0xc8   : > { %149 = vadd.xlane.f32.xlu0 %v148_v16 }
 0x151   : > { %v150_v18 = vpop.xlane.xlu0 %149 }
 0x152   : > { %v151_v20 = vsel %vm147_vm6, %v150_v18, %v141_v13 }
 0x153   : > { %v158_v21 = vmul.f32 %v154_v19, %v151_v20 }
 0x155   : > { %159 = vadd.xlane.f32.xlu1 %v158_v21 }
 0x1de   : > { %v160_v23 = vpop.xlane.xlu1 %159 }
 0x1df   : > { %v161_v25 = vsel %vm157_vm7, %v160_v23, %v151_v20 }
 0x1e0   : > { %v168_v26 = vmul.f32 %v164_v24, %v161_v25 }
 0x1e2   : > { %169 = vadd.xlane.f32.xlu1 %v168_v26 }
 0x26b   : > { %v170_v27 = vpop.xlane.xlu1 %169 }
 0x26c   : > { %v171_v28 = vsel %vm167_vm8, %v170_v27, %v161_v25 }
 0x26d   : > { %v173_v29 = vmul.f32 %v324_v9, %v171_v28 }
 0x26f   : > { %v175_v30 = vsel %vm174_vm9, %v171_v28, %v173_v29 }
 0x270   : > { %176 = vst [vmem:[#allocation2] sm:$0xff] %v175_v30 }
 0x277   : > { %v181_v31 = vld [vmem:[#allocation2] sm:$0xf] }
 0x278   : > { %184 = vst [vmem:[%s108_s21] sm:$0xf] %v181_v31 }
 0x27f   : > { %v210_v32 = vld [vmem:[%s108_s21] sm:$0xf] }
 0x280   : > { %211 = vst [vmem:[%s193_s25] sm:$0xf] %v210_v32 }
 0x281 PF: > { %s7_s8 = sadd.s32 1, %s347_s8   ;;  %s409_s6 = smov %s343_s7 }
 0x282   : > { %p4_p5 = scmp.ge.s32.totalorder %s7_s8, 4   ;;  %s410_s7 = smov %s412_s10 }
 0x284   :  { %6 = sbr.rel (!%p4_p5) target bundleno = 2 (0x2), region = 113 }

// kernel: net_forward.24
= control target key start
LH: loop header
LB: loop body
LE: loop exit
PB: predicated region body
PF: predicated region fallthrough
CT: control target
= control target key end

     0   :  { %s777_s12 = smov 0   ;;  %s779_s13 = smov 0   ;;  %s866_s0 = inlined_call_operand.vmem [shape: bf16[6,288,128], index: 0, kind: input, shape index: {}]   ;;  %s867_s1 = inlined_call_operand.vmem [shape: bf16[32,288], index: 1, kind: input, shape index: {}]   ;;  %s868_s2 = inlined_call_operand.vmem [shape: f32[32,1], index: 2, kind: input, shape index: {}]   ;;  %s869_s3 = inlined_call_operand.vmem [shape: f32[6,32,128], index: 3, kind: output, shape index: {}]  }
   0x1   :  { %s781_s14 = smov 0  }
   0x2 LB: > { %s25_s15 = sadd.s32 1, %s750_s13  ;;  %p605_p0 = scmp.ge.s32.totalorder %s754_s14, 1  ;;  %s754_s14 = sphi %s781_s14, %s13_s14   ;;  %s750_s13 = sphi %s779_s13, %s871_s13   ;;  %s746_s12 = sphi %s777_s12, %s870_s12  }
   0x3   : > { %p27_p1 = scmp.ge.s32.totalorder %s25_s15, 6  ;;  %p156_p2 = scmp.lt.s32.totalorder %s754_s14, 7 }
   0x5   : > { %s873_s15 = smov (%p27_p1, %s25_s15), 0  ;;  %p157_p3 = pnand %p605_p0, %p156_p2 }
   0x6   : > { %p186_p4 = scmp.lt.s32.totalorder (!%p157_p3), %s746_s12, 5 }
   0x7   : > { %160 = sbr.rel (%p157_p3) target bundleno = 263 (0x107), region = 32 }
   0xc   : > { %vm409_vm0 = vcmask 261120   ;;  %v725_v0 = vld [vmem:[%s867_s1 + $0x4] ss:$12 sps:$4 sm:$0xff]   ;;  %s875_s12 = smov (!%p186_p4, %s746_s12), 5  ;;  %v727_v1 = vld [vmem:[%s867_s1 + $0x8] ss:$12 sps:$4 sm:$0xff]  }
   0xd   : > { %448 = vmatprep.mubr.bf16.mxu0 %v725_v0  ;;  %s678_s20 = smul.u32 144, %s875_s12  ;;  %674 = vmatprep.mubr.msk.bf16.mxu1 %vm409_vm0, %v727_v1  ;;  %v756_v2 = vmov 0   ;;  %v247_v3 = vld [vmem:[%s868_s2] sm:$0xff]  ;;  %v249_v4 = vld [vmem:[%s868_s2 + $0x10] sm:$0xff]  ;;  %v248_v5 = vld [vmem:[%s868_s2 + $0x8] sm:$0xff]  ;;  %s637_s17 = sshll.u32 %s875_s12, 5 }
   0xe   : > { %704 = vset.pattern.permute.xlu0 %v756_v2  ;;  %705 = vset.pattern.permute.xlu1 %v756_v2  ;;  %v250_v6 = vld [vmem:[%s868_s2 + $0x18] sm:$0xff]  ;;  %v728_v22 = vld [vmem:[%s867_s1 + $0x20] ss:$12 sps:$4 sm:$0xff]  }
   0xf   : > { %253 = vperm.xlu0 %704, %v247_v3   ;;  %s814_s27 = scalar_lea.vmem %s866_s0, %s678_s20  ;;  %263 = vperm.xlu1 %705, %v249_v4   ;;  %v723_v26 = vld [vmem:[%s867_s1] ss:$12 sps:$4 sm:$0xff]   ;;  %v729_v27 = vld [vmem:[%s867_s1 + $0x1c] ss:$12 sps:$4 sm:$0xff]   ;;  %v731_v28 = vld [vmem:[%s867_s1 + $0x18] ss:$12 sps:$4 sm:$0xff]   ;;  %s201_s20 = scalar_lea.vmem %s869_s3, %s637_s17 }
  0x10   : > { %v706_v7 = vld [vmem:[%s814_s27 + $0x78] sm:$0xff]   ;;  %v708_v9 = vld [vmem:[%s814_s27 + $0x70] sm:$0xff]   ;;  %v710_v11 = vld [vmem:[%s814_s27 + $0x68] sm:$0xff]  }
  0x11   : > { %v707_v8 = vld [vmem:[%s814_s27 + $0x38] sm:$0xff]   ;;  %638 = vmatprep.subr.bf16.mxu0 %v706_v7  ;;  %v709_v10 = vld [vmem:[%s814_s27 + $0x30] sm:$0xff]   ;;  %v711_v12 = vld [vmem:[%s814_s27 + $0x28] sm:$0xff]  }
  0x12   : > { %639 = vmatpush3.bf16.msra.mxu0 %v707_v8  ;;  %v712_v13 = vld [vmem:[%s814_s27 + $0x60] sm:$0xff]   ;;  %v714_v15 = vld [vmem:[%s814_s27 + $0x58] sm:$0xff]   ;;  %v721_v17 = vld [vmem:[%s814_s27 + $0x88] sm:$0xff]  }
  0x13   : > { %258 = vperm.xlu0 %704, %v248_v5   ;;  %268 = vperm.xlu1 %705, %v250_v6   ;;  %v713_v14 = vld [vmem:[%s814_s27 + $0x20] sm:$0xff]   ;;  %v715_v16 = vld [vmem:[%s814_s27 + $0x18] sm:$0xff]   ;;  %v716_v18 = vld [vmem:[%s814_s27 + $0x50] sm:$0xff]  }
  0x14   : > { %640 = vmatprep.subr.bf16.mxu0 %v708_v9  ;;  %670 = vmatprep.subr.bf16.mxu1 %v721_v17  ;;  %v726_v19 = vld [vmem:[%s814_s27 + $0x80] sm:$0xff]   ;;  %v717_v20 = vld [vmem:[%s814_s27 + $0x10] sm:$0xff]   ;;  %v718_v21 = vld [vmem:[%s814_s27 + $0x48] sm:$0xff]  }
  0x15   : > { %671 = vmatpush3.bf16.msra.mxu1 %v721_v17  ;;  %v719_v23 = vld [vmem:[%s814_s27 + $0x8] sm:$0xff]   ;;  %v720_v24 = vld [vmem:[%s814_s27 + $0x40] sm:$0xff]  }
  0x16   : > { %641 = vmatpush3.bf16.msra.mxu0 %v709_v10  ;;  %672 = vmatprep.subr.bf16.mxu1 %v726_v19  ;;  %v722_v25 = vld [vmem:[%s814_s27] sm:$0xff]  }
  0x17   : > { %642 = vmatprep.subr.bf16.mxu0 %v710_v11 }
  0x19   : > { %673 = vmatpush3.bf16.msra.mxu1 %v726_v19 }
  0x1a   : > { %643 = vmatpush3.bf16.msra.mxu0 %v711_v12 }
  0x1b   : > { %644 = vmatprep.subr.bf16.mxu0 %v712_v13 }
  0x1c   : > { %675 = vmatmul.mubr.msk.bf16.vlgmr.msra.gmra.mxu1 %vm409_vm0, %v728_v22 }
  0x1e   : > { %645 = vmatpush3.bf16.msra.mxu0 %v713_v14 }
  0x1f   : > { %646 = vmatprep.subr.bf16.mxu0 %v714_v15 }
  0x22   : > { %647 = vmatpush3.bf16.msra.mxu0 %v715_v16 }
  0x23   : > { %648 = vmatprep.subr.bf16.mxu0 %v716_v18 }
  0x26   : > { %649 = vmatpush3.bf16.msra.mxu0 %v717_v20 }
  0x27   : > { %650 = vmatprep.subr.bf16.mxu0 %v718_v21 }
  0x2a   : > { %651 = vmatpush3.bf16.msra.mxu0 %v719_v23 }
  0x2b   : > { %652 = vmatprep.subr.bf16.mxu0 %v720_v24 }
  0x2e   : > { %653 = vmatpush3.bf16.msra.mxu0 %v722_v25 }
  0x31   : > { %449 = vmatmul.mubr.bf16.vlgmr.msra.gmra.mxu0 %v723_v26 }
  0x32   : > { %456 = vmatprep.mubr.bf16.mxu0 %v729_v27 }
  0x39   : > { %457 = vmatmul.mubr.bf16.gmra.mxu0 %v731_v28 }
  0x8a   : > { %v254_v30 = vpop.permute.xlu0 %253  ;;  %v264_v45 = vpop.permute.xlu1 %263 }
  0x8e   : > { %v259_v39 = vpop.permute.xlu0 %258  ;;  %v269_v54 = vpop.permute.xlu1 %268 }
  0xdc   : > { %v676_v29 = vpop.f32.mrf.mxu1 }
  0xde   : > { %v499_v32 = vpop.f32.mrf.mxu1 }
  0xe0   : > { %v677_v36 = vpop.f32.mrf.mxu1 }
  0xe2   : > { %v502_v43 = vpop.f32.mrf.mxu1 }
  0xf1   : > { %v654_v31 = vpop.f32.mrf.mxu0 }
  0xf3   : > { %v655_v33 = vpop.f32.mrf.mxu0 }
  0xf4   : > { %v656_v34 = vadd.f32 %v655_v33, %v654_v31 }
  0xf5   : > { %v657_v35 = vpop.f32.mrf.mxu0 }
  0xf6   : > { %v451_v37 = vadd.f32 %v656_v34, %v254_v30 }
  0xf7   : > { %v658_v38 = vpop.f32.mrf.mxu0 }
  0xf8   : > { %v659_v40 = vadd.f32 %v658_v38, %v657_v35  ;;  %v500_v41 = vadd.f32 %v499_v32, %v451_v37 }
  0xf9   : > { %v660_v42 = vpop.f32.mrf.mxu0 }
  0xfa   : > { %514 = vst [vmem:[%s201_s20] sm:$0xff] %v500_v41  ;;  %v454_v44 = vadd.f32 %v659_v40, %v259_v39 }
  0xfb   : > { %v661_v46 = vpop.f32.mrf.mxu0 }
  0xfc   : > { %v662_v47 = vadd.f32 %v661_v46, %v660_v42  ;;  %v503_v48 = vadd.f32 %v502_v43, %v454_v44 }
  0xfd   : > { %v663_v49 = vpop.f32.mrf.mxu0 }
  0xfe   : > { %v459_v50 = vadd.f32 %v662_v47, %v264_v45  ;;  %515 = vst [vmem:[%s201_s20 + $0x8] sm:$0xff] %v503_v48 }
  0xff   : > { %v664_v51 = vpop.f32.mrf.mxu0 }
 0x100   : > { %v508_v52 = vadd.f32 %v676_v29, %v459_v50  ;;  %v665_v53 = vadd.f32 %v664_v51, %v663_v49 }
 0x102   : > { %516 = vst [vmem:[%s201_s20 + $0x10] sm:$0xff] %v508_v52  ;;  %v462_v55 = vadd.f32 %v665_v53, %v269_v54 }
 0x104   : > { %v511_v56 = vadd.f32 %v677_v36, %v462_v55 }
 0x106   : > { %517 = vst [vmem:[%s201_s20 + $0x18] sm:$0xff] %v511_v56 }
 0x107 PF: > { %s13_s14 = sadd.s32 1, %s754_s14   ;;  %s870_s12 = smov %s750_s13 }
 0x108   : > { %p10_p5 = scmp.ge.s32.totalorder %s13_s14, 8   ;;  %s871_s13 = smov %s873_s15 }
 0x10a   :  { %12 = sbr.rel (!%p10_p5) target bundleno = 2 (0x2), region = 62 }

// kernel: custom-call.36
= control target key start
LH: loop header
LB: loop body
LE: loop exit
PB: predicated region body
PF: predicated region fallthrough
CT: control target
= control target key end

     0   :  { %s359_s6 = smov 0   ;;  %s361_s7 = smov 0   ;;  %s406_s0 = inlined_call_operand.vmem [shape: f32[2,1,4,4], index: 0, kind: input, shape index: {}]   ;;  %s407_s1 = inlined_call_operand.vmem [shape: f32[2,1,4,4], index: 1, kind: output, shape index: {}]  }
   0x1   :  { %s363_s8 = smov 0  }
   0x2 LB: > { %s285_s9 = sadd.s32 4294967295, %s346_s8   ;;  %s33_s10 = sadd.s32 1, %s342_s7  ;;  %s346_s8 = sphi %s363_s8, %s7_s8   ;;  %s342_s7 = sphi %s361_s7, %s409_s7   ;;  %s338_s6 = sphi %s359_s6, %s408_s6  }
   0x3   : > { %p35_p0 = scmp.ge.s32.totalorder %s33_s10, 2  ;;  %p287_p1 = scmp.ge.s32.totalorder %s346_s8, 2 }
   0x4   : > { %s49_s11 = sand.u32 (!%p287_p1), 1, %s346_s8   ;;  %s289_s12 = sshll.u32 (!%p287_p1), %s342_s7, 2 }
   0x5   : > { %s411_s10 = smov (%p35_p0, %s33_s10), 0  ;;  %47 = sbr.rel (%p287_p1) target bundleno = 12 (0xc), region = 16 }
   0x6   : > { %s288_s13 = sshll.u32 (!%p287_p1), %s49_s11, 2  ;;  %s56_s16 = scalar_lea.vmem (!%p287_p1), %s406_s0, %s289_s12 }
   0x7   : > { %s51_s17 = scalar_lea.vmem (!%p287_p1), [#allocation1], %s288_s13 }
   0xa   : > { %v73_v0 = vld [vmem:[%s56_s16] sm:$0xf] }
   0xb   : > { %74 = vst [vmem:[%s51_s17] sm:$0xf] %v73_v0 }
   0xc PF: > { %p290_p2 = scmp.ge.s32.totalorder %s346_s8, 1  ;;  %p91_p3 = scmp.lt.s32.totalorder %s346_s8, 3 }
   0xe   : > { %p92_p4 = pnand %p290_p2, %p91_p3 }
  0x10   : > { %95 = sbr.rel (%p92_p4) target bundleno = 641 (0x281), region = 50 }
  0x15   : > { %s386_s18 = sand.u32 1, %s285_s9   ;;  %v114_v1 = vlaneseq  ;;  %v348_v11 = vmov -1.0   ;;  %s294_s22 = sshll.u32 %s338_s6, 2 }
  0x16   : > { %s291_s19 = sshll.u32 %s386_s18, 2  ;;  %s192_s25 = scalar_lea.vmem %s407_s1, %s294_s22 }
  0x17   : > { %s104_s20 = scalar_lea.vmem [#allocation1], %s291_s19  ;;  %v115_v3 = vand.u32 127, %v114_v1  ;;  %v118_v4 = vshrl.u32 %v114_v1, 7  ;;  %s108_s21 = scalar_lea.vmem [#allocation3], %s291_s19 }
  0x18   : > { %v112_v2 = vld [vmem:[%s104_s20] sm:$0xf] }
  0x19   : > { %113 = vst [vmem:[#allocation0] sm:$0xf] %v112_v2  ;;  %vm116_vm0 = vcmp.lt.s32.totalorder %v115_v3, 4  ;;  %vm125_vm1 = vcmp.le.s32.totalorder %v118_v4, %v115_v3  ;;  %vm120_vm2 = vcmp.eq.s32.totalorder %v118_v4, %v115_v3  ;;  %vm139_vm4 = vcmp.eq.s32.totalorder %v115_v3, 3 }
  0x1a   : > { %vm126_vm3 = vmand %vm125_vm1, %vm116_vm0  ;;  %vm136_vm5 = vcmp.eq.s32.totalorder %v115_v3, %v118_v4  ;;  %v140_v12 = vsel %vm139_vm4, 1.0, %v348_v11  ;;  %vm147_vm6 = vcmp.eq.s32.totalorder %v115_v3, 2  ;;  %vm157_vm7 = vcmp.eq.s32.totalorder %v115_v3, 1 }
  0x1b   : > { %v141_v13 = vsel %vm136_vm5, %v140_v12, 0.0  ;;  %vm166_vm8 = vcmp.eq.s32.totalorder %v115_v3, 0 }
  0x20   : > { %v121_v5 = vld [vmem:[#allocation0] sm:$0xff] }
  0x21   : > { %v122_v6 = vsel %vm120_vm2, %v121_v5, 0.0  ;;  %v127_v7 = vsel %vm126_vm3, %v121_v5, 0.0 }
  0x22   : > { %123 = vadd.xlane.f32.xlu0 %v122_v6 }
  0xab   : > { %v124_v8 = vpop.xlane.xlu0 %123 }
  0xac   : > { %322 = vrcp.f32 %v124_v8  ;;  %vm173_vm9 = vweird.f32 %v124_v8 }
  0xb9   : > { %v323_v9 = vpop.eup %322 }
  0xba   : > { %v129_v10 = vmul.f32 %v323_v9, %v127_v7 }
  0xbc   : > { %130 = vst [vmem:[#allocation4] sm:$0xff] %v129_v10 }
  0xc3   : > { %v143_v14 = vld [vmem:[#allocation4 + $0x2] ss:$0 sm:$0xff]  ;;  %v153_v17 = vld [vmem:[#allocation4 + $0x1] ss:$0 sm:$0xff]  ;;  %v162_v22 = vld [vmem:[#allocation4] ss:$0 sm:$0xff] }
  0xc4   : > { %v144_v15 = vxor.u32 2147483648, %v143_v14  ;;  %v154_v19 = vxor.u32 2147483648, %v153_v17  ;;  %v163_v24 = vxor.u32 2147483648, %v162_v22 }
  0xc6   : > { %v148_v16 = vmul.f32 %v144_v15, %v141_v13 }
  0xc8   : > { %149 = vadd.xlane.f32.xlu0 %v148_v16 }
 0x151   : > { %v150_v18 = vpop.xlane.xlu0 %149 }
 0x152   : > { %v151_v20 = vsel %vm147_vm6, %v150_v18, %v141_v13 }
 0x153   : > { %v158_v21 = vmul.f32 %v154_v19, %v151_v20 }
 0x155   : > { %159 = vadd.xlane.f32.xlu1 %v158_v21 }
 0x1de   : > { %v160_v23 = vpop.xlane.xlu1 %159 }
 0x1df   : > { %v161_v25 = vsel %vm157_vm7, %v160_v23, %v151_v20 }
 0x1e0   : > { %v167_v26 = vmul.f32 %v163_v24, %v161_v25 }
 0x1e2   : > { %168 = vadd.xlane.f32.xlu1 %v167_v26 }
 0x26b   : > { %v169_v27 = vpop.xlane.xlu1 %168 }
 0x26c   : > { %v170_v28 = vsel %vm166_vm8, %v169_v27, %v161_v25 }
 0x26d   : > { %v172_v29 = vmul.f32 %v323_v9, %v170_v28 }
 0x26f   : > { %v174_v30 = vsel %vm173_vm9, %v170_v28, %v172_v29 }
 0x270   : > { %175 = vst [vmem:[#allocation2] sm:$0xff] %v174_v30 }
 0x277   : > { %v180_v31 = vld [vmem:[#allocation2] sm:$0xf] }
 0x278   : > { %183 = vst [vmem:[%s108_s21] sm:$0xf] %v180_v31 }
 0x27f   : > { %v209_v32 = vld [vmem:[%s108_s21] sm:$0xf] }
 0x280   : > { %210 = vst [vmem:[%s192_s25] sm:$0xf] %v209_v32 }
 0x281 PF: > { %s7_s8 = sadd.s32 1, %s346_s8   ;;  %s408_s6 = smov %s342_s7 }
 0x282   : > { %p4_p5 = scmp.ge.s32.totalorder %s7_s8, 4   ;;  %s409_s7 = smov %s411_s10 }
 0x284   :  { %6 = sbr.rel (!%p4_p5) target bundleno = 2 (0x2), region = 112 }

// kernel: net_forward.25
= control target key start
LH: loop header
LB: loop body
LE: loop exit
PB: predicated region body
PF: predicated region fallthrough
CT: control target
= control target key end

     0   :  { %s649_s15 = smov 0   ;;  %s651_s16 = smov 0   ;;  %s712_s0 = inlined_call_operand.vmem [shape: f32[2,32,64], index: 0, kind: input, shape index: {}]   ;;  %s713_s1 = inlined_call_operand.vmem [shape: bf16[2,8,32,64], index: 1, kind: input, shape index: {}]   ;;  %s714_s2 = inlined_call_operand.vmem [shape: f32[8,32], index: 2, kind: input, shape index: {}]   ;;  %s715_s3 = inlined_call_operand.vmem [shape: f32[2,8,8,64], index: 3, kind: input, shape index: {}, may-alias: {3,4}]   ;;  %s716_s4 = inlined_call_operand.vmem [shape: f32[2,8,8,64], index: 4, kind: output, shape index: {}, may-alias: {3,4}]  }
   0x1   :  { %s653_s17 = smov 0   ;;  %s655_s18 = smov 0  }
   0x2   :  { %s657_s19 = smov 0  }
   0x3 LB: > { %s23_s20 = sadd.s32 1, %s612_s17  ;;  %s26_s21 = sadd.s32 1, %s616_s18  ;;  %s620_s19 = sphi %s657_s19, %s14_s19   ;;  %s616_s18 = sphi %s655_s18, %s720_s18   ;;  %s612_s17 = sphi %s653_s17, %s719_s17   ;;  %s608_s16 = sphi %s651_s16, %s718_s16   ;;  %s604_s15 = sphi %s649_s15, %s717_s15  }
   0x4   : > { %p24_p0 = scmp.ge.s32.totalorder %s23_s20, 8  ;;  %p501_p1 = scmp.ge.s32.totalorder %s620_s19, 1 }
   0x5   : > { %p207_p2 = scmp.lt.s32.totalorder %s620_s19, 17 }
   0x6   : > { %s722_s20 = smov (%p24_p0, %s23_s20), 0  ;;  %s724_s21 = smov (!%p24_p0, %s26_s21), %s616_s18 }
   0x7   : > { %p208_p3 = pnand %p501_p1, %p207_p2  ;;  %p28_p4 = scmp.ge.s32.totalorder %s724_s21, 2 }
   0x8   : > { %p253_p5 = scmp.lt.s32.totalorder (!%p208_p3), %s608_s16, 1  ;;  %p260_p6 = scmp.lt.s32.totalorder (!%p208_p3), %s604_s15, 7 }
   0x9   : > { %s726_s21 = smov (%p28_p4, %s724_s21), 0  ;;  %211 = sbr.rel (%p208_p3) target bundleno = 228 (0xe4), region = 36 }
   0xe   : > { %v622_v0 = vmov 0.0   ;;  %vm623_vm0 = vmmov 0   ;;  %s728_s16 = smov (!%p253_p5, %s608_s16), 1  ;;  %s730_s15 = smov (!%p260_p6, %s604_s15), 7  ;;  %v295_v15 = vld [vmem:[%s714_s2] sm:$0xff]  ;;  %vm300_vm1 = vcmask 261120  }
   0xf   : > { %529 = vmatprep.subr.mxu0 %v622_v0  ;;  %537 = vmatprep.mubr.msk.f32.mxu0 %vm623_vm0, %v622_v0  ;;  %s514_s22 = sshll.u32 %s728_s16, 5  ;;  %s507_s23 = sshll.u32 %s728_s16, 3  ;;  %vm376_vm2 = vcmask 523264  }
  0x10   : > { %s257_s26 = scalar_lea.vmem %s712_s0, %s514_s22  ;;  %s504_s27 = sshll.u32 %s730_s15, 2 }
  0x11   : > { %s264_s28 = sadd.s32 %s514_s22, %s504_s27  ;;  %s682_s29 = sadd.s32 %s507_s23, %s730_s15  ;;  %v286_v1 = vld [vmem:[%s257_s26 + $0x18] sm:$0xff]  ;;  %v285_v4 = vld [vmem:[%s257_s26 + $0x10] sm:$0xff]  ;;  %v284_v8 = vld [vmem:[%s257_s26 + $0x8] sm:$0xff] }
  0x12   : > { %s506_s30 = sshll.u32 %s264_s28, 2  ;;  %v283_v12 = vld [vmem:[%s257_s26] sm:$0xff]  ;;  %s508_s10 = sshll.u32 %s682_s29, 3 }
  0x13   : > { %s266_s7 = scalar_lea.vmem %s713_s1, %s506_s30  ;;  %s274_s13 = scalar_lea.vmem %s715_s3, %s508_s10 }
  0x14   : > { %v516_v2 = vld [vmem:[%s266_s7] sm:$0xff]   ;;  %v523_v3 = vld [vmem:[%s266_s7 + $0x8] sm:$0xff]   ;;  %s282_s16 = scalar_lea.vmem %s716_s4, %s508_s10 }
  0x15   : > { %v521_v5 = vunpack.c.l.bf16 %v523_v3  ;;  %v522_v6 = vunpack.c.h.bf16 %v523_v3  ;;  %v518_v7 = vunpack.c.h.bf16 %v516_v2  ;;  %v517_v11 = vunpack.c.l.bf16 %v516_v2  ;;  %v374_v16 = vld [vmem:[%s274_s13] sm:$0xff] }
  0x17   : > { %v299_v9 = vmul.f32 %v522_v6, %v286_v1  ;;  %v298_v10 = vmul.f32 %v521_v5, %v285_v4  ;;  %v297_v13 = vmul.f32 %v518_v7, %v284_v8  ;;  %v296_v14 = vmul.f32 %v517_v11, %v283_v12 }
  0x19   : > { %530 = vmatpush3.msra.mxu0 %v299_v9 }
  0x1a   : > { %531 = vmatprep.subr.mxu0 %v622_v0 }
  0x1b   : > { %532 = vmatpush3.msra.mxu0 %v298_v10 }
  0x1c   : > { %533 = vmatprep.subr.mxu0 %v622_v0 }
  0x1d   : > { %534 = vmatpush3.msra.mxu0 %v297_v13 }
  0x1e   : > { %535 = vmatprep.subr.mxu0 %v622_v0 }
  0x1f   : > { %536 = vmatpush3.msra.mxu0 %v296_v14 }
  0x20   : > { %538 = vmatmul.mubr.msk.f32.vlgmr.msra.gmra.mxu0 %vm300_vm1, %v295_v15 }
  0xe0   : > { %v370_v17 = vpop.f32.mrf.mxu0 }
  0xe1   : > { %v375_v18 = vadd.f32 %v374_v16, %v370_v17 }
  0xe2   : > { %v539_v19 = vpop.f32.mrf.mxu0 }
  0xe3   : > { %377 = vst.msk [vmem:[%s282_s16] sm:$0xff] %vm376_vm2, %v375_v18 }
  0xe4 PF: > { %s14_s19 = sadd.s32 1, %s620_s19   ;;  %s717_s15 = smov %s612_s17 }
  0xe5   : > { %p11_p7 = scmp.ge.s32.totalorder %s14_s19, 18   ;;  %s718_s16 = smov %s616_s18 }
  0xe6   : > { %s719_s17 = smov %s722_s20  ;;  %s720_s18 = smov %s726_s21 }
  0xe7   :  { %13 = sbr.rel (!%p11_p7) target bundleno = 3 (0x3), region = 72 }

// kernel: net_forward.27
= control target key start
LH: loop header
LB: loop body
LE: loop exit
PB: predicated region body
PF: predicated region fallthrough
CT: control target
= control target key end

     0   :  { %s487_s12 = smov 0   ;;  %s489_s13 = smov 0   ;;  %s530_s0 = inlined_call_operand.vmem [shape: bf16[16,72,128], index: 0, kind: input, shape index: {}]   ;;  %s531_s1 = inlined_call_operand.vmem [shape: bf16[8,72], index: 1, kind: input, shape index: {}]   ;;  %s532_s2 = inlined_call_operand.vmem [shape: f32[8,1], index: 2, kind: input, shape index: {}]   ;;  %s533_s3 = inlined_call_operand.vmem [shape: f32[16,8,128], index: 3, kind: output, shape index: {}]  }
   0x1   :  { %s491_s14 = smov 0  }
   0x2 LB: > { %s25_s15 = sadd.s32 1, %s458_s13  ;;  %p375_p0 = scmp.ge.s32.totalorder %s462_s14, 1  ;;  %s462_s14 = sphi %s491_s14, %s13_s14   ;;  %s458_s13 = sphi %s489_s13, %s535_s13   ;;  %s454_s12 = sphi %s487_s12, %s534_s12  }
   0x3   : > { %p27_p1 = scmp.ge.s32.totalorder %s25_s15, 16  ;;  %p156_p2 = scmp.lt.s32.totalorder %s462_s14, 17 }
   0x5   : > { %s537_s15 = smov (%p27_p1, %s25_s15), 0  ;;  %p157_p3 = pnand %p375_p0, %p156_p2 }
   0x6   : > { %p185_p4 = scmp.lt.s32.totalorder (!%p157_p3), %s454_s12, 15 }
   0x7   : > { %160 = sbr.rel (%p157_p3) target bundleno = 236 (0xec), region = 32 }
   0xc   : > { %v464_v0 = vmov 0.0   ;;  %vm465_vm0 = vmmov 0   ;;  %v211_v1 = vld [vmem:[%s532_s2] sm:$0xff]  ;;  %s539_s12 = smov (!%p185_p4, %s454_s12), 15  ;;  %v466_v2 = vmov 0   ;;  %vm248_vm1 = vcmask 1043456  }
   0xd   : > { %392 = vmatprep.subr.bf16.mxu0 %v464_v0  ;;  %402 = vmatprep.mubr.msk.bf16.mxu0 %vm465_vm0, %v464_v0  ;;  %s406_s18 = smul.u32 36, %s539_s12  ;;  %v201_v9 = vld [vmem:[%s531_s1] sm:$0xf]  ;;  %vm244_vm2 = vcmask 588800   ;;  %s377_s24 = sshll.u32 %s539_s12, 3 }
   0xe   : > { %434 = vset.pattern.permute.xlu0 %v466_v2  ;;  %s199_s27 = scalar_lea.vmem %s533_s3, %s377_s24 }
   0xf   : > { %214 = vperm.xlu0 %434, %v211_v1   ;;  %s192_s21 = scalar_lea.vmem %s530_s0, %s406_s18 }
  0x10   : > { %v435_v3 = vld [vmem:[%s192_s21 + $0x20] ss:$0 sps:$4 sm:$0xff]   ;;  %v436_v5 = vld [vmem:[%s192_s21 + $0x18] sm:$0xff]   ;;  %v437_v6 = vld [vmem:[%s192_s21 + $0x10] sm:$0xff]  }
  0x11   : > { %v250_v4 = vsel %vm248_vm1, %v435_v3, 0  ;;  %v438_v7 = vld [vmem:[%s192_s21 + $0x8] sm:$0xff]   ;;  %v439_v8 = vld [vmem:[%s192_s21] sm:$0xff]  }
  0x12   : > { %393 = vmatpush3.bf16.msra.mxu0 %v250_v4 }
  0x13   : > { %394 = vmatprep.subr.bf16.mxu0 %v464_v0 }
  0x16   : > { %395 = vmatpush3.bf16.msra.mxu0 %v436_v5 }
  0x17   : > { %396 = vmatprep.subr.bf16.mxu0 %v464_v0 }
  0x1a   : > { %397 = vmatpush3.bf16.msra.mxu0 %v437_v6 }
  0x1b   : > { %398 = vmatprep.subr.bf16.mxu0 %v464_v0 }
  0x1e   : > { %399 = vmatpush3.bf16.msra.mxu0 %v438_v7 }
  0x1f   : > { %400 = vmatprep.subr.bf16.mxu0 %v464_v0 }
  0x22   : > { %401 = vmatpush3.bf16.msra.mxu0 %v439_v8 }
  0x25   : > { %403 = vmatmul.mubr.msk.bf16.vlgmr.msra.gmra.mxu0 %vm244_vm2, %v201_v9 }
  0x8a   : > { %v215_v10 = vpop.permute.xlu0 %214 }
  0xe5   : > { %v286_v11 = vpop.f32.mrf.mxu0 }
  0xe6   : > { %v287_v12 = vadd.f32 %v286_v11, %v215_v10 }
  0xe7   : > { %v404_v13 = vpop.f32.mrf.mxu0 }
  0xe8   : > { %v292_v14 = vmax.f32 %v287_v12, 0.0 }
  0xe9   : > { %v289_v15 = vpop.f32.mrf.mxu0 }
  0xea   : > { %293 = vst [vmem:[%s199_s27] sm:$0xff] %v292_v14 }
  0xeb   : > { %v405_v16 = vpop.f32.mrf.mxu0 }
  0xec PF: > { %s13_s14 = sadd.s32 1, %s462_s14   ;;  %s534_s12 = smov %s458_s13 }
  0xed   : > { %p10_p5 = scmp.ge.s32.totalorder %s13_s14, 18   ;;  %s535_s13 = smov %s537_s15 }
  0xef   :  { %12 = sbr.rel (!%p10_p5) target bundleno = 2 (0x2), region = 62 }

// kernel: net_forward.28
= control target key start
LH: loop header
LB: loop body
LE: loop exit
PB: predicated region body
PF: predicated region fallthrough
CT: control target
= control target key end

     0   :  { %s514_s12 = smov 0   ;;  %s516_s13 = smov 0   ;;  %s560_s0 = inlined_call_operand.vmem [shape: bf16[16,72,128], index: 0, kind: input, shape index: {}]   ;;  %s561_s1 = inlined_call_operand.vmem [shape: bf16[16,72], index: 1, kind: input, shape index: {}]   ;;  %s562_s2 = inlined_call_operand.vmem [shape: f32[16,1], index: 2, kind: input, shape index: {}]   ;;  %s563_s3 = inlined_call_operand.vmem [shape: f32[16,16,128], index: 3, kind: output, shape index: {}]  }
   0x1   :  { %s518_s14 = smov 0  }
   0x2 LB: > { %s25_s15 = sadd.s32 1, %s485_s13  ;;  %p398_p0 = scmp.ge.s32.totalorder %s489_s14, 1  ;;  %s489_s14 = sphi %s518_s14, %s13_s14   ;;  %s485_s13 = sphi %s516_s13, %s565_s13   ;;  %s481_s12 = sphi %s514_s12, %s564_s12  }
   0x3   : > { %p27_p1 = scmp.ge.s32.totalorder %s25_s15, 16  ;;  %p156_p2 = scmp.lt.s32.totalorder %s489_s14, 17 }
   0x5   : > { %s567_s15 = smov (%p27_p1, %s25_s15), 0  ;;  %p157_p3 = pnand %p398_p0, %p156_p2 }
   0x6   : > { %p186_p4 = scmp.lt.s32.totalorder (!%p157_p3), %s481_s12, 15 }
   0x7   : > { %160 = sbr.rel (%p157_p3) target bundleno = 239 (0xef), region = 32 }
   0xc   : > { %v491_v0 = vmov 0.0   ;;  %vm492_vm0 = vmmov 0   ;;  %v214_v1 = vld [vmem:[%s562_s2] sm:$0xff]  ;;  %s569_s12 = smov (!%p186_p4, %s481_s12), 15  ;;  %v493_v2 = vmov 0   ;;  %v215_v3 = vld [vmem:[%s562_s2 + $0x8] sm:$0xff] }
   0xd   : > { %418 = vmatprep.subr.bf16.mxu0 %v491_v0  ;;  %428 = vmatprep.mubr.msk.bf16.mxu0 %vm492_vm0, %v491_v0  ;;  %s432_s18 = smul.u32 36, %s569_s12  ;;  %vm262_vm1 = vcmask 1043456   ;;  %v466_v10 = vld [vmem:[%s561_s1] sm:$0xff]   ;;  %vm258_vm2 = vcmask 588800   ;;  %s411_s26 = sshll.u32 %s569_s12, 4 }
   0xe   : > { %460 = vset.pattern.permute.xlu0 %v493_v2  ;;  %s201_s29 = scalar_lea.vmem %s563_s3, %s411_s26 }
   0xf   : > { %218 = vperm.xlu0 %460, %v214_v1   ;;  %s193_s23 = scalar_lea.vmem %s560_s0, %s432_s18 }
  0x10   : > { %v461_v4 = vld [vmem:[%s193_s23 + $0x20] ss:$0 sps:$4 sm:$0xff]   ;;  %v462_v6 = vld [vmem:[%s193_s23 + $0x18] sm:$0xff]   ;;  %v463_v7 = vld [vmem:[%s193_s23 + $0x10] sm:$0xff]  }
  0x11   : > { %v264_v5 = vsel %vm262_vm1, %v461_v4, 0  ;;  %v464_v8 = vld [vmem:[%s193_s23 + $0x8] sm:$0xff]   ;;  %v465_v9 = vld [vmem:[%s193_s23] sm:$0xff]  }
  0x12   : > { %419 = vmatpush3.bf16.msra.mxu0 %v264_v5 }
  0x13   : > { %223 = vperm.xlu0 %460, %v215_v3   ;;  %420 = vmatprep.subr.bf16.mxu0 %v491_v0 }
  0x16   : > { %421 = vmatpush3.bf16.msra.mxu0 %v462_v6 }
  0x17   : > { %422 = vmatprep.subr.bf16.mxu0 %v491_v0 }
  0x1a   : > { %423 = vmatpush3.bf16.msra.mxu0 %v463_v7 }
  0x1b   : > { %424 = vmatprep.subr.bf16.mxu0 %v491_v0 }
  0x1e   : > { %425 = vmatpush3.bf16.msra.mxu0 %v464_v8 }
  0x1f   : > { %426 = vmatprep.subr.bf16.mxu0 %v491_v0 }
  0x22   : > { %427 = vmatpush3.bf16.msra.mxu0 %v465_v9 }
  0x25   : > { %429 = vmatmul.mubr.msk.bf16.vlgmr.msra.gmra.mxu0 %vm258_vm2, %v466_v10 }
  0x8a   : > { %v219_v11 = vpop.permute.xlu0 %218 }
  0x8e   : > { %v224_v16 = vpop.permute.xlu0 %223 }
  0xe5   : > { %v300_v12 = vpop.f32.mrf.mxu0 }
  0xe6   : > { %v301_v13 = vadd.f32 %v300_v12, %v219_v11 }
  0xe7   : > { %v430_v14 = vpop.f32.mrf.mxu0 }
  0xe8   : > { %v307_v15 = vmax.f32 %v301_v13, 0.0 }
  0xe9   : > { %v303_v17 = vpop.f32.mrf.mxu0 }
  0xea   : > { %309 = vst [vmem:[%s201_s29] sm:$0xff] %v307_v15  ;;  %v304_v18 = vadd.f32 %v303_v17, %v224_v16 }
  0xeb   : > { %v431_v19 = vpop.f32.mrf.mxu0 }
  0xec   : > { %v308_v20 = vmax.f32 %v304_v18, 0.0 }
  0xee   : > { %310 = vst [vmem:[%s201_s29 + $0x8] sm:$0xff] %v308_v20 }
  0xef PF: > { %s13_s14 = sadd.s32 1, %s489_s14   ;;  %s564_s12 = smov %s485_s13 }
  0xf0   : > { %p10_p5 = scmp.ge.s32.totalorder %s13_s14, 18   ;;  %s565_s13 = smov %s567_s15 }
  0xf2   :  { %12 = sbr.rel (!%p10_p5) target bundleno = 2 (0x2), region = 62 }

// kernel: net_forward.29
= control target key start
LH: loop header
LB: loop body
LE: loop exit
PB: predicated region body
PF: predicated region fallthrough
CT: control target
= control target key end

     0   :  { %s600_s12 = smov 0   ;;  %s602_s13 = smov 0   ;;  %s672_s0 = inlined_call_operand.vmem [shape: bf16[16,144,128], index: 0, kind: input, shape index: {}]   ;;  %s673_s1 = inlined_call_operand.vmem [shape: bf16[32,144], index: 1, kind: input, shape index: {}]   ;;  %s674_s2 = inlined_call_operand.vmem [shape: f32[32,1], index: 2, kind: input, shape index: {}]   ;;  %s675_s3 = inlined_call_operand.vmem [shape: f32[16,32,128], index: 3, kind: output, shape index: {}]  }
   0x1   :  { %s604_s14 = smov 0  }
   0x2 LB: > { %s25_s15 = sadd.s32 1, %s573_s13  ;;  %p472_p0 = scmp.ge.s32.totalorder %s577_s14, 1  ;;  %s577_s14 = sphi %s604_s14, %s13_s14   ;;  %s573_s13 = sphi %s602_s13, %s677_s13   ;;  %s569_s12 = sphi %s600_s12, %s676_s12  }
   0x3   : > { %p27_p1 = scmp.ge.s32.totalorder %s25_s15, 16  ;;  %p156_p2 = scmp.lt.s32.totalorder %s577_s14, 17 }
   0x5   : > { %s679_s15 = smov (%p27_p1, %s25_s15), 0  ;;  %p157_p3 = pnand %p472_p0, %p156_p2 }
   0x6   : > { %p186_p4 = scmp.lt.s32.totalorder (!%p157_p3), %s569_s12, 15 }
   0x7   : > { %160 = sbr.rel (%p157_p3) target bundleno = 254 (0xfe), region = 32 }
   0xc   : > { %v579_v0 = vmov 0   ;;  %v551_v1 = vld [vmem:[%s673_s1 + $0x4] ss:$8 sps:$4 sm:$0xff]   ;;  %vm321_vm0 = vcmask 130048   ;;  %s681_s12 = smov (!%p186_p4, %s569_s12), 15  ;;  %v227_v3 = vld [vmem:[%s674_s2 + $0x10] sm:$0xff] }
   0xd   : > { %328 = vmatprep.subr.bf16.mxu0 %v579_v0  ;;  %494 = vmatprep.subr.bf16.mxu1 %v579_v0  ;;  %v554_v2 = vld [vmem:[%s673_s1 + $0x14] ss:$8 sps:$4 sm:$0xff]   ;;  %v225_v4 = vld [vmem:[%s674_s2] sm:$0xff]  ;;  %s512_s24 = smul.u32 72, %s681_s12  ;;  %v226_v6 = vld [vmem:[%s674_s2 + $0x8] sm:$0xff]  ;;  %s493_s9 = sshll.u32 %s681_s12, 5 }
   0xe   : > { %539 = vset.pattern.permute.xlu1 %v579_v0  ;;  %538 = vset.pattern.permute.xlu0 %v579_v0  ;;  %v228_v5 = vld [vmem:[%s674_s2 + $0x18] sm:$0xff]  ;;  %v549_v16 = vld [vmem:[%s673_s1] ss:$8 sps:$4 sm:$0xff]   ;;  %s201_s16 = scalar_lea.vmem %s675_s3, %s493_s9 }
   0xf   : > { %489 = vmatprep.mubr.msk.bf16.mxu0 %vm321_vm0, %v551_v1  ;;  %241 = vperm.xlu1 %539, %v227_v3   ;;  %s642_s4 = scalar_lea.vmem %s672_s0, %s512_s24  ;;  %v552_v17 = vld [vmem:[%s673_s1 + $0x10] ss:$8 sps:$4 sm:$0xff]  }
  0x10   : > { %490 = vmatprep.mubr.msk.bf16.mxu1 %vm321_vm0, %v554_v2  ;;  %231 = vperm.xlu0 %538, %v225_v4   ;;  %v540_v7 = vld [vmem:[%s642_s4 + $0x38] sm:$0xff]   ;;  %v541_v8 = vld [vmem:[%s642_s4 + $0x30] sm:$0xff]   ;;  %v542_v9 = vld [vmem:[%s642_s4 + $0x28] sm:$0xff]  }
  0x11   : > { %329 = vmatpush1.bf16.msra.mxu0 %v540_v7  ;;  %503 = vmatpush1.bf16.msra.mxu1 %v540_v7  ;;  %v543_v10 = vld [vmem:[%s642_s4 + $0x20] sm:$0xff]   ;;  %v544_v11 = vld [vmem:[%s642_s4 + $0x18] sm:$0xff]   ;;  %v545_v12 = vld [vmem:[%s642_s4 + $0x10] sm:$0xff]  }
  0x12   : > { %330 = vmatprep.subr.bf16.mxu0 %v579_v0  ;;  %495 = vmatprep.subr.bf16.mxu1 %v579_v0  ;;  %v546_v13 = vld [vmem:[%s642_s4 + $0x8] sm:$0xff]   ;;  %v547_v14 = vld [vmem:[%s642_s4] sm:$0xff]  }
  0x13   : > { %246 = vperm.xlu1 %539, %v228_v5   ;;  %v548_v15 = vld [vmem:[%s642_s4 + $0x40] sm:$0xff]  }
  0x14   : > { %236 = vperm.xlu0 %538, %v226_v6  }
  0x15   : > { %331 = vmatpush1.bf16.msra.mxu0 %v541_v8  ;;  %504 = vmatpush1.bf16.msra.mxu1 %v541_v8 }
  0x16   : > { %332 = vmatprep.subr.bf16.mxu0 %v579_v0  ;;  %496 = vmatprep.subr.bf16.mxu1 %v579_v0 }
  0x19   : > { %333 = vmatpush1.bf16.msra.mxu0 %v542_v9  ;;  %505 = vmatpush1.bf16.msra.mxu1 %v542_v9 }
  0x1a   : > { %334 = vmatprep.subr.bf16.mxu0 %v579_v0  ;;  %497 = vmatprep.subr.bf16.mxu1 %v579_v0 }
  0x1d   : > { %335 = vmatpush1.bf16.msra.mxu0 %v543_v10  ;;  %506 = vmatpush1.bf16.msra.mxu1 %v543_v10 }
  0x1e   : > { %336 = vmatprep.subr.bf16.mxu0 %v579_v0  ;;  %498 = vmatprep.subr.bf16.mxu1 %v579_v0 }
  0x21   : > { %337 = vmatpush1.bf16.msra.mxu0 %v544_v11  ;;  %507 = vmatpush1.bf16.msra.mxu1 %v544_v11 }
  0x22   : > { %338 = vmatprep.subr.bf16.mxu0 %v579_v0  ;;  %499 = vmatprep.subr.bf16.mxu1 %v579_v0 }
  0x25   : > { %339 = vmatpush1.bf16.msra.mxu0 %v545_v12  ;;  %508 = vmatpush1.bf16.msra.mxu1 %v545_v12 }
  0x26   : > { %340 = vmatprep.subr.bf16.mxu0 %v579_v0  ;;  %500 = vmatprep.subr.bf16.mxu1 %v579_v0 }
  0x29   : > { %341 = vmatpush1.bf16.msra.mxu0 %v546_v13  ;;  %509 = vmatpush1.bf16.msra.mxu1 %v546_v13 }
  0x2a   : > { %342 = vmatprep.subr.bf16.mxu0 %v579_v0  ;;  %501 = vmatprep.subr.bf16.mxu1 %v579_v0 }
  0x2d   : > { %343 = vmatpush1.bf16.msra.mxu0 %v547_v14  ;;  %510 = vmatpush1.bf16.msra.mxu1 %v547_v14 }
  0x2e   : > { %358 = vmatprep.subr.bf16.mxu0 %v579_v0  ;;  %502 = vmatprep.subr.bf16.mxu1 %v579_v0 }
  0x31   : > { %359 = vmatpush2.bf16.msra.mxu0 %v548_v15  ;;  %511 = vmatpush2.bf16.msra.mxu1 %v548_v15 }
  0x34   : > { %361 = vmatmul.mubr.bf16.vlgmr.msra.gmra.mxu0 %v549_v16  ;;  %369 = vmatmul.mubr.bf16.vlgmr.msra.gmra.mxu1 %v552_v17 }
  0x8a   : > { %v242_v18 = vpop.permute.xlu1 %241 }
  0x8b   : > { %v232_v19 = vpop.permute.xlu0 %231 }
  0x8e   : > { %v247_v26 = vpop.permute.xlu1 %246 }
  0x8f   : > { %v237_v27 = vpop.permute.xlu0 %236 }
  0xf4   : > { %v362_v20 = vpop.f32.mrf.mxu0  ;;  %v370_v21 = vpop.f32.mrf.mxu1 }
  0xf5   : > { %v363_v22 = vadd.f32 %v362_v20, %v232_v19  ;;  %v371_v23 = vadd.f32 %v370_v21, %v242_v18 }
  0xf6   : > { %v364_v24 = vpop.f32.mrf.mxu0  ;;  %v372_v25 = vpop.f32.mrf.mxu1 }
  0xf7   : > { %v377_v28 = vmax.f32 %v363_v22, 0.0  ;;  %v379_v29 = vmax.f32 %v371_v23, 0.0 }
  0xf8   : > { %v365_v30 = vpop.f32.mrf.mxu0  ;;  %v373_v31 = vpop.f32.mrf.mxu1 }
  0xf9   : > { %381 = vst [vmem:[%s201_s16] sm:$0xff] %v377_v28  ;;  %383 = vst [vmem:[%s201_s16 + $0x10] sm:$0xff] %v379_v29  ;;  %v366_v32 = vadd.f32 %v365_v30, %v237_v27  ;;  %v374_v33 = vadd.f32 %v373_v31, %v247_v26 }
  0xfa   : > { %v367_v34 = vpop.f32.mrf.mxu0  ;;  %v375_v35 = vpop.f32.mrf.mxu1 }
  0xfb   : > { %v378_v36 = vmax.f32 %v366_v32, 0.0  ;;  %v380_v37 = vmax.f32 %v374_v33, 0.0 }
  0xfd   : > { %382 = vst [vmem:[%s201_s16 + $0x8] sm:$0xff] %v378_v36  ;;  %384 = vst [vmem:[%s201_s16 + $0x18] sm:$0xff] %v380_v37 }
  0xfe PF: > { %s13_s14 = sadd.s32 1, %s577_s14   ;;  %s676_s12 = smov %s573_s13 }
  0xff   : > { %p10_p5 = scmp.ge.s32.totalorder %s13_s14, 18   ;;  %s677_s13 = smov %s679_s15 }
 0x101   :  { %12 = sbr.rel (!%p10_p5) target bundleno = 2 (0x2), region = 62 }

// kernel: net_forward.30
= control target key start
LH: loop header
LB: loop body
LE: loop exit
PB: predicated region body
PF: predicated region fallthrough
CT: control target
= control target key end

     0   :  { %s713_s12 = smov 0   ;;  %s715_s13 = smov 0   ;;  %s785_s0 = inlined_call_operand.vmem [shape: bf16[16,288,128], index: 0, kind: input, shape index: {}]   ;;  %s786_s1 = inlined_call_operand.vmem [shape: bf16[16,288], index: 1, kind: input, shape index: {}]   ;;  %s787_s2 = inlined_call_operand.vmem [shape: f32[16,1], index: 2, kind: input, shape index: {}]   ;;  %s788_s3 = inlined_call_operand.vmem [shape: f32[16,16,128], index: 3, kind: output, shape index: {}]  }
   0x1   :  { %s717_s14 = smov 0  }
   0x2 LB: > { %s25_s15 = sadd.s32 1, %s684_s13  ;;  %p553_p0 = scmp.ge.s32.totalorder %s688_s14, 1  ;;  %s688_s14 = sphi %s717_s14, %s13_s14   ;;  %s684_s13 = sphi %s715_s13, %s790_s13   ;;  %s680_s12 = sphi %s713_s12, %s789_s12  }
   0x3   : > { %p27_p1 = scmp.ge.s32.totalorder %s25_s15, 16  ;;  %p156_p2 = scmp.lt.s32.totalorder %s688_s14, 17 }
   0x5   : > { %s792_s15 = smov (%p27_p1, %s25_s15), 0  ;;  %p157_p3 = pnand %p553_p0, %p156_p2 }
   0x6   : > { %p186_p4 = scmp.lt.s32.totalorder (!%p157_p3), %s680_s12, 15 }
   0x7   : > { %160 = sbr.rel (%p157_p3) target bundleno = 255 (0xff), region = 32 }
   0xc   : > { %v690_v0 = vmov 0.0   ;;  %v664_v1 = vld [vmem:[%s786_s1 + $0x4] ss:$12 sps:$4 sm:$0xff]   ;;  %s794_s12 = smov (!%p186_p4, %s680_s12), 15  ;;  %vm691_vm0 = vmmov 0   ;;  %v692_v2 = vmov 0  }
   0xd   : > { %607 = vmatprep.subr.bf16.mxu1 %v690_v0  ;;  %611 = vmatprep.mubr.msk.bf16.mxu1 %vm691_vm0, %v690_v0  ;;  %v243_v3 = vld [vmem:[%s787_s2] sm:$0xff]  ;;  %s615_s20 = smul.u32 144, %s794_s12  ;;  %v244_v4 = vld [vmem:[%s787_s2 + $0x8] sm:$0xff]  ;;  %vm378_vm1 = vcmask 261120   ;;  %s581_s30 = sshll.u32 %s794_s12, 4 }
   0xe   : > { %414 = vmatprep.mubr.bf16.mxu0 %v664_v1  ;;  %643 = vset.pattern.permute.xlu0 %v692_v2  ;;  %v665_v19 = vld [vmem:[%s786_s1 + $0x8] ss:$12 sps:$4 sm:$0xff]   ;;  %v662_v24 = vld [vmem:[%s786_s1] ss:$12 sps:$4 sm:$0xff]   ;;  %s201_s6 = scalar_lea.vmem %s788_s3, %s581_s30 }
   0xf   : > { %247 = vperm.xlu0 %643, %v243_v3   ;;  %s746_s25 = scalar_lea.vmem %s785_s0, %s615_s20 }
  0x10   : > { %v644_v5 = vld [vmem:[%s746_s25 + $0x78] sm:$0xff]   ;;  %v646_v7 = vld [vmem:[%s746_s25 + $0x70] sm:$0xff]   ;;  %v648_v9 = vld [vmem:[%s746_s25 + $0x68] sm:$0xff]  }
  0x11   : > { %v645_v6 = vld [vmem:[%s746_s25 + $0x38] sm:$0xff]   ;;  %582 = vmatprep.subr.bf16.mxu0 %v644_v5  ;;  %v647_v8 = vld [vmem:[%s746_s25 + $0x30] sm:$0xff]   ;;  %v649_v10 = vld [vmem:[%s746_s25 + $0x28] sm:$0xff]  }
  0x12   : > { %583 = vmatpush3.bf16.msra.mxu0 %v645_v6  ;;  %v650_v11 = vld [vmem:[%s746_s25 + $0x60] sm:$0xff]   ;;  %v652_v13 = vld [vmem:[%s746_s25 + $0x58] sm:$0xff]   ;;  %v658_v14 = vld [vmem:[%s746_s25 + $0x88] sm:$0xff]  }
  0x13   : > { %252 = vperm.xlu0 %643, %v244_v4   ;;  %584 = vmatprep.subr.bf16.mxu0 %v646_v7  ;;  %v651_v12 = vld [vmem:[%s746_s25 + $0x20] sm:$0xff]   ;;  %v653_v15 = vld [vmem:[%s746_s25 + $0x18] sm:$0xff]   ;;  %v654_v16 = vld [vmem:[%s746_s25 + $0x50] sm:$0xff]  }
  0x14   : > { %608 = vmatpush3.bf16.msra.mxu1 %v658_v14  ;;  %v661_v17 = vld [vmem:[%s746_s25 + $0x80] sm:$0xff]   ;;  %v655_v18 = vld [vmem:[%s746_s25 + $0x10] sm:$0xff]   ;;  %v656_v20 = vld [vmem:[%s746_s25 + $0x48] sm:$0xff]  }
  0x15   : > { %609 = vmatprep.subr.bf16.mxu1 %v690_v0  ;;  %v657_v21 = vld [vmem:[%s746_s25 + $0x8] sm:$0xff]   ;;  %v659_v22 = vld [vmem:[%s746_s25 + $0x40] sm:$0xff]  }
  0x16   : > { %585 = vmatpush3.bf16.msra.mxu0 %v647_v8  ;;  %v660_v23 = vld [vmem:[%s746_s25] sm:$0xff]  }
  0x17   : > { %586 = vmatprep.subr.bf16.mxu0 %v648_v9 }
  0x18   : > { %610 = vmatpush3.bf16.msra.mxu1 %v661_v17 }
  0x1a   : > { %587 = vmatpush3.bf16.msra.mxu0 %v649_v10 }
  0x1b   : > { %588 = vmatprep.subr.bf16.mxu0 %v650_v11  ;;  %612 = vmatmul.mubr.msk.bf16.vlgmr.msra.gmra.mxu1 %vm378_vm1, %v665_v19 }
  0x1e   : > { %589 = vmatpush3.bf16.msra.mxu0 %v651_v12 }
  0x1f   : > { %590 = vmatprep.subr.bf16.mxu0 %v652_v13 }
  0x22   : > { %591 = vmatpush3.bf16.msra.mxu0 %v653_v15 }
  0x23   : > { %592 = vmatprep.subr.bf16.mxu0 %v654_v16 }
  0x26   : > { %593 = vmatpush3.bf16.msra.mxu0 %v655_v18 }
  0x27   : > { %594 = vmatprep.subr.bf16.mxu0 %v656_v20 }
  0x2a   : > { %595 = vmatpush3.bf16.msra.mxu0 %v657_v21 }
  0x2b   : > { %596 = vmatprep.subr.bf16.mxu0 %v659_v22 }
  0x2e   : > { %597 = vmatpush3.bf16.msra.mxu0 %v660_v23 }
  0x31   : > { %415 = vmatmul.mubr.bf16.vlgmr.msra.gmra.mxu0 %v662_v24 }
  0x8a   : > { %v248_v30 = vpop.permute.xlu0 %247 }
  0x8e   : > { %v253_v38 = vpop.permute.xlu0 %252 }
  0xdb   : > { %v457_v25 = vpop.f32.mrf.mxu1 }
  0xdd   : > { %v613_v26 = vpop.f32.mrf.mxu1 }
  0xdf   : > { %v460_v27 = vpop.f32.mrf.mxu1 }
  0xe1   : > { %v614_v28 = vpop.f32.mrf.mxu1 }
  0xf1   : > { %v598_v29 = vpop.f32.mrf.mxu0 }
  0xf3   : > { %v599_v31 = vpop.f32.mrf.mxu0 }
  0xf4   : > { %v600_v32 = vadd.f32 %v599_v31, %v598_v29 }
  0xf5   : > { %v601_v33 = vpop.f32.mrf.mxu0 }
  0xf6   : > { %v417_v34 = vadd.f32 %v600_v32, %v248_v30 }
  0xf7   : > { %v602_v35 = vpop.f32.mrf.mxu0 }
  0xf8   : > { %v458_v36 = vadd.f32 %v457_v25, %v417_v34  ;;  %v603_v37 = vadd.f32 %v602_v35, %v601_v33 }
  0xfa   : > { %464 = vst [vmem:[%s201_s6] sm:$0xff] %v458_v36  ;;  %v420_v39 = vadd.f32 %v603_v37, %v253_v38 }
  0xfc   : > { %v461_v40 = vadd.f32 %v460_v27, %v420_v39 }
  0xfe   : > { %465 = vst [vmem:[%s201_s6 + $0x8] sm:$0xff] %v461_v40 }
  0xff PF: > { %s13_s14 = sadd.s32 1, %s688_s14   ;;  %s789_s12 = smov %s684_s13 }
 0x100   : > { %p10_p5 = scmp.ge.s32.totalorder %s13_s14, 18   ;;  %s790_s13 = smov %s792_s15 }
 0x102   :  { %12 = sbr.rel (!%p10_p5) target bundleno = 2 (0x2), region = 62 }

// kernel: net_forward.31
= control target key start
LH: loop header
LB: loop body
LE: loop exit
PB: predicated region body
PF: predicated region fallthrough
CT: control target
= control target key end

     0   :  { %s512_s12 = smov 0   ;;  %s514_s13 = smov 0   ;;  %s555_s0 = inlined_call_operand.vmem [shape: bf16[16,144,128], index: 0, kind: input, shape index: {}]   ;;  %s556_s1 = inlined_call_operand.vmem [shape: bf16[8,144], index: 1, kind: input, shape index: {}]   ;;  %s557_s2 = inlined_call_operand.vmem [shape: f32[8,1], index: 2, kind: input, shape index: {}]   ;;  %s558_s3 = inlined_call_operand.vmem [shape: f32[16,8,128], index: 3, kind: output, shape index: {}]  }
   0x1   :  { %s516_s14 = smov 0  }
   0x2 LB: > { %s25_s15 = sadd.s32 1, %s485_s13  ;;  %p412_p0 = scmp.ge.s32.totalorder %s489_s14, 1  ;;  %s489_s14 = sphi %s516_s14, %s13_s14   ;;  %s485_s13 = sphi %s514_s13, %s560_s13   ;;  %s481_s12 = sphi %s512_s12, %s559_s12  }
   0x3   : > { %p27_p1 = scmp.ge.s32.totalorder %s25_s15, 16  ;;  %p156_p2 = scmp.lt.s32.totalorder %s489_s14, 17 }
   0x5   : > { %s562_s15 = smov (%p27_p1, %s25_s15), 0  ;;  %p157_p3 = pnand %p412_p0, %p156_p2 }
   0x6   : > { %p185_p4 = scmp.lt.s32.totalorder (!%p157_p3), %s481_s12, 15 }
   0x7   : > { %160 = sbr.rel (%p157_p3) target bundleno = 251 (0xfb), region = 32 }
   0xc   : > { %v201_v0 = vld [vmem:[%s556_s1] sm:$0xff]  ;;  %vm286_vm0 = vcmask 130048   ;;  %v491_v2 = vmov 0   ;;  %s564_s12 = smov (!%p185_p4, %s481_s12), 15 }
   0xd   : > { %v220_v1 = vld [vmem:[%s557_s2] sm:$0xff]  ;;  %290 = vmatprep.subr.bf16.mxu0 %v491_v2  ;;  %v416_v3 = vcombine.high %v201_v0, %v201_v0  ;;  %455 = vset.pattern.permute.xlu0 %v491_v2  ;;  %s429_s20 = smul.u32 72, %s564_s12  ;;  %v415_v13 = vcombine.low %v201_v0, %v201_v0  ;;  %s414_s24 = sshll.u32 %s564_s12, 3 }
   0xe   : > { %223 = vperm.xlu0 %455, %v220_v1   ;;  %s199_s27 = scalar_lea.vmem %s558_s3, %s414_s24 }
   0xf   : > { %426 = vmatprep.mubr.msk.bf16.mxu0 %vm286_vm0, %v416_v3  ;;  %s192_s23 = scalar_lea.vmem %s555_s0, %s429_s20 }
  0x10   : > { %v456_v4 = vld [vmem:[%s192_s23 + $0x38] sm:$0xff]   ;;  %v457_v5 = vld [vmem:[%s192_s23 + $0x30] sm:$0xff]   ;;  %v458_v6 = vld [vmem:[%s192_s23 + $0x28] sm:$0xff]  }
  0x11   : > { %291 = vmatpush1.bf16.msra.mxu0 %v456_v4  ;;  %v459_v7 = vld [vmem:[%s192_s23 + $0x20] sm:$0xff]   ;;  %v460_v8 = vld [vmem:[%s192_s23 + $0x18] sm:$0xff]   ;;  %v461_v9 = vld [vmem:[%s192_s23 + $0x10] sm:$0xff]  }
  0x12   : > { %292 = vmatprep.subr.bf16.mxu0 %v491_v2  ;;  %v462_v10 = vld [vmem:[%s192_s23 + $0x8] sm:$0xff]   ;;  %v463_v11 = vld [vmem:[%s192_s23] sm:$0xff]  }
  0x13   : > { %v464_v12 = vld [vmem:[%s192_s23 + $0x40] sm:$0xff]  }
  0x15   : > { %293 = vmatpush1.bf16.msra.mxu0 %v457_v5 }
  0x16   : > { %294 = vmatprep.subr.bf16.mxu0 %v491_v2 }
  0x19   : > { %295 = vmatpush1.bf16.msra.mxu0 %v458_v6 }
  0x1a   : > { %296 = vmatprep.subr.bf16.mxu0 %v491_v2 }
  0x1d   : > { %297 = vmatpush1.bf16.msra.mxu0 %v459_v7 }
  0x1e   : > { %298 = vmatprep.subr.bf16.mxu0 %v491_v2 }
  0x21   : > { %299 = vmatpush1.bf16.msra.mxu0 %v460_v8 }
  0x22   : > { %300 = vmatprep.subr.bf16.mxu0 %v491_v2 }
  0x25   : > { %301 = vmatpush1.bf16.msra.mxu0 %v461_v9 }
  0x26   : > { %302 = vmatprep.subr.bf16.mxu0 %v491_v2 }
  0x29   : > { %303 = vmatpush1.bf16.msra.mxu0 %v462_v10 }
  0x2a   : > { %304 = vmatprep.subr.bf16.mxu0 %v491_v2 }
  0x2d   : > { %305 = vmatpush1.bf16.msra.mxu0 %v463_v11 }
  0x2e   : > { %320 = vmatprep.subr.bf16.mxu0 %v491_v2 }
  0x31   : > { %321 = vmatpush2.bf16.msra.mxu0 %v464_v12 }
  0x34   : > { %323 = vmatmul.mubr.bf16.vlgmr.msra.gmra.mxu0 %v415_v13 }
  0x89   : > { %v224_v14 = vpop.permute.xlu0 %223 }
  0xf4   : > { %v324_v15 = vpop.f32.mrf.mxu0 }
  0xf5   : > { %v325_v16 = vadd.f32 %v324_v15, %v224_v14 }
  0xf6   : > { %v326_v17 = vpop.f32.mrf.mxu0 }
  0xf7   : > { %330 = vst [vmem:[%s199_s27] sm:$0xff] %v325_v16 }
  0xf8   : > { %v327_v18 = vpop.f32.mrf.mxu0 }
  0xfa   : > { %v328_v19 = vpop.f32.mrf.mxu0 }
  0xfb PF: > { %s13_s14 = sadd.s32 1, %s489_s14   ;;  %s559_s12 = smov %s485_s13 }
  0xfc   : > { %p10_p5 = scmp.ge.s32.totalorder %s13_s14, 18   ;;  %s560_s13 = smov %s562_s15 }
  0xfe   :  { %12 = sbr.rel (!%p10_p5) target bundleno = 2 (0x2), region = 62 }

// kernel: net_forward.32
= control target key start
LH: loop header
LB: loop body
LE: loop exit
PB: predicated region body
PF: predicated region fallthrough
CT: control target
= control target key end

     0   :  { %s486_s14 = smov 0   ;;  %s488_s15 = smov 0   ;;  %s526_s0 = inlined_call_operand.vmem [shape: bf16[16,72,128], index: 0, kind: input, shape index: {}]   ;;  %s527_s1 = inlined_call_operand.vmem [shape: bf16[1,72], index: 1, kind: input, shape index: {}]   ;;  %s528_s2 = inlined_call_operand.<no memory space> [shape: f32[1,1], index: 2, kind: input, shape index: {}]   ;;  %s529_s3 = inlined_call_operand.vmem [shape: f32[16,1,128], index: 3, kind: output, shape index: {}]  }
   0x1   :  { %v8_v0 = vstv %s528_s2  ;;  %s490_s16 = smov 0  }
   0x2   :  { %9 = vst [vmem:[#allocation2] sm:$0x1] %v8_v0 }
   0x3 LB: > { %s27_s2 = sadd.s32 1, %s454_s15  ;;  %p372_p0 = scmp.ge.s32.totalorder %s458_s16, 1  ;;  %s458_s16 = sphi %s490_s16, %s15_s16   ;;  %s454_s15 = sphi %s488_s15, %s531_s15   ;;  %s450_s14 = sphi %s486_s14, %s530_s14  }
   0x4   : > { %p29_p1 = scmp.ge.s32.totalorder %s27_s2, 16  ;;  %p158_p2 = scmp.lt.s32.totalorder %s458_s16, 17 }
   0x6   : > { %s533_s2 = smov (%p29_p1, %s27_s2), 0  ;;  %p159_p3 = pnand %p372_p0, %p158_p2 }
   0x7   : > { %p186_p4 = scmp.lt.s32.totalorder (!%p159_p3), %s450_s14, 15 }
   0x8   : > { %162 = sbr.rel (%p159_p3) target bundleno = 237 (0xed), region = 32 }
   0xd   : > { %v460_v1 = vmov 0.0   ;;  %vm461_vm0 = vmmov 0   ;;  %v211_v2 = vld [vmem:[#allocation2] sm:$0x1]  ;;  %s535_s14 = smov (!%p186_p4, %s450_s14), 15  ;;  %v462_v3 = vmov 0   ;;  %v217_v11 = vlaneseq }
   0xe   : > { %388 = vmatprep.subr.bf16.mxu0 %v460_v1  ;;  %398 = vmatprep.mubr.msk.bf16.mxu0 %vm461_vm0, %v460_v1  ;;  %s402_s17 = smul.u32 36, %s535_s14  ;;  %vm252_vm1 = vcmask 1043456   ;;  %v201_v10 = vld [vmem:[%s527_s1] sm:$0x1]  ;;  %vm248_vm2 = vcmask 588800   ;;  %s199_s25 = scalar_lea.vmem %s529_s3, %s535_s14 }
   0xf   : > { %430 = vset.pattern.permute.xlu0 %v462_v3  ;;  %v218_v12 = vshrl.u32 %v217_v11, 7 }
  0x10   : > { %214 = vperm.xlu0 %430, %v211_v2   ;;  %s193_s20 = scalar_lea.vmem %s526_s0, %s402_s17 }
  0x11   : > { %v431_v4 = vld [vmem:[%s193_s20 + $0x20] ss:$0 sps:$4 sm:$0xff]   ;;  %v432_v6 = vld [vmem:[%s193_s20 + $0x18] sm:$0xff]   ;;  %v433_v7 = vld [vmem:[%s193_s20 + $0x10] sm:$0xff]   ;;  %v219_v13 = vsub.s32 0, %v218_v12 }
  0x12   : > { %v254_v5 = vsel %vm252_vm1, %v431_v4, 0  ;;  %v434_v8 = vld [vmem:[%s193_s20 + $0x8] sm:$0xff]   ;;  %v435_v9 = vld [vmem:[%s193_s20] sm:$0xff]  }
  0x13   : > { %389 = vmatpush3.bf16.msra.mxu0 %v254_v5 }
  0x14   : > { %390 = vmatprep.subr.bf16.mxu0 %v460_v1 }
  0x17   : > { %391 = vmatpush3.bf16.msra.mxu0 %v432_v6 }
  0x18   : > { %392 = vmatprep.subr.bf16.mxu0 %v460_v1 }
  0x1b   : > { %393 = vmatpush3.bf16.msra.mxu0 %v433_v7 }
  0x1c   : > { %394 = vmatprep.subr.bf16.mxu0 %v460_v1 }
  0x1f   : > { %395 = vmatpush3.bf16.msra.mxu0 %v434_v8 }
  0x20   : > { %396 = vmatprep.subr.bf16.mxu0 %v460_v1 }
  0x23   : > { %397 = vmatpush3.bf16.msra.mxu0 %v435_v9 }
  0x26   : > { %399 = vmatmul.mubr.msk.bf16.vlgmr.msra.gmra.mxu0 %vm248_vm2, %v201_v10 }
  0x8b   : > { %v215_v14 = vpop.permute.xlu0 %214 }
  0x8c   : > { %v220_v15 = vrot.slane %v215_v14, %v219_v13 }
  0xe6   : > { %v290_v16 = vpop.f32.mrf.mxu0 }
  0xe7   : > { %v291_v17 = vadd.f32 %v290_v16, %v220_v15 }
  0xe8   : > { %v400_v18 = vpop.f32.mrf.mxu0 }
  0xe9   : > { %296 = vst [vmem:[%s199_s25] sm:$0x1] %v291_v17 }
  0xea   : > { %v293_v19 = vpop.f32.mrf.mxu0 }
  0xec   : > { %v401_v20 = vpop.f32.mrf.mxu0 }
  0xed PF: > { %s15_s16 = sadd.s32 1, %s458_s16   ;;  %s530_s14 = smov %s454_s15 }
  0xee   : > { %p12_p5 = scmp.ge.s32.totalorder %s15_s16, 18   ;;  %s531_s15 = smov %s533_s2 }
  0xf0   :  { %14 = sbr.rel (!%p12_p5) target bundleno = 3 (0x3), region = 62 }

// kernel: squeeze.38
= control target key start
LH: loop header
LB: loop body
LE: loop exit
PB: predicated region body
PF: predicated region fallthrough
CT: control target
= control target key end

     0   :  { %s125_s0 = inlined_call_operand.vmem [shape: f32[2,64], index: 0, kind: input, shape index: {}]   ;;  %s126_s1 = inlined_call_operand.hbm [shape: f32[2,8,8], index: 1, kind: output, shape index: {}]  }
   0x1   :  { %v6_v0 = vld [vmem:[%s125_s0] sm:$0x3] }
   0x2   :  { %7 = vst [vmem:[#allocation2] sm:$0x3] %v6_v0 }
   0x3   :  { %2 = vsyncpa [#allocation1], 0  ;;  %s93_s0 = smov 120   ;;  %s94_s8 = smov 104   ;;  %vm9_vm0 = vcmask 64512  }
   0x4   :  { %s95_s9 = smov 112   ;;  %s96_s10 = smov 96  }
   0x5   :  { %s97_s11 = smov 88   ;;  %s98_s12 = smov 80  }
   0x6   :  { %s99_s13 = smov 72   ;;  %s100_s14 = smov [#allocation0]  }
   0x7   :  { %s57_s15 = sshll.u32 %s100_s14, 4  ;;  %s58_s15 = int_to_ptr.vmem [resolvable:$true] %s57_s15 }
   0x8   :  { %s71_s16 = scalar_lea.vmem %s58_s15, 256  ;;  %p76_p1 = scmp.lt.s32.totalorder %s58_s15, %s58_s15 }
   0x9   :  { %v11_v1 = vld [vmem:[#allocation2] sm:$0x3]   ;;  %p72_p0 = scmp.ne.s32.totalorder %s58_s15, %s71_s16  ;;  %p77_p2 = scmp.lt.s32.totalorder %s71_s16, %s71_s16 }
   0xa   :  { %v23_v2 = vld [vmem:[#allocation2] sm:$0x3]   ;;  %12 = vrot.lane.b32.xlu0 %v11_v1, %s93_s0 }
   0xb   :  { %24 = vrot.lane.b32.xlu1 %v23_v2, %s94_s8  ;;  %v17_v3 = vld [vmem:[#allocation2] sm:$0x3]   ;;  %p78_p3 = por %p77_p2, %p76_p1 }
   0xc   :  { %v29_v4 = vld [vmem:[#allocation2] sm:$0x3]  }
   0xd   :  { %v8_v5 = vld [vmem:[#allocation2] sm:$0x3]   ;;  %p79_p4 = pnand %p78_p3, %p72_p0 }
   0xe   :  { %10 = vst.msk [vmem:[#allocation0] ss:$8 sm:$0x3] %vm9_vm0, %v8_v5   ;;  %18 = vrot.lane.b32.xlu0 %v17_v3, %s95_s9  ;;  %v35_v6 = vld [vmem:[#allocation2] sm:$0x3]  }
   0xf   :  { %30 = vrot.lane.b32.xlu1 %v29_v4, %s96_s10  ;;  %v41_v7 = vld [vmem:[#allocation2] sm:$0x3]  }
  0x10   :  { %v47_v8 = vld [vmem:[#allocation2] sm:$0x3]  }
  0x12   :  { %36 = vrot.lane.b32.xlu0 %v35_v6, %s97_s11 }
  0x13   :  { %42 = vrot.lane.b32.xlu1 %v41_v7, %s98_s12 }
  0x16   :  { %48 = vrot.lane.b32.xlu0 %v47_v8, %s99_s13 }
  0x7c   :  { %v13_v9 = vpop.permute.xlu0 %12  }
  0x7d   :  { %v25_v10 = vpop.permute.xlu1 %24   ;;  %16 = vst.msk [vmem:[#allocation0 + $0x1] ss:$8 sm:$0x3] %vm9_vm0, %v13_v9  }
  0x7e   :  { %28 = vst.msk [vmem:[#allocation0 + $0x3] ss:$8 sm:$0x3] %vm9_vm0, %v25_v10  }
  0x80   :  { %v19_v11 = vpop.permute.xlu0 %18  }
  0x81   :  { %v31_v12 = vpop.permute.xlu1 %30   ;;  %22 = vst.msk [vmem:[#allocation0 + $0x2] ss:$8 sm:$0x3] %vm9_vm0, %v19_v11  }
  0x82   :  { %34 = vst.msk [vmem:[#allocation0 + $0x4] ss:$8 sm:$0x3] %vm9_vm0, %v31_v12  }
  0x84   :  { %v37_v13 = vpop.permute.xlu0 %36  }
  0x85   :  { %v43_v14 = vpop.permute.xlu1 %42   ;;  %40 = vst.msk [vmem:[#allocation0 + $0x5] ss:$8 sm:$0x3] %vm9_vm0, %v37_v13  }
  0x86   :  { %46 = vst.msk [vmem:[#allocation0 + $0x6] ss:$8 sm:$0x3] %vm9_vm0, %v43_v14  }
  0x88   :  { %v49_v15 = vpop.permute.xlu0 %48  }
  0x89   :  { %52 = vst.msk [vmem:[#allocation0 + $0x7] ss:$8 sm:$0x3] %vm9_vm0, %v49_v15  }
  0x8a   :  { %82 = shalt.err (!%p79_p4)
}
  0x8b   :  { %60 = dma.vmem_to_hbm [thread:$0]  %s58_s15, 256, %s126_s1, [#allocation1]  }
  0x8c   :  { %91 = dma.done.wait [#allocation1], 256  }
  0x8d   :  { %92 = vsyncadd [#allocation1], 4294967040 }
  0x8e   :  { %62 = vsyncpa [#allocation1], 1 }

// kernel: net_forward.33
= control target key start
LH: loop header
LB: loop body
LE: loop exit
PB: predicated region body
PF: predicated region fallthrough
CT: control target
= control target key end

     0   :  { %s509_s12 = smov 0   ;;  %s511_s13 = smov 0   ;;  %s553_s0 = inlined_call_operand.vmem [shape: f32[2,8,128], index: 0, kind: input, shape index: {}]   ;;  %s554_s1 = inlined_call_operand.vmem [shape: f32[2,8,1], index: 1, kind: input, shape index: {}]   ;;  %s555_s2 = inlined_call_operand.vmem [shape: f32[2,1,128], index: 2, kind: output, shape index: {0}]   ;;  %s556_s3 = inlined_call_operand.vmem [shape: f32[2,1,128], index: 3, kind: output, shape index: {1}]  }
   0x1   :  { %s513_s14 = smov 0  }
   0x2 LB: > { %s26_s15 = sadd.s32 1, %s482_s13  ;;  %p427_p0 = scmp.ge.s32.totalorder %s486_s14, 1  ;;  %s486_s14 = sphi %s513_s14, %s14_s14   ;;  %s482_s13 = sphi %s511_s13, %s558_s13   ;;  %s478_s12 = sphi %s509_s12, %s557_s12  }
   0x3   : > { %p28_p1 = scmp.ge.s32.totalorder %s26_s15, 2  ;;  %p169_p2 = scmp.lt.s32.totalorder %s486_s14, 3 }
   0x5   : > { %s560_s15 = smov (%p28_p1, %s26_s15), 0  ;;  %p170_p3 = pnand %p427_p0, %p169_p2 }
   0x6   : > { %p206_p4 = scmp.lt.s32.totalorder (!%p170_p3), %s478_s12, 1 }
   0x7   : > { %173 = sbr.rel (%p170_p3) target bundleno = 155 (0x9b), region = 28 }
   0xc   : > { %v488_v0 = vmov 0   ;;  %s562_s12 = smov (!%p206_p4, %s478_s12), 1  ;;  %v261_v18 = vlaneseq  ;;  %vm276_vm0 = vcmask 1040384   ;;  %vm281_vm1 = vcmask 1046528  }
   0xd   : > { %459 = vset.pattern.permute.xlu0 %v488_v0  ;;  %s428_s16 = sshll.u32 %s562_s12, 3  ;;  %vm287_vm2 = vcmask 1045504   ;;  %vm293_vm3 = vcmask 1044480   ;;  %s228_s25 = scalar_lea.vmem %s556_s3, %s562_s12 }
   0xe   : > { %s216_s19 = scalar_lea.vmem %s554_s1, %s428_s16  ;;  %s212_s22 = scalar_lea.vmem %s553_s0, %s428_s16  ;;  %v262_v19 = vshrl.u32 %v261_v18, 7 }
   0xf   : > { %v247_v1 = vld [vmem:[%s216_s19] sm:$0xff]  ;;  %s222_s28 = scalar_lea.vmem %s555_s2, %s562_s12 }
  0x10   : > { %v229_v2 = vld [vmem:[%s212_s22] sm:$0xff]  ;;  %250 = vperm.xlu0 %459, %v247_v1   ;;  %v263_v20 = vcvt.s32.f32 %v262_v19 }
  0x11   : > { %v230_v3 = vrot.slane %v229_v2, 4 }
  0x13   : > { %v231_v4 = vmax.f32 %v229_v2, %v230_v3 }
  0x15   : > { %v232_v5 = vrot.slane %v231_v4, 2 }
  0x17   : > { %v233_v6 = vmax.f32 %v231_v4, %v232_v5 }
  0x19   : > { %v234_v7 = vrot.slane %v233_v6, 1 }
  0x1b   : > { %v235_v8 = vmax.f32 %v233_v6, %v234_v7 }
  0x1d   : > { %v236_v9 = vsub.f32 %v229_v2, %v235_v8 }
  0x1f   : > { %v237_v10 = vmul.f32 1.442695, %v236_v9 }
  0x21   : > { %460 = vpow2.f32 %v237_v10 }
  0x2e   : > { %v461_v11 = vpop.eup %460 }
  0x2f   : > { %v239_v12 = vrot.slane %v461_v11, 4 }
  0x31   : > { %v240_v13 = vadd.f32 %v461_v11, %v239_v12 }
  0x33   : > { %v241_v14 = vrot.slane %v240_v13, 2 }
  0x35   : > { %v242_v15 = vadd.f32 %v241_v14, %v240_v13 }
  0x37   : > { %v243_v16 = vrot.slane %v242_v15, 1 }
  0x39   : > { %v244_v17 = vadd.f32 %v243_v16, %v242_v15 }
  0x3b   : > { %462 = vrcp.f32 %v244_v17 }
  0x48   : > { %v463_v21 = vpop.eup %462 }
  0x49   : > { %v246_v22 = vmul.f32 %v463_v21, %v461_v11 }
  0x4b   : > { %v264_v23 = vmul.f32 %v263_v20, %v246_v22  ;;  %v274_v24 = vrot.slane %v246_v22, 7 }
  0x4d   : > { %v265_v25 = vrot.slane %v264_v23, 4  ;;  %v277_v26 = vsel %vm276_vm0, 0.0, %v274_v24  ;;  %v278_v27 = vsel %vm276_vm0, %v274_v24, 0.0 }
  0x4e   : > { %v282_v28 = vrot.slane %v277_v26, 1  ;;  %v283_v29 = vrot.slane %v278_v27, 1  ;;  %v288_v33 = vrot.slane %v277_v26, 2  ;;  %v289_v34 = vrot.slane %v278_v27, 2 }
  0x4f   : > { %v266_v30 = vadd.f32 %v265_v25, %v264_v23  ;;  %v294_v39 = vrot.slane %v277_v26, 3  ;;  %v295_v40 = vrot.slane %v278_v27, 3 }
  0x50   : > { %v284_v32 = vsel %vm281_vm1, %v282_v28, %v283_v29  ;;  %v290_v38 = vsel %vm287_vm2, %v288_v33, %v289_v34 }
  0x51   : > { %v267_v31 = vrot.slane %v266_v30, 2  ;;  %v286_v36 = vadd.f32 %v284_v32, %v277_v26  ;;  %v296_v44 = vsel %vm293_vm3, %v294_v39, %v295_v40 }
  0x53   : > { %v268_v35 = vadd.f32 %v267_v31, %v266_v30  ;;  %v292_v42 = vadd.f32 %v290_v38, %v286_v36 }
  0x55   : > { %v269_v37 = vrot.slane %v268_v35, 1  ;;  %v298_v46 = vadd.f32 %v296_v44, %v292_v42 }
  0x57   : > { %v270_v41 = vadd.f32 %v269_v37, %v268_v35 }
  0x59   : > { %v271_v43 = vfloor.f32 %v270_v41 }
  0x5b   : > { %v432_v45 = vtrunc.f32 %v271_v43 }
  0x5d   : > { %v433_v47 = vcvt.f32.s32 %v432_v45 }
  0x5f   : > { %vm299_vm4 = vcmp.eq.s32.totalorder %v262_v19, %v433_v47 }
  0x60   : > { %v300_v48 = vsel %vm299_vm4, %v298_v46, 0.0 }
  0x61   : > { %v301_v49 = vrot.slane %v300_v48, 4 }
  0x63   : > { %v302_v50 = vadd.f32 %v301_v49, %v300_v48 }
  0x65   : > { %v303_v51 = vrot.slane %v302_v50, 2 }
  0x67   : > { %v304_v52 = vadd.f32 %v303_v51, %v302_v50 }
  0x69   : > { %v305_v53 = vrot.slane %v304_v52, 1 }
  0x6b   : > { %v306_v54 = vadd.f32 %v305_v53, %v304_v52 }
  0x6d   : > { %307 = vst [vmem:[%s228_s25] sm:$0x1] %v306_v54 }
  0x8b   : > { %v251_v55 = vpop.permute.xlu0 %250 }
  0x8c   : > { %v253_v56 = vmul.f32 %v251_v55, %v246_v22 }
  0x8e   : > { %v254_v57 = vrot.slane %v253_v56, 4 }
  0x90   : > { %v255_v58 = vadd.f32 %v254_v57, %v253_v56 }
  0x92   : > { %v256_v59 = vrot.slane %v255_v58, 2 }
  0x94   : > { %v257_v60 = vadd.f32 %v256_v59, %v255_v58 }
  0x96   : > { %v258_v61 = vrot.slane %v257_v60, 1 }
  0x98   : > { %v259_v62 = vadd.f32 %v258_v61, %v257_v60 }
  0x9a   : > { %260 = vst [vmem:[%s222_s28] sm:$0x1] %v259_v62 }
  0x9b PF: > { %s14_s14 = sadd.s32 1, %s486_s14   ;;  %s557_s12 = smov %s482_s13 }
  0x9c   : > { %p11_p5 = scmp.ge.s32.totalorder %s14_s14, 4   ;;  %s558_s13 = smov %s560_s15 }
  0x9e   :  { %13 = sbr.rel (!%p11_p5) target bundleno = 2 (0x2), region = 73 }

</bundles_post_ra>
